<compile_context>
chip_gen: v5e
topology: v5e:2x2
jax: 0.10.0
libtpu: 0.0.40
codegen_flags: <defaults>
</compile_context>

<pallas_src>
import math

import jax
import jax.numpy as jnp
from jax.experimental import pallas as pl
from jax.experimental.pallas import tpu as pltpu

# ---- scaled-down Config (small shapes, same structure as the PyTorch Config) ----
VOCAB = 512
HIDDEN = 128
NUM_LAYERS = 2
NUM_HEADS = 4
HEAD_DIM = HIDDEN // NUM_HEADS
INTERMEDIATE = 256
MAX_POS = 32
LN_EPS = 1e-12
INIT_RANGE = 0.02
SEQ = 16
BATCH = 2

# pl.reciprocal(approx=True) for the softmax denominator (EUP slot, ~1e-3 rel err
# vs exact division).  Set False for closer-to-PyTorch numerics.
APPROX_SOFTMAX_RECIP = True

WEIGHT_ORDER = ["wqkv", "bqkv", "wo", "bo", "g1", "be1", "w1", "b1",
                "w2", "b2", "g2", "be2", "wl", "bl", "gh", "beh", "wd", "bd"]


# ------------------------------ in-kernel helpers ------------------------------
def _gelu(x):
    # TODO(synk): nn.GELU() default is exact-erf; tanh-approx used per perf review
    # (tanh goes to the otherwise-idle EUP slot; deviation negligible at these scales).
    c = math.sqrt(2.0 / math.pi)
    return 0.5 * x * (1.0 + jnp.tanh(c * (x + 0.044715 * (x * x * x))))


def _layer_norm(x, gamma, beta, eps):
    mu = jnp.mean(x, axis=-1, keepdims=True)
    var = jnp.mean(jnp.square(x - mu), axis=-1, keepdims=True)
    return (x - mu) * jax.lax.rsqrt(var + eps) * gamma + beta


# ------------------------------ fused whole-network kernel ------------------------------
def fused_mlm_kernel(x_ref, wqkv, bqkv, wo, bo, g1, be1, w1, b1, w2, b2, g2, be2,
                     wl, bl, gh, beh, wd, bd, o_ref):
    bc, S, H = x_ref.shape                      # batch-chunk, seq, hidden
    R = bc * S                                  # flattened row count for row-wise matmuls
    NH, HD = NUM_HEADS, HEAD_DIM
    bf16 = jnp.bfloat16
    scale = 1.0 / math.sqrt(HD)

    x = x_ref[...].reshape(R, H)                # (R, H) f32 activations

    def split_heads(flat):                      # (R, H) -> (bc*NH, S, HD), head-batched
        t = flat.reshape(bc, S, H)
        t = jnp.stack([t[:, :, h * HD:(h + 1) * HD] for h in range(NH)], axis=1)
        return t.reshape(bc * NH, S, HD)

    for l in range(NUM_LAYERS):                 # static unroll over layers
        # ---- fused, lane-dense Q/K/V projection: one (R,128)x(128,384) matmul ----
        xb = x.astype(bf16)
        qkv = jnp.dot(xb, wqkv[l], preferred_element_type=jnp.float32) + bqkv[l]   # (R,3H)

        q = split_heads(qkv[:, :H]).astype(bf16)            # (bc*NH, S, HD)
        k = split_heads(qkv[:, H:2 * H]).astype(bf16)
        v = split_heads(qkv[:, 2 * H:]).astype(bf16)

        # ---- attention core, batched over (batch-chunk * heads) ----
        s = jnp.einsum('bqd,bkd->bqk', q, k,
                       preferred_element_type=jnp.float32) * scale                 # (bc*NH,S,S)
        s = s - jnp.max(s, axis=-1, keepdims=True)
        p = jnp.exp(s)
        denom = jnp.sum(p, axis=-1, keepdims=True)
        if APPROX_SOFTMAX_RECIP:
            p = p * pl.reciprocal(denom, approx=True)
        else:
            p = p / denom
        ctx = jnp.einsum('bqk,bkd->bqd', p.astype(bf16), v,
                         preferred_element_type=jnp.float32)                        # (bc*NH,S,HD)

        # ---- head merge (head-major lanes) + single K=128 output projection ----
        ctx4 = ctx.reshape(bc, NH, S, HD)
        merged = jnp.concatenate([ctx4[:, h] for h in range(NH)],
                                 axis=-1).reshape(R, H)                             # (R, H)
        attn = jnp.dot(merged.astype(bf16), wo[l],
                       preferred_element_type=jnp.float32) + bo[l]                  # (R, H)

        x = _layer_norm(x + attn, g1[l], be1[l], LN_EPS)     # post-norm 1 (f32)

        # ---- feed-forward ----
        h1 = _gelu(jnp.dot(x.astype(bf16), w1[l],
                           preferred_element_type=jnp.float32) + b1[l])
        ff = jnp.dot(h1.astype(bf16), w2[l],
                     preferred_element_type=jnp.float32) + b2[l]
        x = _layer_norm(x + ff, g2[l], be2[l], LN_EPS)       # post-norm 2 (f32)

    # ---- MLM head ----
    mlm_h = _gelu(jnp.dot(x.astype(bf16), wl[...],
                          preferred_element_type=jnp.float32) + bl[...])
    hn = _layer_norm(mlm_h, gh[...], beh[...], LN_EPS)
    logits = jnp.dot(hn.astype(bf16), wd[...],
                     preferred_element_type=jnp.float32) + bd[...]                  # (R, VOCAB)
    # Output kept f32 to match the PyTorch module; cast to bf16 here (and in
    # out_shape) if downstream tolerates it to halve the writeback DMA.
    o_ref[...] = logits.reshape(bc, S, VOCAB).astype(o_ref.dtype)


# ------------------------------ pallas_call wrapper ------------------------------
def _param_spec(arr):
    # Full-array block, same block index for every grid step (loaded once).
    return pl.BlockSpec(arr.shape, lambda b, _n=arr.ndim: (0,) * _n)


def _num_batch_chunks(batch):
    # Dual-TensorCore chips (v7x): split the batch across the cores (grid parallel).
    # Single-core v5e/v6e (or unknown): fold the whole batch into one block — better
    # MXU M-fill and one fewer ~0.35us grid step.
    cores = getattr(jax.devices()[0], "num_cores", 1)
    try:
        cores = int(cores)
    except (TypeError, ValueError):
        cores = 1
    chunks = max(1, min(batch, cores))
    while batch % chunks:
        chunks -= 1
    return chunks


def run_fused_network(x, packed):
    B, S, H = x.shape
    chunks = _num_batch_chunks(B)
    bc = B // chunks
    weights = [packed[k] for k in WEIGHT_ORDER]
    in_specs = [pl.BlockSpec((bc, S, H), lambda b: (b, 0, 0))]
    in_specs += [_param_spec(w) for w in weights]
    return pl.pallas_call(
        fused_mlm_kernel,
        out_shape=jax.ShapeDtypeStruct((B, S, VOCAB), jnp.float32),
        grid=(chunks,),
        in_specs=in_specs,
        out_specs=pl.BlockSpec((bc, S, VOCAB), lambda b: (b, 0, 0)),
        compiler_params=pltpu.CompilerParams(dimension_semantics=("parallel",)),
    )(x, *weights)


# ------------------------------ parameter init (deterministic) ------------------------------
def init_params(key):
    keys = iter(jax.random.split(key, 128))

    def normal(shape):
        return INIT_RANGE * jax.random.normal(next(keys), shape, jnp.float32)

    zeros = lambda shape: jnp.zeros(shape, jnp.float32)
    ones = lambda shape: jnp.ones(shape, jnp.float32)

    word_emb = normal((VOCAB, HIDDEN)).at[0].set(0.0)   # padding_idx=0 zeroed
    pos_emb = normal((MAX_POS, HIDDEN))

    layers = []
    for _ in range(NUM_LAYERS):
        layers.append(dict(
            wq=normal((HIDDEN, HIDDEN)), bq=zeros((1, HIDDEN)),
            wk=normal((HIDDEN, HIDDEN)), bk=zeros((1, HIDDEN)),
            wv=normal((HIDDEN, HIDDEN)), bv=zeros((1, HIDDEN)),
            wo=normal((HIDDEN, HIDDEN)), bo=zeros((1, HIDDEN)),
            g1=ones((1, HIDDEN)), be1=zeros((1, HIDDEN)),
            w1=normal((HIDDEN, INTERMEDIATE)), b1=zeros((1, INTERMEDIATE)),
            w2=normal((INTERMEDIATE, HIDDEN)), b2=zeros((1, HIDDEN)),
            g2=ones((1, HIDDEN)), be2=zeros((1, HIDDEN)),
        ))

    head = dict(
        wl=normal((HIDDEN, HIDDEN)), bl=zeros((1, HIDDEN)),
        g=ones((1, HIDDEN)), be=zeros((1, HIDDEN)),
        wd=normal((HIDDEN, VOCAB)), bd=zeros((1, VOCAB)),   # decoder.bias tied, zero-init
    )
    return dict(word_emb=word_emb, pos_emb=pos_emb, layers=layers, head=head)


def pack_params(params):
    """Repack weights into kernel layouts:
       * wqkv: (L, H, 3*NH*HD) — lane-dense fused QKV weight ([Q|K|V] column blocks,
         columns within each block ordered head-major, matching nn.MultiheadAttention).
       * wo:   (L, H, H)       — input rows head-major (used directly on merged heads).
       * all matmul weights cast to bf16; biases / LN params stay f32.
       (All weights use an (in, out) convention: x @ W.)"""
    bf16 = jnp.bfloat16
    keys = ["wqkv", "bqkv", "wo", "bo", "g1", "be1", "w1", "b1", "w2", "b2", "g2", "be2"]
    acc = {k: [] for k in keys}
    for lp in params["layers"]:
        acc["wqkv"].append(jnp.concatenate([lp["wq"], lp["wk"], lp["wv"]], axis=1))  # (H, 3H)
        acc["bqkv"].append(jnp.concatenate([lp["bq"], lp["bk"], lp["bv"]], axis=1))  # (1, 3H)
        acc["wo"].append(lp["wo"]); acc["bo"].append(lp["bo"])
        acc["g1"].append(lp["g1"]); acc["be1"].append(lp["be1"])
        acc["w1"].append(lp["w1"]); acc["b1"].append(lp["b1"])
        acc["w2"].append(lp["w2"]); acc["b2"].append(lp["b2"])
        acc["g2"].append(lp["g2"]); acc["be2"].append(lp["be2"])

    st = {k: jnp.stack(v, axis=0) for k, v in acc.items()}
    head = params["head"]
    return dict(
        word_emb=params["word_emb"], pos_emb=params["pos_emb"],
        wqkv=st["wqkv"].astype(bf16), bqkv=st["bqkv"],
        wo=st["wo"].astype(bf16), bo=st["bo"],
        g1=st["g1"], be1=st["be1"],
        w1=st["w1"].astype(bf16), b1=st["b1"],
        w2=st["w2"].astype(bf16), b2=st["b2"],
        g2=st["g2"], be2=st["be2"],
        wl=head["wl"].astype(bf16), bl=head["bl"],
        gh=head["g"], beh=head["be"],
        wd=head["wd"].astype(bf16), bd=head["bd"],
    )


# ------------------------------ full forward ------------------------------
@jax.jit
def mlm_forward(input_ids, packed):
    B, S = input_ids.shape
    # Embedding (gather glue in plain JAX): word + position embeddings, eval-mode dropout.
    x = packed["word_emb"][input_ids] + packed["pos_emb"][:S][None, :, :]
    x = x.astype(jnp.float32)
    return run_fused_network(x, packed)


if __name__ == "__main__":
    key = jax.random.PRNGKey(0)
    k_param, k_ids = jax.random.split(key)
    params = init_params(k_param)
    packed = pack_params(params)
    input_ids = jax.random.randint(k_ids, (BATCH, SEQ), 0, VOCAB, dtype=jnp.int32)

    logits = mlm_forward(input_ids, packed)
    jax.block_until_ready(logits)
    assert logits.shape == (BATCH, SEQ, VOCAB)
    assert bool(jnp.all(jnp.isfinite(logits)))
    print("KERNEL_OK")
</pallas_src>

<mosaic_0001>
module attributes {stable_mosaic.version = 11 : i64} {
  func.func @fused_mlm_kernel(%arg0: i32, %arg1: memref<2x16x128xf32, #tpu.memory_space<vmem>>, %arg2: memref<2x128x384xbf16, #tpu.memory_space<vmem>>, %arg3: memref<2x1x384xf32, #tpu.memory_space<vmem>>, %arg4: memref<2x128x128xbf16, #tpu.memory_space<vmem>>, %arg5: memref<2x1x128xf32, #tpu.memory_space<vmem>>, %arg6: memref<2x1x128xf32, #tpu.memory_space<vmem>>, %arg7: memref<2x1x128xf32, #tpu.memory_space<vmem>>, %arg8: memref<2x128x256xbf16, #tpu.memory_space<vmem>>, %arg9: memref<2x1x256xf32, #tpu.memory_space<vmem>>, %arg10: memref<2x256x128xbf16, #tpu.memory_space<vmem>>, %arg11: memref<2x1x128xf32, #tpu.memory_space<vmem>>, %arg12: memref<2x1x128xf32, #tpu.memory_space<vmem>>, %arg13: memref<2x1x128xf32, #tpu.memory_space<vmem>>, %arg14: memref<128x128xbf16, #tpu.memory_space<vmem>>, %arg15: memref<1x128xf32, #tpu.memory_space<vmem>>, %arg16: memref<1x128xf32, #tpu.memory_space<vmem>>, %arg17: memref<1x128xf32, #tpu.memory_space<vmem>>, %arg18: memref<128x512xbf16, #tpu.memory_space<vmem>>, %arg19: memref<1x512xf32, #tpu.memory_space<vmem>>, %arg20: memref<2x16x512xf32, #tpu.memory_space<vmem>>) attributes {dimension_semantics = [#tpu.dimension_semantics<parallel>], iteration_bounds = array<i64: 1>, scalar_prefetch = 0 : i64, scratch_operands = 0 : i64, tpu.core_type = #tpu.core_type<tc>, window_params = [{transform_indices = @transform_0, window_bounds = array<i64: 2, 16, 128>}, {pipeline_mode = #tpu.pipeline_mode<synchronous>, transform_indices = @transform_1, window_bounds = array<i64: 2, 128, 384>}, {pipeline_mode = #tpu.pipeline_mode<synchronous>, transform_indices = @transform_2, window_bounds = array<i64: 2, 1, 384>}, {pipeline_mode = #tpu.pipeline_mode<synchronous>, transform_indices = @transform_3, window_bounds = array<i64: 2, 128, 128>}, {pipeline_mode = #tpu.pipeline_mode<synchronous>, transform_indices = @transform_4, window_bounds = array<i64: 2, 1, 128>}, {pipeline_mode = #tpu.pipeline_mode<synchronous>, transform_indices = @transform_5, window_bounds = array<i64: 2, 1, 128>}, {pipeline_mode = #tpu.pipeline_mode<synchronous>, transform_indices = @transform_6, window_bounds = array<i64: 2, 1, 128>}, {pipeline_mode = #tpu.pipeline_mode<synchronous>, transform_indices = @transform_7, window_bounds = array<i64: 2, 128, 256>}, {pipeline_mode = #tpu.pipeline_mode<synchronous>, transform_indices = @transform_8, window_bounds = array<i64: 2, 1, 256>}, {pipeline_mode = #tpu.pipeline_mode<synchronous>, transform_indices = @transform_9, window_bounds = array<i64: 2, 256, 128>}, {pipeline_mode = #tpu.pipeline_mode<synchronous>, transform_indices = @transform_10, window_bounds = array<i64: 2, 1, 128>}, {pipeline_mode = #tpu.pipeline_mode<synchronous>, transform_indices = @transform_11, window_bounds = array<i64: 2, 1, 128>}, {pipeline_mode = #tpu.pipeline_mode<synchronous>, transform_indices = @transform_12, window_bounds = array<i64: 2, 1, 128>}, {pipeline_mode = #tpu.pipeline_mode<synchronous>, transform_indices = @transform_13, window_bounds = array<i64: 128, 128>}, {pipeline_mode = #tpu.pipeline_mode<synchronous>, transform_indices = @transform_14, window_bounds = array<i64: 1, 128>}, {pipeline_mode = #tpu.pipeline_mode<synchronous>, transform_indices = @transform_15, window_bounds = array<i64: 1, 128>}, {pipeline_mode = #tpu.pipeline_mode<synchronous>, transform_indices = @transform_16, window_bounds = array<i64: 1, 128>}, {pipeline_mode = #tpu.pipeline_mode<synchronous>, transform_indices = @transform_17, window_bounds = array<i64: 128, 512>}, {pipeline_mode = #tpu.pipeline_mode<synchronous>, transform_indices = @transform_18, window_bounds = array<i64: 1, 512>}, {transform_indices = @transform_19, window_bounds = array<i64: 2, 16, 512>}]} {
    %c0 = arith.constant 0 : index
    %c0_0 = arith.constant 0 : index
    %c0_1 = arith.constant 0 : index
    %0 = vector.load %arg1[%c0, %c0_0, %c0_1] : memref<2x16x128xf32, #tpu.memory_space<vmem>>, vector<2x16x128xf32>
    %1 = vector.shape_cast %0 : vector<2x16x128xf32> to vector<32x128xf32>
    %2 = arith.truncf %1 : vector<32x128xf32> to vector<32x128xbf16>
    %c0_2 = arith.constant 0 : index
    %c0_3 = arith.constant 0 : index
    %c0_4 = arith.constant 0 : index
    %3 = vector.load %arg2[%c0_2, %c0_3, %c0_4] : memref<2x128x384xbf16, #tpu.memory_space<vmem>>, vector<1x128x384xbf16>
    %4 = vector.shape_cast %3 : vector<1x128x384xbf16> to vector<128x384xbf16>
    %cst = arith.constant dense<0.000000e+00> : vector<32x384xf32>
    %5 = tpu.matmul %2, %4, %cst {dimension_numbers = #tpu.dot_dimension_numbers<[1], [0], [0], [1], [0, 0, 1, 1], [], []>} : vector<32x128xbf16>, vector<128x384xbf16>, vector<32x384xf32> -> vector<32x384xf32>
    %c0_5 = arith.constant 0 : index
    %c0_6 = arith.constant 0 : index
    %c0_7 = arith.constant 0 : index
    %6 = vector.load %arg3[%c0_5, %c0_6, %c0_7] : memref<2x1x384xf32, #tpu.memory_space<vmem>>, vector<1x1x384xf32>
    %7 = vector.shape_cast %6 : vector<1x1x384xf32> to vector<1x384xf32>
    %8 = vector.broadcast %7 : vector<1x384xf32> to vector<32x384xf32>
    %9 = arith.addf %5, %8 : vector<32x384xf32>
    %10 = vector.extract_strided_slice %9 {offsets = [0, 0], sizes = [32, 128], strides = [1, 1]} : vector<32x384xf32> to vector<32x128xf32>
    %11 = vector.shape_cast %10 : vector<32x128xf32> to vector<2x16x128xf32>
    %12 = vector.extract_strided_slice %11 {offsets = [0, 0, 0], sizes = [2, 16, 32], strides = [1, 1, 1]} : vector<2x16x128xf32> to vector<2x16x32xf32>
    %13 = vector.extract_strided_slice %11 {offsets = [0, 0, 32], sizes = [2, 16, 32], strides = [1, 1, 1]} : vector<2x16x128xf32> to vector<2x16x32xf32>
    %14 = vector.extract_strided_slice %11 {offsets = [0, 0, 64], sizes = [2, 16, 32], strides = [1, 1, 1]} : vector<2x16x128xf32> to vector<2x16x32xf32>
    %15 = vector.extract_strided_slice %11 {offsets = [0, 0, 96], sizes = [2, 16, 32], strides = [1, 1, 1]} : vector<2x16x128xf32> to vector<2x16x32xf32>
    %16 = vector.shape_cast %12 : vector<2x16x32xf32> to vector<2x1x16x32xf32>
    %17 = vector.shape_cast %13 : vector<2x16x32xf32> to vector<2x1x16x32xf32>
    %18 = vector.shape_cast %14 : vector<2x16x32xf32> to vector<2x1x16x32xf32>
    %19 = vector.shape_cast %15 : vector<2x16x32xf32> to vector<2x1x16x32xf32>
    %20 = tpu.concatenate %16, %17, %18, %19 in 1 : vector<2x1x16x32xf32>, vector<2x1x16x32xf32>, vector<2x1x16x32xf32>, vector<2x1x16x32xf32> -> vector<2x4x16x32xf32>
    %21 = vector.shape_cast %20 : vector<2x4x16x32xf32> to vector<8x16x32xf32>
    %22 = arith.truncf %21 : vector<8x16x32xf32> to vector<8x16x32xbf16>
    %23 = vector.extract_strided_slice %9 {offsets = [0, 128], sizes = [32, 128], strides = [1, 1]} : vector<32x384xf32> to vector<32x128xf32>
    %24 = vector.shape_cast %23 : vector<32x128xf32> to vector<2x16x128xf32>
    %25 = vector.extract_strided_slice %24 {offsets = [0, 0, 0], sizes = [2, 16, 32], strides = [1, 1, 1]} : vector<2x16x128xf32> to vector<2x16x32xf32>
    %26 = vector.extract_strided_slice %24 {offsets = [0, 0, 32], sizes = [2, 16, 32], strides = [1, 1, 1]} : vector<2x16x128xf32> to vector<2x16x32xf32>
    %27 = vector.extract_strided_slice %24 {offsets = [0, 0, 64], sizes = [2, 16, 32], strides = [1, 1, 1]} : vector<2x16x128xf32> to vector<2x16x32xf32>
    %28 = vector.extract_strided_slice %24 {offsets = [0, 0, 96], sizes = [2, 16, 32], strides = [1, 1, 1]} : vector<2x16x128xf32> to vector<2x16x32xf32>
    %29 = vector.shape_cast %25 : vector<2x16x32xf32> to vector<2x1x16x32xf32>
    %30 = vector.shape_cast %26 : vector<2x16x32xf32> to vector<2x1x16x32xf32>
    %31 = vector.shape_cast %27 : vector<2x16x32xf32> to vector<2x1x16x32xf32>
    %32 = vector.shape_cast %28 : vector<2x16x32xf32> to vector<2x1x16x32xf32>
    %33 = tpu.concatenate %29, %30, %31, %32 in 1 : vector<2x1x16x32xf32>, vector<2x1x16x32xf32>, vector<2x1x16x32xf32>, vector<2x1x16x32xf32> -> vector<2x4x16x32xf32>
    %34 = vector.shape_cast %33 : vector<2x4x16x32xf32> to vector<8x16x32xf32>
    %35 = arith.truncf %34 : vector<8x16x32xf32> to vector<8x16x32xbf16>
    %36 = vector.extract_strided_slice %9 {offsets = [0, 256], sizes = [32, 128], strides = [1, 1]} : vector<32x384xf32> to vector<32x128xf32>
    %37 = vector.shape_cast %36 : vector<32x128xf32> to vector<2x16x128xf32>
    %38 = vector.extract_strided_slice %37 {offsets = [0, 0, 0], sizes = [2, 16, 32], strides = [1, 1, 1]} : vector<2x16x128xf32> to vector<2x16x32xf32>
    %39 = vector.extract_strided_slice %37 {offsets = [0, 0, 32], sizes = [2, 16, 32], strides = [1, 1, 1]} : vector<2x16x128xf32> to vector<2x16x32xf32>
    %40 = vector.extract_strided_slice %37 {offsets = [0, 0, 64], sizes = [2, 16, 32], strides = [1, 1, 1]} : vector<2x16x128xf32> to vector<2x16x32xf32>
    %41 = vector.extract_strided_slice %37 {offsets = [0, 0, 96], sizes = [2, 16, 32], strides = [1, 1, 1]} : vector<2x16x128xf32> to vector<2x16x32xf32>
    %42 = vector.shape_cast %38 : vector<2x16x32xf32> to vector<2x1x16x32xf32>
    %43 = vector.shape_cast %39 : vector<2x16x32xf32> to vector<2x1x16x32xf32>
    %44 = vector.shape_cast %40 : vector<2x16x32xf32> to vector<2x1x16x32xf32>
    %45 = vector.shape_cast %41 : vector<2x16x32xf32> to vector<2x1x16x32xf32>
    %46 = tpu.concatenate %42, %43, %44, %45 in 1 : vector<2x1x16x32xf32>, vector<2x1x16x32xf32>, vector<2x1x16x32xf32>, vector<2x1x16x32xf32> -> vector<2x4x16x32xf32>
    %47 = vector.shape_cast %46 : vector<2x4x16x32xf32> to vector<8x16x32xf32>
    %48 = arith.truncf %47 : vector<8x16x32xf32> to vector<8x16x32xbf16>
    "tpu.trace_start"() <{level = 10 : i32, message = "bqd,bkd->bqk"}> : () -> ()
    %cst_8 = arith.constant dense<0.000000e+00> : vector<8x16x16xf32>
    %49 = tpu.matmul %22, %35, %cst_8 {dimension_numbers = #tpu.dot_dimension_numbers<[2], [2], [1], [1], [0, 0, 0, 1, 1, 1], [0], [0]>} : vector<8x16x32xbf16>, vector<8x16x32xbf16>, vector<8x16x16xf32> -> vector<8x16x16xf32>
    "tpu.trace_stop"() : () -> ()
    %cst_9 = arith.constant 0.176776692 : f32
    %50 = vector.broadcast %cst_9 : f32 to vector<8x16x16xf32>
    %51 = arith.mulf %49, %50 : vector<8x16x16xf32>
    %cst_10 = arith.constant dense<0xFF800000> : vector<8x16xf32>
    %52 = vector.multi_reduction <maximumf>, %51, %cst_10 [2] : vector<8x16x16xf32> to vector<8x16xf32>
    %53 = vector.shape_cast %52 : vector<8x16xf32> to vector<8x16x1xf32>
    %54 = vector.broadcast %53 : vector<8x16x1xf32> to vector<8x16x16xf32>
    %55 = arith.subf %51, %54 : vector<8x16x16xf32>
    %56 = math.exp %55 : vector<8x16x16xf32>
    %cst_11 = arith.constant dense<0.000000e+00> : vector<8x16xf32>
    %57 = vector.multi_reduction <add>, %56, %cst_11 [2] : vector<8x16x16xf32> to vector<8x16xf32>
    %58 = vector.shape_cast %57 : vector<8x16xf32> to vector<8x16x1xf32>
    %59 = tpu.reciprocal %58 {approx = true} : vector<8x16x1xf32> -> vector<8x16x1xf32>
    %60 = vector.broadcast %59 : vector<8x16x1xf32> to vector<8x16x16xf32>
    %61 = arith.mulf %56, %60 : vector<8x16x16xf32>
    %62 = arith.truncf %61 : vector<8x16x16xf32> to vector<8x16x16xbf16>
    "tpu.trace_start"() <{level = 10 : i32, message = "bqk,bkd->bqd"}> : () -> ()
    %cst_12 = arith.constant dense<0.000000e+00> : vector<8x16x32xf32>
    %63 = tpu.matmul %62, %48, %cst_12 {dimension_numbers = #tpu.dot_dimension_numbers<[2], [1], [1], [2], [0, 0, 0, 1, 1, 2], [0], [0]>} : vector<8x16x16xbf16>, vector<8x16x32xbf16>, vector<8x16x32xf32> -> vector<8x16x32xf32>
    "tpu.trace_stop"() : () -> ()
    %64 = vector.shape_cast %63 : vector<8x16x32xf32> to vector<2x4x16x32xf32>
    %65 = vector.extract_strided_slice %64 {offsets = [0, 0, 0, 0], sizes = [2, 1, 16, 32], strides = [1, 1, 1, 1]} : vector<2x4x16x32xf32> to vector<2x1x16x32xf32>
    %66 = vector.shape_cast %65 : vector<2x1x16x32xf32> to vector<2x16x32xf32>
    %67 = vector.extract_strided_slice %64 {offsets = [0, 1, 0, 0], sizes = [2, 1, 16, 32], strides = [1, 1, 1, 1]} : vector<2x4x16x32xf32> to vector<2x1x16x32xf32>
    %68 = vector.shape_cast %67 : vector<2x1x16x32xf32> to vector<2x16x32xf32>
    %69 = vector.extract_strided_slice %64 {offsets = [0, 2, 0, 0], sizes = [2, 1, 16, 32], strides = [1, 1, 1, 1]} : vector<2x4x16x32xf32> to vector<2x1x16x32xf32>
    %70 = vector.shape_cast %69 : vector<2x1x16x32xf32> to vector<2x16x32xf32>
    %71 = vector.extract_strided_slice %64 {offsets = [0, 3, 0, 0], sizes = [2, 1, 16, 32], strides = [1, 1, 1, 1]} : vector<2x4x16x32xf32> to vector<2x1x16x32xf32>
    %72 = vector.shape_cast %71 : vector<2x1x16x32xf32> to vector<2x16x32xf32>
    %73 = tpu.concatenate %66, %68, %70, %72 in 2 : vector<2x16x32xf32>, vector<2x16x32xf32>, vector<2x16x32xf32>, vector<2x16x32xf32> -> vector<2x16x128xf32>
    %74 = vector.shape_cast %73 : vector<2x16x128xf32> to vector<32x128xf32>
    %75 = arith.truncf %74 : vector<32x128xf32> to vector<32x128xbf16>
    %c0_13 = arith.constant 0 : index
    %c0_14 = arith.constant 0 : index
    %c0_15 = arith.constant 0 : index
    %76 = vector.load %arg4[%c0_13, %c0_14, %c0_15] : memref<2x128x128xbf16, #tpu.memory_space<vmem>>, vector<1x128x128xbf16>
    %77 = vector.shape_cast %76 : vector<1x128x128xbf16> to vector<128x128xbf16>
    %cst_16 = arith.constant dense<0.000000e+00> : vector<32x128xf32>
    %78 = tpu.matmul %75, %77, %cst_16 {dimension_numbers = #tpu.dot_dimension_numbers<[1], [0], [0], [1], [0, 0, 1, 1], [], []>} : vector<32x128xbf16>, vector<128x128xbf16>, vector<32x128xf32> -> vector<32x128xf32>
    %c0_17 = arith.constant 0 : index
    %c0_18 = arith.constant 0 : index
    %c0_19 = arith.constant 0 : index
    %79 = vector.load %arg5[%c0_17, %c0_18, %c0_19] : memref<2x1x128xf32, #tpu.memory_space<vmem>>, vector<1x1x128xf32>
    %80 = vector.shape_cast %79 : vector<1x1x128xf32> to vector<1x128xf32>
    %81 = vector.broadcast %80 : vector<1x128xf32> to vector<32x128xf32>
    %82 = arith.addf %78, %81 : vector<32x128xf32>
    %83 = arith.addf %1, %82 : vector<32x128xf32>
    %c0_20 = arith.constant 0 : index
    %c0_21 = arith.constant 0 : index
    %c0_22 = arith.constant 0 : index
    %84 = vector.load %arg6[%c0_20, %c0_21, %c0_22] : memref<2x1x128xf32, #tpu.memory_space<vmem>>, vector<1x1x128xf32>
    %85 = vector.shape_cast %84 : vector<1x1x128xf32> to vector<1x128xf32>
    %c0_23 = arith.constant 0 : index
    %c0_24 = arith.constant 0 : index
    %c0_25 = arith.constant 0 : index
    %86 = vector.load %arg7[%c0_23, %c0_24, %c0_25] : memref<2x1x128xf32, #tpu.memory_space<vmem>>, vector<1x1x128xf32>
    %87 = vector.shape_cast %86 : vector<1x1x128xf32> to vector<1x128xf32>
    %cst_26 = arith.constant dense<0.000000e+00> : vector<32xf32>
    %88 = vector.multi_reduction <add>, %83, %cst_26 [1] : vector<32x128xf32> to vector<32xf32>
    %89 = vector.shape_cast %88 : vector<32xf32> to vector<32x1xf32>
    %cst_27 = arith.constant 1.280000e+02 : f32
    %90 = vector.broadcast %cst_27 : f32 to vector<32x1xf32>
    %91 = arith.divf %89, %90 : vector<32x1xf32>
    %92 = vector.broadcast %91 : vector<32x1xf32> to vector<32x128xf32>
    %93 = arith.subf %83, %92 : vector<32x128xf32>
    %94 = arith.mulf %93, %93 : vector<32x128xf32>
    %cst_28 = arith.constant dense<0.000000e+00> : vector<32xf32>
    %95 = vector.multi_reduction <add>, %94, %cst_28 [1] : vector<32x128xf32> to vector<32xf32>
    %96 = vector.shape_cast %95 : vector<32xf32> to vector<32x1xf32>
    %cst_29 = arith.constant 1.280000e+02 : f32
    %97 = vector.broadcast %cst_29 : f32 to vector<32x1xf32>
    %98 = arith.divf %96, %97 : vector<32x1xf32>
    %99 = vector.broadcast %91 : vector<32x1xf32> to vector<32x128xf32>
    %100 = arith.subf %83, %99 : vector<32x128xf32>
    %cst_30 = arith.constant 9.99999996E-13 : f32
    %101 = vector.broadcast %cst_30 : f32 to vector<32x1xf32>
    %102 = arith.addf %98, %101 : vector<32x1xf32>
    %103 = math.rsqrt %102 : vector<32x1xf32>
    %104 = vector.broadcast %103 : vector<32x1xf32> to vector<32x128xf32>
    %105 = arith.mulf %100, %104 : vector<32x128xf32>
    %106 = vector.broadcast %85 : vector<1x128xf32> to vector<32x128xf32>
    %107 = arith.mulf %105, %106 : vector<32x128xf32>
    %108 = vector.broadcast %87 : vector<1x128xf32> to vector<32x128xf32>
    %109 = arith.addf %107, %108 : vector<32x128xf32>
    %110 = arith.truncf %109 : vector<32x128xf32> to vector<32x128xbf16>
    %c0_31 = arith.constant 0 : index
    %c0_32 = arith.constant 0 : index
    %c0_33 = arith.constant 0 : index
    %111 = vector.load %arg8[%c0_31, %c0_32, %c0_33] : memref<2x128x256xbf16, #tpu.memory_space<vmem>>, vector<1x128x256xbf16>
    %112 = vector.shape_cast %111 : vector<1x128x256xbf16> to vector<128x256xbf16>
    %cst_34 = arith.constant dense<0.000000e+00> : vector<32x256xf32>
    %113 = tpu.matmul %110, %112, %cst_34 {dimension_numbers = #tpu.dot_dimension_numbers<[1], [0], [0], [1], [0, 0, 1, 1], [], []>} : vector<32x128xbf16>, vector<128x256xbf16>, vector<32x256xf32> -> vector<32x256xf32>
    %c0_35 = arith.constant 0 : index
    %c0_36 = arith.constant 0 : index
    %c0_37 = arith.constant 0 : index
    %114 = vector.load %arg9[%c0_35, %c0_36, %c0_37] : memref<2x1x256xf32, #tpu.memory_space<vmem>>, vector<1x1x256xf32>
    %115 = vector.shape_cast %114 : vector<1x1x256xf32> to vector<1x256xf32>
    %116 = vector.broadcast %115 : vector<1x256xf32> to vector<32x256xf32>
    %117 = arith.addf %113, %116 : vector<32x256xf32>
    %cst_38 = arith.constant 5.000000e-01 : f32
    %118 = vector.broadcast %cst_38 : f32 to vector<32x256xf32>
    %119 = arith.mulf %118, %117 : vector<32x256xf32>
    %120 = arith.mulf %117, %117 : vector<32x256xf32>
    %121 = arith.mulf %120, %117 : vector<32x256xf32>
    %cst_39 = arith.constant 4.471500e-02 : f32
    %122 = vector.broadcast %cst_39 : f32 to vector<32x256xf32>
    %123 = arith.mulf %122, %121 : vector<32x256xf32>
    %124 = arith.addf %117, %123 : vector<32x256xf32>
    %cst_40 = arith.constant 0.797884583 : f32
    %125 = vector.broadcast %cst_40 : f32 to vector<32x256xf32>
    %126 = arith.mulf %125, %124 : vector<32x256xf32>
    %127 = math.tanh %126 : vector<32x256xf32>
    %cst_41 = arith.constant 1.000000e+00 : f32
    %128 = vector.broadcast %cst_41 : f32 to vector<32x256xf32>
    %129 = arith.addf %128, %127 : vector<32x256xf32>
    %130 = arith.mulf %119, %129 : vector<32x256xf32>
    %131 = arith.truncf %130 : vector<32x256xf32> to vector<32x256xbf16>
    %c0_42 = arith.constant 0 : index
    %c0_43 = arith.constant 0 : index
    %c0_44 = arith.constant 0 : index
    %132 = vector.load %arg10[%c0_42, %c0_43, %c0_44] : memref<2x256x128xbf16, #tpu.memory_space<vmem>>, vector<1x256x128xbf16>
    %133 = vector.shape_cast %132 : vector<1x256x128xbf16> to vector<256x128xbf16>
    %cst_45 = arith.constant dense<0.000000e+00> : vector<32x128xf32>
    %134 = tpu.matmul %131, %133, %cst_45 {dimension_numbers = #tpu.dot_dimension_numbers<[1], [0], [0], [1], [0, 0, 1, 1], [], []>} : vector<32x256xbf16>, vector<256x128xbf16>, vector<32x128xf32> -> vector<32x128xf32>
    %c0_46 = arith.constant 0 : index
    %c0_47 = arith.constant 0 : index
    %c0_48 = arith.constant 0 : index
    %135 = vector.load %arg11[%c0_46, %c0_47, %c0_48] : memref<2x1x128xf32, #tpu.memory_space<vmem>>, vector<1x1x128xf32>
    %136 = vector.shape_cast %135 : vector<1x1x128xf32> to vector<1x128xf32>
    %137 = vector.broadcast %136 : vector<1x128xf32> to vector<32x128xf32>
    %138 = arith.addf %134, %137 : vector<32x128xf32>
    %139 = arith.addf %109, %138 : vector<32x128xf32>
    %c0_49 = arith.constant 0 : index
    %c0_50 = arith.constant 0 : index
    %c0_51 = arith.constant 0 : index
    %140 = vector.load %arg12[%c0_49, %c0_50, %c0_51] : memref<2x1x128xf32, #tpu.memory_space<vmem>>, vector<1x1x128xf32>
    %141 = vector.shape_cast %140 : vector<1x1x128xf32> to vector<1x128xf32>
    %c0_52 = arith.constant 0 : index
    %c0_53 = arith.constant 0 : index
    %c0_54 = arith.constant 0 : index
    %142 = vector.load %arg13[%c0_52, %c0_53, %c0_54] : memref<2x1x128xf32, #tpu.memory_space<vmem>>, vector<1x1x128xf32>
    %143 = vector.shape_cast %142 : vector<1x1x128xf32> to vector<1x128xf32>
    %cst_55 = arith.constant dense<0.000000e+00> : vector<32xf32>
    %144 = vector.multi_reduction <add>, %139, %cst_55 [1] : vector<32x128xf32> to vector<32xf32>
    %145 = vector.shape_cast %144 : vector<32xf32> to vector<32x1xf32>
    %cst_56 = arith.constant 1.280000e+02 : f32
    %146 = vector.broadcast %cst_56 : f32 to vector<32x1xf32>
    %147 = arith.divf %145, %146 : vector<32x1xf32>
    %148 = vector.broadcast %147 : vector<32x1xf32> to vector<32x128xf32>
    %149 = arith.subf %139, %148 : vector<32x128xf32>
    %150 = arith.mulf %149, %149 : vector<32x128xf32>
    %cst_57 = arith.constant dense<0.000000e+00> : vector<32xf32>
    %151 = vector.multi_reduction <add>, %150, %cst_57 [1] : vector<32x128xf32> to vector<32xf32>
    %152 = vector.shape_cast %151 : vector<32xf32> to vector<32x1xf32>
    %cst_58 = arith.constant 1.280000e+02 : f32
    %153 = vector.broadcast %cst_58 : f32 to vector<32x1xf32>
    %154 = arith.divf %152, %153 : vector<32x1xf32>
    %155 = vector.broadcast %147 : vector<32x1xf32> to vector<32x128xf32>
    %156 = arith.subf %139, %155 : vector<32x128xf32>
    %cst_59 = arith.constant 9.99999996E-13 : f32
    %157 = vector.broadcast %cst_59 : f32 to vector<32x1xf32>
    %158 = arith.addf %154, %157 : vector<32x1xf32>
    %159 = math.rsqrt %158 : vector<32x1xf32>
    %160 = vector.broadcast %159 : vector<32x1xf32> to vector<32x128xf32>
    %161 = arith.mulf %156, %160 : vector<32x128xf32>
    %162 = vector.broadcast %141 : vector<1x128xf32> to vector<32x128xf32>
    %163 = arith.mulf %161, %162 : vector<32x128xf32>
    %164 = vector.broadcast %143 : vector<1x128xf32> to vector<32x128xf32>
    %165 = arith.addf %163, %164 : vector<32x128xf32>
    %166 = arith.truncf %165 : vector<32x128xf32> to vector<32x128xbf16>
    %c1 = arith.constant 1 : index
    %c0_60 = arith.constant 0 : index
    %c0_61 = arith.constant 0 : index
    %167 = vector.load %arg2[%c1, %c0_60, %c0_61] : memref<2x128x384xbf16, #tpu.memory_space<vmem>>, vector<1x128x384xbf16>
    %168 = vector.shape_cast %167 : vector<1x128x384xbf16> to vector<128x384xbf16>
    %cst_62 = arith.constant dense<0.000000e+00> : vector<32x384xf32>
    %169 = tpu.matmul %166, %168, %cst_62 {dimension_numbers = #tpu.dot_dimension_numbers<[1], [0], [0], [1], [0, 0, 1, 1], [], []>} : vector<32x128xbf16>, vector<128x384xbf16>, vector<32x384xf32> -> vector<32x384xf32>
    %c1_63 = arith.constant 1 : index
    %c0_64 = arith.constant 0 : index
    %c0_65 = arith.constant 0 : index
    %170 = vector.load %arg3[%c1_63, %c0_64, %c0_65] : memref<2x1x384xf32, #tpu.memory_space<vmem>>, vector<1x1x384xf32>
    %171 = vector.shape_cast %170 : vector<1x1x384xf32> to vector<1x384xf32>
    %172 = vector.broadcast %171 : vector<1x384xf32> to vector<32x384xf32>
    %173 = arith.addf %169, %172 : vector<32x384xf32>
    %174 = vector.extract_strided_slice %173 {offsets = [0, 0], sizes = [32, 128], strides = [1, 1]} : vector<32x384xf32> to vector<32x128xf32>
    %175 = vector.shape_cast %174 : vector<32x128xf32> to vector<2x16x128xf32>
    %176 = vector.extract_strided_slice %175 {offsets = [0, 0, 0], sizes = [2, 16, 32], strides = [1, 1, 1]} : vector<2x16x128xf32> to vector<2x16x32xf32>
    %177 = vector.extract_strided_slice %175 {offsets = [0, 0, 32], sizes = [2, 16, 32], strides = [1, 1, 1]} : vector<2x16x128xf32> to vector<2x16x32xf32>
    %178 = vector.extract_strided_slice %175 {offsets = [0, 0, 64], sizes = [2, 16, 32], strides = [1, 1, 1]} : vector<2x16x128xf32> to vector<2x16x32xf32>
    %179 = vector.extract_strided_slice %175 {offsets = [0, 0, 96], sizes = [2, 16, 32], strides = [1, 1, 1]} : vector<2x16x128xf32> to vector<2x16x32xf32>
    %180 = vector.shape_cast %176 : vector<2x16x32xf32> to vector<2x1x16x32xf32>
    %181 = vector.shape_cast %177 : vector<2x16x32xf32> to vector<2x1x16x32xf32>
    %182 = vector.shape_cast %178 : vector<2x16x32xf32> to vector<2x1x16x32xf32>
    %183 = vector.shape_cast %179 : vector<2x16x32xf32> to vector<2x1x16x32xf32>
    %184 = tpu.concatenate %180, %181, %182, %183 in 1 : vector<2x1x16x32xf32>, vector<2x1x16x32xf32>, vector<2x1x16x32xf32>, vector<2x1x16x32xf32> -> vector<2x4x16x32xf32>
    %185 = vector.shape_cast %184 : vector<2x4x16x32xf32> to vector<8x16x32xf32>
    %186 = arith.truncf %185 : vector<8x16x32xf32> to vector<8x16x32xbf16>
    %187 = vector.extract_strided_slice %173 {offsets = [0, 128], sizes = [32, 128], strides = [1, 1]} : vector<32x384xf32> to vector<32x128xf32>
    %188 = vector.shape_cast %187 : vector<32x128xf32> to vector<2x16x128xf32>
    %189 = vector.extract_strided_slice %188 {offsets = [0, 0, 0], sizes = [2, 16, 32], strides = [1, 1, 1]} : vector<2x16x128xf32> to vector<2x16x32xf32>
    %190 = vector.extract_strided_slice %188 {offsets = [0, 0, 32], sizes = [2, 16, 32], strides = [1, 1, 1]} : vector<2x16x128xf32> to vector<2x16x32xf32>
    %191 = vector.extract_strided_slice %188 {offsets = [0, 0, 64], sizes = [2, 16, 32], strides = [1, 1, 1]} : vector<2x16x128xf32> to vector<2x16x32xf32>
    %192 = vector.extract_strided_slice %188 {offsets = [0, 0, 96], sizes = [2, 16, 32], strides = [1, 1, 1]} : vector<2x16x128xf32> to vector<2x16x32xf32>
    %193 = vector.shape_cast %189 : vector<2x16x32xf32> to vector<2x1x16x32xf32>
    %194 = vector.shape_cast %190 : vector<2x16x32xf32> to vector<2x1x16x32xf32>
    %195 = vector.shape_cast %191 : vector<2x16x32xf32> to vector<2x1x16x32xf32>
    %196 = vector.shape_cast %192 : vector<2x16x32xf32> to vector<2x1x16x32xf32>
    %197 = tpu.concatenate %193, %194, %195, %196 in 1 : vector<2x1x16x32xf32>, vector<2x1x16x32xf32>, vector<2x1x16x32xf32>, vector<2x1x16x32xf32> -> vector<2x4x16x32xf32>
    %198 = vector.shape_cast %197 : vector<2x4x16x32xf32> to vector<8x16x32xf32>
    %199 = arith.truncf %198 : vector<8x16x32xf32> to vector<8x16x32xbf16>
    %200 = vector.extract_strided_slice %173 {offsets = [0, 256], sizes = [32, 128], strides = [1, 1]} : vector<32x384xf32> to vector<32x128xf32>
    %201 = vector.shape_cast %200 : vector<32x128xf32> to vector<2x16x128xf32>
    %202 = vector.extract_strided_slice %201 {offsets = [0, 0, 0], sizes = [2, 16, 32], strides = [1, 1, 1]} : vector<2x16x128xf32> to vector<2x16x32xf32>
    %203 = vector.extract_strided_slice %201 {offsets = [0, 0, 32], sizes = [2, 16, 32], strides = [1, 1, 1]} : vector<2x16x128xf32> to vector<2x16x32xf32>
    %204 = vector.extract_strided_slice %201 {offsets = [0, 0, 64], sizes = [2, 16, 32], strides = [1, 1, 1]} : vector<2x16x128xf32> to vector<2x16x32xf32>
    %205 = vector.extract_strided_slice %201 {offsets = [0, 0, 96], sizes = [2, 16, 32], strides = [1, 1, 1]} : vector<2x16x128xf32> to vector<2x16x32xf32>
    %206 = vector.shape_cast %202 : vector<2x16x32xf32> to vector<2x1x16x32xf32>
    %207 = vector.shape_cast %203 : vector<2x16x32xf32> to vector<2x1x16x32xf32>
    %208 = vector.shape_cast %204 : vector<2x16x32xf32> to vector<2x1x16x32xf32>
    %209 = vector.shape_cast %205 : vector<2x16x32xf32> to vector<2x1x16x32xf32>
    %210 = tpu.concatenate %206, %207, %208, %209 in 1 : vector<2x1x16x32xf32>, vector<2x1x16x32xf32>, vector<2x1x16x32xf32>, vector<2x1x16x32xf32> -> vector<2x4x16x32xf32>
    %211 = vector.shape_cast %210 : vector<2x4x16x32xf32> to vector<8x16x32xf32>
    %212 = arith.truncf %211 : vector<8x16x32xf32> to vector<8x16x32xbf16>
    "tpu.trace_start"() <{level = 10 : i32, message = "bqd,bkd->bqk"}> : () -> ()
    %cst_66 = arith.constant dense<0.000000e+00> : vector<8x16x16xf32>
    %213 = tpu.matmul %186, %199, %cst_66 {dimension_numbers = #tpu.dot_dimension_numbers<[2], [2], [1], [1], [0, 0, 0, 1, 1, 1], [0], [0]>} : vector<8x16x32xbf16>, vector<8x16x32xbf16>, vector<8x16x16xf32> -> vector<8x16x16xf32>
    "tpu.trace_stop"() : () -> ()
    %cst_67 = arith.constant 0.176776692 : f32
    %214 = vector.broadcast %cst_67 : f32 to vector<8x16x16xf32>
    %215 = arith.mulf %213, %214 : vector<8x16x16xf32>
    %cst_68 = arith.constant dense<0xFF800000> : vector<8x16xf32>
    %216 = vector.multi_reduction <maximumf>, %215, %cst_68 [2] : vector<8x16x16xf32> to vector<8x16xf32>
    %217 = vector.shape_cast %216 : vector<8x16xf32> to vector<8x16x1xf32>
    %218 = vector.broadcast %217 : vector<8x16x1xf32> to vector<8x16x16xf32>
    %219 = arith.subf %215, %218 : vector<8x16x16xf32>
    %220 = math.exp %219 : vector<8x16x16xf32>
    %cst_69 = arith.constant dense<0.000000e+00> : vector<8x16xf32>
    %221 = vector.multi_reduction <add>, %220, %cst_69 [2] : vector<8x16x16xf32> to vector<8x16xf32>
    %222 = vector.shape_cast %221 : vector<8x16xf32> to vector<8x16x1xf32>
    %223 = tpu.reciprocal %222 {approx = true} : vector<8x16x1xf32> -> vector<8x16x1xf32>
    %224 = vector.broadcast %223 : vector<8x16x1xf32> to vector<8x16x16xf32>
    %225 = arith.mulf %220, %224 : vector<8x16x16xf32>
    %226 = arith.truncf %225 : vector<8x16x16xf32> to vector<8x16x16xbf16>
    "tpu.trace_start"() <{level = 10 : i32, message = "bqk,bkd->bqd"}> : () -> ()
    %cst_70 = arith.constant dense<0.000000e+00> : vector<8x16x32xf32>
    %227 = tpu.matmul %226, %212, %cst_70 {dimension_numbers = #tpu.dot_dimension_numbers<[2], [1], [1], [2], [0, 0, 0, 1, 1, 2], [0], [0]>} : vector<8x16x16xbf16>, vector<8x16x32xbf16>, vector<8x16x32xf32> -> vector<8x16x32xf32>
    "tpu.trace_stop"() : () -> ()
    %228 = vector.shape_cast %227 : vector<8x16x32xf32> to vector<2x4x16x32xf32>
    %229 = vector.extract_strided_slice %228 {offsets = [0, 0, 0, 0], sizes = [2, 1, 16, 32], strides = [1, 1, 1, 1]} : vector<2x4x16x32xf32> to vector<2x1x16x32xf32>
    %230 = vector.shape_cast %229 : vector<2x1x16x32xf32> to vector<2x16x32xf32>
    %231 = vector.extract_strided_slice %228 {offsets = [0, 1, 0, 0], sizes = [2, 1, 16, 32], strides = [1, 1, 1, 1]} : vector<2x4x16x32xf32> to vector<2x1x16x32xf32>
    %232 = vector.shape_cast %231 : vector<2x1x16x32xf32> to vector<2x16x32xf32>
    %233 = vector.extract_strided_slice %228 {offsets = [0, 2, 0, 0], sizes = [2, 1, 16, 32], strides = [1, 1, 1, 1]} : vector<2x4x16x32xf32> to vector<2x1x16x32xf32>
    %234 = vector.shape_cast %233 : vector<2x1x16x32xf32> to vector<2x16x32xf32>
    %235 = vector.extract_strided_slice %228 {offsets = [0, 3, 0, 0], sizes = [2, 1, 16, 32], strides = [1, 1, 1, 1]} : vector<2x4x16x32xf32> to vector<2x1x16x32xf32>
    %236 = vector.shape_cast %235 : vector<2x1x16x32xf32> to vector<2x16x32xf32>
    %237 = tpu.concatenate %230, %232, %234, %236 in 2 : vector<2x16x32xf32>, vector<2x16x32xf32>, vector<2x16x32xf32>, vector<2x16x32xf32> -> vector<2x16x128xf32>
    %238 = vector.shape_cast %237 : vector<2x16x128xf32> to vector<32x128xf32>
    %239 = arith.truncf %238 : vector<32x128xf32> to vector<32x128xbf16>
    %c1_71 = arith.constant 1 : index
    %c0_72 = arith.constant 0 : index
    %c0_73 = arith.constant 0 : index
    %240 = vector.load %arg4[%c1_71, %c0_72, %c0_73] : memref<2x128x128xbf16, #tpu.memory_space<vmem>>, vector<1x128x128xbf16>
    %241 = vector.shape_cast %240 : vector<1x128x128xbf16> to vector<128x128xbf16>
    %cst_74 = arith.constant dense<0.000000e+00> : vector<32x128xf32>
    %242 = tpu.matmul %239, %241, %cst_74 {dimension_numbers = #tpu.dot_dimension_numbers<[1], [0], [0], [1], [0, 0, 1, 1], [], []>} : vector<32x128xbf16>, vector<128x128xbf16>, vector<32x128xf32> -> vector<32x128xf32>
    %c1_75 = arith.constant 1 : index
    %c0_76 = arith.constant 0 : index
    %c0_77 = arith.constant 0 : index
    %243 = vector.load %arg5[%c1_75, %c0_76, %c0_77] : memref<2x1x128xf32, #tpu.memory_space<vmem>>, vector<1x1x128xf32>
    %244 = vector.shape_cast %243 : vector<1x1x128xf32> to vector<1x128xf32>
    %245 = vector.broadcast %244 : vector<1x128xf32> to vector<32x128xf32>
    %246 = arith.addf %242, %245 : vector<32x128xf32>
    %247 = arith.addf %165, %246 : vector<32x128xf32>
    %c1_78 = arith.constant 1 : index
    %c0_79 = arith.constant 0 : index
    %c0_80 = arith.constant 0 : index
    %248 = vector.load %arg6[%c1_78, %c0_79, %c0_80] : memref<2x1x128xf32, #tpu.memory_space<vmem>>, vector<1x1x128xf32>
    %249 = vector.shape_cast %248 : vector<1x1x128xf32> to vector<1x128xf32>
    %c1_81 = arith.constant 1 : index
    %c0_82 = arith.constant 0 : index
    %c0_83 = arith.constant 0 : index
    %250 = vector.load %arg7[%c1_81, %c0_82, %c0_83] : memref<2x1x128xf32, #tpu.memory_space<vmem>>, vector<1x1x128xf32>
    %251 = vector.shape_cast %250 : vector<1x1x128xf32> to vector<1x128xf32>
    %cst_84 = arith.constant dense<0.000000e+00> : vector<32xf32>
    %252 = vector.multi_reduction <add>, %247, %cst_84 [1] : vector<32x128xf32> to vector<32xf32>
    %253 = vector.shape_cast %252 : vector<32xf32> to vector<32x1xf32>
    %cst_85 = arith.constant 1.280000e+02 : f32
    %254 = vector.broadcast %cst_85 : f32 to vector<32x1xf32>
    %255 = arith.divf %253, %254 : vector<32x1xf32>
    %256 = vector.broadcast %255 : vector<32x1xf32> to vector<32x128xf32>
    %257 = arith.subf %247, %256 : vector<32x128xf32>
    %258 = arith.mulf %257, %257 : vector<32x128xf32>
    %cst_86 = arith.constant dense<0.000000e+00> : vector<32xf32>
    %259 = vector.multi_reduction <add>, %258, %cst_86 [1] : vector<32x128xf32> to vector<32xf32>
    %260 = vector.shape_cast %259 : vector<32xf32> to vector<32x1xf32>
    %cst_87 = arith.constant 1.280000e+02 : f32
    %261 = vector.broadcast %cst_87 : f32 to vector<32x1xf32>
    %262 = arith.divf %260, %261 : vector<32x1xf32>
    %263 = vector.broadcast %255 : vector<32x1xf32> to vector<32x128xf32>
    %264 = arith.subf %247, %263 : vector<32x128xf32>
    %cst_88 = arith.constant 9.99999996E-13 : f32
    %265 = vector.broadcast %cst_88 : f32 to vector<32x1xf32>
    %266 = arith.addf %262, %265 : vector<32x1xf32>
    %267 = math.rsqrt %266 : vector<32x1xf32>
    %268 = vector.broadcast %267 : vector<32x1xf32> to vector<32x128xf32>
    %269 = arith.mulf %264, %268 : vector<32x128xf32>
    %270 = vector.broadcast %249 : vector<1x128xf32> to vector<32x128xf32>
    %271 = arith.mulf %269, %270 : vector<32x128xf32>
    %272 = vector.broadcast %251 : vector<1x128xf32> to vector<32x128xf32>
    %273 = arith.addf %271, %272 : vector<32x128xf32>
    %274 = arith.truncf %273 : vector<32x128xf32> to vector<32x128xbf16>
    %c1_89 = arith.constant 1 : index
    %c0_90 = arith.constant 0 : index
    %c0_91 = arith.constant 0 : index
    %275 = vector.load %arg8[%c1_89, %c0_90, %c0_91] : memref<2x128x256xbf16, #tpu.memory_space<vmem>>, vector<1x128x256xbf16>
    %276 = vector.shape_cast %275 : vector<1x128x256xbf16> to vector<128x256xbf16>
    %cst_92 = arith.constant dense<0.000000e+00> : vector<32x256xf32>
    %277 = tpu.matmul %274, %276, %cst_92 {dimension_numbers = #tpu.dot_dimension_numbers<[1], [0], [0], [1], [0, 0, 1, 1], [], []>} : vector<32x128xbf16>, vector<128x256xbf16>, vector<32x256xf32> -> vector<32x256xf32>
    %c1_93 = arith.constant 1 : index
    %c0_94 = arith.constant 0 : index
    %c0_95 = arith.constant 0 : index
    %278 = vector.load %arg9[%c1_93, %c0_94, %c0_95] : memref<2x1x256xf32, #tpu.memory_space<vmem>>, vector<1x1x256xf32>
    %279 = vector.shape_cast %278 : vector<1x1x256xf32> to vector<1x256xf32>
    %280 = vector.broadcast %279 : vector<1x256xf32> to vector<32x256xf32>
    %281 = arith.addf %277, %280 : vector<32x256xf32>
    %cst_96 = arith.constant 5.000000e-01 : f32
    %282 = vector.broadcast %cst_96 : f32 to vector<32x256xf32>
    %283 = arith.mulf %282, %281 : vector<32x256xf32>
    %284 = arith.mulf %281, %281 : vector<32x256xf32>
    %285 = arith.mulf %284, %281 : vector<32x256xf32>
    %cst_97 = arith.constant 4.471500e-02 : f32
    %286 = vector.broadcast %cst_97 : f32 to vector<32x256xf32>
    %287 = arith.mulf %286, %285 : vector<32x256xf32>
    %288 = arith.addf %281, %287 : vector<32x256xf32>
    %cst_98 = arith.constant 0.797884583 : f32
    %289 = vector.broadcast %cst_98 : f32 to vector<32x256xf32>
    %290 = arith.mulf %289, %288 : vector<32x256xf32>
    %291 = math.tanh %290 : vector<32x256xf32>
    %cst_99 = arith.constant 1.000000e+00 : f32
    %292 = vector.broadcast %cst_99 : f32 to vector<32x256xf32>
    %293 = arith.addf %292, %291 : vector<32x256xf32>
    %294 = arith.mulf %283, %293 : vector<32x256xf32>
    %295 = arith.truncf %294 : vector<32x256xf32> to vector<32x256xbf16>
    %c1_100 = arith.constant 1 : index
    %c0_101 = arith.constant 0 : index
    %c0_102 = arith.constant 0 : index
    %296 = vector.load %arg10[%c1_100, %c0_101, %c0_102] : memref<2x256x128xbf16, #tpu.memory_space<vmem>>, vector<1x256x128xbf16>
    %297 = vector.shape_cast %296 : vector<1x256x128xbf16> to vector<256x128xbf16>
    %cst_103 = arith.constant dense<0.000000e+00> : vector<32x128xf32>
    %298 = tpu.matmul %295, %297, %cst_103 {dimension_numbers = #tpu.dot_dimension_numbers<[1], [0], [0], [1], [0, 0, 1, 1], [], []>} : vector<32x256xbf16>, vector<256x128xbf16>, vector<32x128xf32> -> vector<32x128xf32>
    %c1_104 = arith.constant 1 : index
    %c0_105 = arith.constant 0 : index
    %c0_106 = arith.constant 0 : index
    %299 = vector.load %arg11[%c1_104, %c0_105, %c0_106] : memref<2x1x128xf32, #tpu.memory_space<vmem>>, vector<1x1x128xf32>
    %300 = vector.shape_cast %299 : vector<1x1x128xf32> to vector<1x128xf32>
    %301 = vector.broadcast %300 : vector<1x128xf32> to vector<32x128xf32>
    %302 = arith.addf %298, %301 : vector<32x128xf32>
    %303 = arith.addf %273, %302 : vector<32x128xf32>
    %c1_107 = arith.constant 1 : index
    %c0_108 = arith.constant 0 : index
    %c0_109 = arith.constant 0 : index
    %304 = vector.load %arg12[%c1_107, %c0_108, %c0_109] : memref<2x1x128xf32, #tpu.memory_space<vmem>>, vector<1x1x128xf32>
    %305 = vector.shape_cast %304 : vector<1x1x128xf32> to vector<1x128xf32>
    %c1_110 = arith.constant 1 : index
    %c0_111 = arith.constant 0 : index
    %c0_112 = arith.constant 0 : index
    %306 = vector.load %arg13[%c1_110, %c0_111, %c0_112] : memref<2x1x128xf32, #tpu.memory_space<vmem>>, vector<1x1x128xf32>
    %307 = vector.shape_cast %306 : vector<1x1x128xf32> to vector<1x128xf32>
    %cst_113 = arith.constant dense<0.000000e+00> : vector<32xf32>
    %308 = vector.multi_reduction <add>, %303, %cst_113 [1] : vector<32x128xf32> to vector<32xf32>
    %309 = vector.shape_cast %308 : vector<32xf32> to vector<32x1xf32>
    %cst_114 = arith.constant 1.280000e+02 : f32
    %310 = vector.broadcast %cst_114 : f32 to vector<32x1xf32>
    %311 = arith.divf %309, %310 : vector<32x1xf32>
    %312 = vector.broadcast %311 : vector<32x1xf32> to vector<32x128xf32>
    %313 = arith.subf %303, %312 : vector<32x128xf32>
    %314 = arith.mulf %313, %313 : vector<32x128xf32>
    %cst_115 = arith.constant dense<0.000000e+00> : vector<32xf32>
    %315 = vector.multi_reduction <add>, %314, %cst_115 [1] : vector<32x128xf32> to vector<32xf32>
    %316 = vector.shape_cast %315 : vector<32xf32> to vector<32x1xf32>
    %cst_116 = arith.constant 1.280000e+02 : f32
    %317 = vector.broadcast %cst_116 : f32 to vector<32x1xf32>
    %318 = arith.divf %316, %317 : vector<32x1xf32>
    %319 = vector.broadcast %311 : vector<32x1xf32> to vector<32x128xf32>
    %320 = arith.subf %303, %319 : vector<32x128xf32>
    %cst_117 = arith.constant 9.99999996E-13 : f32
    %321 = vector.broadcast %cst_117 : f32 to vector<32x1xf32>
    %322 = arith.addf %318, %321 : vector<32x1xf32>
    %323 = math.rsqrt %322 : vector<32x1xf32>
    %324 = vector.broadcast %323 : vector<32x1xf32> to vector<32x128xf32>
    %325 = arith.mulf %320, %324 : vector<32x128xf32>
    %326 = vector.broadcast %305 : vector<1x128xf32> to vector<32x128xf32>
    %327 = arith.mulf %325, %326 : vector<32x128xf32>
    %328 = vector.broadcast %307 : vector<1x128xf32> to vector<32x128xf32>
    %329 = arith.addf %327, %328 : vector<32x128xf32>
    %330 = arith.truncf %329 : vector<32x128xf32> to vector<32x128xbf16>
    %c0_118 = arith.constant 0 : index
    %c0_119 = arith.constant 0 : index
    %331 = vector.load %arg14[%c0_118, %c0_119] : memref<128x128xbf16, #tpu.memory_space<vmem>>, vector<128x128xbf16>
    %cst_120 = arith.constant dense<0.000000e+00> : vector<32x128xf32>
    %332 = tpu.matmul %330, %331, %cst_120 {dimension_numbers = #tpu.dot_dimension_numbers<[1], [0], [0], [1], [0, 0, 1, 1], [], []>} : vector<32x128xbf16>, vector<128x128xbf16>, vector<32x128xf32> -> vector<32x128xf32>
    %c0_121 = arith.constant 0 : index
    %c0_122 = arith.constant 0 : index
    %333 = vector.load %arg15[%c0_121, %c0_122] : memref<1x128xf32, #tpu.memory_space<vmem>>, vector<1x128xf32>
    %334 = vector.broadcast %333 : vector<1x128xf32> to vector<32x128xf32>
    %335 = arith.addf %332, %334 : vector<32x128xf32>
    %cst_123 = arith.constant 5.000000e-01 : f32
    %336 = vector.broadcast %cst_123 : f32 to vector<32x128xf32>
    %337 = arith.mulf %336, %335 : vector<32x128xf32>
    %338 = arith.mulf %335, %335 : vector<32x128xf32>
    %339 = arith.mulf %338, %335 : vector<32x128xf32>
    %cst_124 = arith.constant 4.471500e-02 : f32
    %340 = vector.broadcast %cst_124 : f32 to vector<32x128xf32>
    %341 = arith.mulf %340, %339 : vector<32x128xf32>
    %342 = arith.addf %335, %341 : vector<32x128xf32>
    %cst_125 = arith.constant 0.797884583 : f32
    %343 = vector.broadcast %cst_125 : f32 to vector<32x128xf32>
    %344 = arith.mulf %343, %342 : vector<32x128xf32>
    %345 = math.tanh %344 : vector<32x128xf32>
    %cst_126 = arith.constant 1.000000e+00 : f32
    %346 = vector.broadcast %cst_126 : f32 to vector<32x128xf32>
    %347 = arith.addf %346, %345 : vector<32x128xf32>
    %348 = arith.mulf %337, %347 : vector<32x128xf32>
    %c0_127 = arith.constant 0 : index
    %c0_128 = arith.constant 0 : index
    %349 = vector.load %arg16[%c0_127, %c0_128] : memref<1x128xf32, #tpu.memory_space<vmem>>, vector<1x128xf32>
    %c0_129 = arith.constant 0 : index
    %c0_130 = arith.constant 0 : index
    %350 = vector.load %arg17[%c0_129, %c0_130] : memref<1x128xf32, #tpu.memory_space<vmem>>, vector<1x128xf32>
    %cst_131 = arith.constant dense<0.000000e+00> : vector<32xf32>
    %351 = vector.multi_reduction <add>, %348, %cst_131 [1] : vector<32x128xf32> to vector<32xf32>
    %352 = vector.shape_cast %351 : vector<32xf32> to vector<32x1xf32>
    %cst_132 = arith.constant 1.280000e+02 : f32
    %353 = vector.broadcast %cst_132 : f32 to vector<32x1xf32>
    %354 = arith.divf %352, %353 : vector<32x1xf32>
    %355 = vector.broadcast %354 : vector<32x1xf32> to vector<32x128xf32>
    %356 = arith.subf %348, %355 : vector<32x128xf32>
    %357 = arith.mulf %356, %356 : vector<32x128xf32>
    %cst_133 = arith.constant dense<0.000000e+00> : vector<32xf32>
    %358 = vector.multi_reduction <add>, %357, %cst_133 [1] : vector<32x128xf32> to vector<32xf32>
    %359 = vector.shape_cast %358 : vector<32xf32> to vector<32x1xf32>
    %cst_134 = arith.constant 1.280000e+02 : f32
    %360 = vector.broadcast %cst_134 : f32 to vector<32x1xf32>
    %361 = arith.divf %359, %360 : vector<32x1xf32>
    %362 = vector.broadcast %354 : vector<32x1xf32> to vector<32x128xf32>
    %363 = arith.subf %348, %362 : vector<32x128xf32>
    %cst_135 = arith.constant 9.99999996E-13 : f32
    %364 = vector.broadcast %cst_135 : f32 to vector<32x1xf32>
    %365 = arith.addf %361, %364 : vector<32x1xf32>
    %366 = math.rsqrt %365 : vector<32x1xf32>
    %367 = vector.broadcast %366 : vector<32x1xf32> to vector<32x128xf32>
    %368 = arith.mulf %363, %367 : vector<32x128xf32>
    %369 = vector.broadcast %349 : vector<1x128xf32> to vector<32x128xf32>
    %370 = arith.mulf %368, %369 : vector<32x128xf32>
    %371 = vector.broadcast %350 : vector<1x128xf32> to vector<32x128xf32>
    %372 = arith.addf %370, %371 : vector<32x128xf32>
    %373 = arith.truncf %372 : vector<32x128xf32> to vector<32x128xbf16>
    %c0_136 = arith.constant 0 : index
    %c0_137 = arith.constant 0 : index
    %374 = vector.load %arg18[%c0_136, %c0_137] : memref<128x512xbf16, #tpu.memory_space<vmem>>, vector<128x512xbf16>
    %cst_138 = arith.constant dense<0.000000e+00> : vector<32x512xf32>
    %375 = tpu.matmul %373, %374, %cst_138 {dimension_numbers = #tpu.dot_dimension_numbers<[1], [0], [0], [1], [0, 0, 1, 1], [], []>} : vector<32x128xbf16>, vector<128x512xbf16>, vector<32x512xf32> -> vector<32x512xf32>
    %c0_139 = arith.constant 0 : index
    %c0_140 = arith.constant 0 : index
    %376 = vector.load %arg19[%c0_139, %c0_140] : memref<1x512xf32, #tpu.memory_space<vmem>>, vector<1x512xf32>
    %377 = vector.broadcast %376 : vector<1x512xf32> to vector<32x512xf32>
    %378 = arith.addf %375, %377 : vector<32x512xf32>
    %379 = vector.shape_cast %378 : vector<32x512xf32> to vector<2x16x512xf32>
    %c0_141 = arith.constant 0 : index
    %c0_142 = arith.constant 0 : index
    %c0_143 = arith.constant 0 : index
    %380 = vector.load %arg20[%c0_141, %c0_142, %c0_143] : memref<2x16x512xf32, #tpu.memory_space<vmem>>, vector<2x16x512xf32>
    tpu.vector_store %arg20[%c0_141, %c0_142, %c0_143], %379 {strides = array<i32>} : memref<2x16x512xf32, #tpu.memory_space<vmem>>, vector<2x16x512xf32>,
    return
  }
  func.func @transform_0(%arg0: i32) -> (i32, i32, i32) {
    %c0_i32 = arith.constant 0 : i32
    %c0_i32_0 = arith.constant 0 : i32
    %c0_i32_1 = arith.constant 0 : i32
    return %arg0, %c0_i32, %c0_i32_0 : i32, i32, i32
  }
  func.func @transform_1(%arg0: i32) -> (i32, i32, i32) {
    %c0_i32 = arith.constant 0 : i32
    %c0_i32_0 = arith.constant 0 : i32
    %c0_i32_1 = arith.constant 0 : i32
    %c0_i32_2 = arith.constant 0 : i32
    return %c0_i32, %c0_i32_0, %c0_i32_1 : i32, i32, i32
  }
  func.func @transform_2(%arg0: i32) -> (i32, i32, i32) {
    %c0_i32 = arith.constant 0 : i32
    %c0_i32_0 = arith.constant 0 : i32
    %c0_i32_1 = arith.constant 0 : i32
    %c0_i32_2 = arith.constant 0 : i32
    return %c0_i32, %c0_i32_0, %c0_i32_1 : i32, i32, i32
  }
  func.func @transform_3(%arg0: i32) -> (i32, i32, i32) {
    %c0_i32 = arith.constant 0 : i32
    %c0_i32_0 = arith.constant 0 : i32
    %c0_i32_1 = arith.constant 0 : i32
    %c0_i32_2 = arith.constant 0 : i32
    return %c0_i32, %c0_i32_0, %c0_i32_1 : i32, i32, i32
  }
  func.func @transform_4(%arg0: i32) -> (i32, i32, i32) {
    %c0_i32 = arith.constant 0 : i32
    %c0_i32_0 = arith.constant 0 : i32
    %c0_i32_1 = arith.constant 0 : i32
    %c0_i32_2 = arith.constant 0 : i32
    return %c0_i32, %c0_i32_0, %c0_i32_1 : i32, i32, i32
  }
  func.func @transform_5(%arg0: i32) -> (i32, i32, i32) {
    %c0_i32 = arith.constant 0 : i32
    %c0_i32_0 = arith.constant 0 : i32
    %c0_i32_1 = arith.constant 0 : i32
    %c0_i32_2 = arith.constant 0 : i32
    return %c0_i32, %c0_i32_0, %c0_i32_1 : i32, i32, i32
  }
  func.func @transform_6(%arg0: i32) -> (i32, i32, i32) {
    %c0_i32 = arith.constant 0 : i32
    %c0_i32_0 = arith.constant 0 : i32
    %c0_i32_1 = arith.constant 0 : i32
    %c0_i32_2 = arith.constant 0 : i32
    return %c0_i32, %c0_i32_0, %c0_i32_1 : i32, i32, i32
  }
  func.func @transform_7(%arg0: i32) -> (i32, i32, i32) {
    %c0_i32 = arith.constant 0 : i32
    %c0_i32_0 = arith.constant 0 : i32
    %c0_i32_1 = arith.constant 0 : i32
    %c0_i32_2 = arith.constant 0 : i32
    return %c0_i32, %c0_i32_0, %c0_i32_1 : i32, i32, i32
  }
  func.func @transform_8(%arg0: i32) -> (i32, i32, i32) {
    %c0_i32 = arith.constant 0 : i32
    %c0_i32_0 = arith.constant 0 : i32
    %c0_i32_1 = arith.constant 0 : i32
    %c0_i32_2 = arith.constant 0 : i32
    return %c0_i32, %c0_i32_0, %c0_i32_1 : i32, i32, i32
  }
  func.func @transform_9(%arg0: i32) -> (i32, i32, i32) {
    %c0_i32 = arith.constant 0 : i32
    %c0_i32_0 = arith.constant 0 : i32
    %c0_i32_1 = arith.constant 0 : i32
    %c0_i32_2 = arith.constant 0 : i32
    return %c0_i32, %c0_i32_0, %c0_i32_1 : i32, i32, i32
  }
  func.func @transform_10(%arg0: i32) -> (i32, i32, i32) {
    %c0_i32 = arith.constant 0 : i32
    %c0_i32_0 = arith.constant 0 : i32
    %c0_i32_1 = arith.constant 0 : i32
    %c0_i32_2 = arith.constant 0 : i32
    return %c0_i32, %c0_i32_0, %c0_i32_1 : i32, i32, i32
  }
  func.func @transform_11(%arg0: i32) -> (i32, i32, i32) {
    %c0_i32 = arith.constant 0 : i32
    %c0_i32_0 = arith.constant 0 : i32
    %c0_i32_1 = arith.constant 0 : i32
    %c0_i32_2 = arith.constant 0 : i32
    return %c0_i32, %c0_i32_0, %c0_i32_1 : i32, i32, i32
  }
  func.func @transform_12(%arg0: i32) -> (i32, i32, i32) {
    %c0_i32 = arith.constant 0 : i32
    %c0_i32_0 = arith.constant 0 : i32
    %c0_i32_1 = arith.constant 0 : i32
    %c0_i32_2 = arith.constant 0 : i32
    return %c0_i32, %c0_i32_0, %c0_i32_1 : i32, i32, i32
  }
  func.func @transform_13(%arg0: i32) -> (i32, i32) {
    %c0_i32 = arith.constant 0 : i32
    %c0_i32_0 = arith.constant 0 : i32
    %c0_i32_1 = arith.constant 0 : i32
    return %c0_i32, %c0_i32_0 : i32, i32
  }
  func.func @transform_14(%arg0: i32) -> (i32, i32) {
    %c0_i32 = arith.constant 0 : i32
    %c0_i32_0 = arith.constant 0 : i32
    %c0_i32_1 = arith.constant 0 : i32
    return %c0_i32, %c0_i32_0 : i32, i32
  }
  func.func @transform_15(%arg0: i32) -> (i32, i32) {
    %c0_i32 = arith.constant 0 : i32
    %c0_i32_0 = arith.constant 0 : i32
    %c0_i32_1 = arith.constant 0 : i32
    return %c0_i32, %c0_i32_0 : i32, i32
  }
  func.func @transform_16(%arg0: i32) -> (i32, i32) {
    %c0_i32 = arith.constant 0 : i32
    %c0_i32_0 = arith.constant 0 : i32
    %c0_i32_1 = arith.constant 0 : i32
    return %c0_i32, %c0_i32_0 : i32, i32
  }
  func.func @transform_17(%arg0: i32) -> (i32, i32) {
    %c0_i32 = arith.constant 0 : i32
    %c0_i32_0 = arith.constant 0 : i32
    %c0_i32_1 = arith.constant 0 : i32
    return %c0_i32, %c0_i32_0 : i32, i32
  }
  func.func @transform_18(%arg0: i32) -> (i32, i32) {
    %c0_i32 = arith.constant 0 : i32
    %c0_i32_0 = arith.constant 0 : i32
    %c0_i32_1 = arith.constant 0 : i32
    return %c0_i32, %c0_i32_0 : i32, i32
  }
  func.func @transform_19(%arg0: i32) -> (i32, i32, i32) {
    %c0_i32 = arith.constant 0 : i32
    %c0_i32_0 = arith.constant 0 : i32
    %c0_i32_1 = arith.constant 0 : i32
    return %arg0, %c0_i32, %c0_i32_0 : i32, i32, i32
  }
}

</mosaic_0001>

<bundles_post_ra>
// kernel: mlm_forward.1
= control target key start
LH: loop header
LB: loop body
LE: loop exit
PB: predicated region body
PF: predicated region fallthrough
CT: control target
= control target key end

     0   :  { %s6980_s0 = inlined_call_operand.vmem [shape: f32[2,16,128], index: 0, kind: input, shape index: {}]   ;;  %s6981_s1 = inlined_call_operand.hbm [shape: bf16[2,128,384], index: 1, kind: input, shape index: {}]   ;;  %s6982_s2 = inlined_call_operand.vmem [shape: f32[2,1,384], index: 2, kind: input, shape index: {}]   ;;  %s6983_s3 = inlined_call_operand.vmem [shape: bf16[2,128,128], index: 3, kind: input, shape index: {}]   ;;  %s6984_s4 = inlined_call_operand.vmem [shape: f32[2,1,128], index: 4, kind: input, shape index: {}]   ;;  %s6985_s5 = inlined_call_operand.vmem [shape: f32[2,1,128], index: 5, kind: input, shape index: {}]   ;;  %s6986_s6 = inlined_call_operand.vmem [shape: f32[2,1,128], index: 6, kind: input, shape index: {}]   ;;  %s6987_s7 = inlined_call_operand.vmem [shape: bf16[2,128,256], index: 7, kind: input, shape index: {}]   ;;  %s6988_s8 = inlined_call_operand.vmem [shape: f32[2,1,256], index: 8, kind: input, shape index: {}]   ;;  %s6989_s9 = inlined_call_operand.hbm [shape: bf16[2,256,128], index: 9, kind: input, shape index: {}]   ;;  %s6990_s10 = inlined_call_operand.vmem [shape: f32[2,1,128], index: 10, kind: input, shape index: {}]   ;;  %s6991_s11 = inlined_call_operand.vmem [shape: f32[2,1,128], index: 11, kind: input, shape index: {}]   ;;  %s6992_s12 = inlined_call_operand.vmem [shape: f32[2,1,128], index: 12, kind: input, shape index: {}]   ;;  %s6993_s13 = inlined_call_operand.hbm [shape: bf16[128,128], index: 13, kind: input, shape index: {}]   ;;  %s6994_s14 = inlined_call_operand.vmem [shape: f32[1,128], index: 14, kind: input, shape index: {}]   ;;  %s6995_s15 = inlined_call_operand.vmem [shape: f32[1,128], index: 15, kind: input, shape index: {}]   ;;  %s6996_s16 = inlined_call_operand.vmem [shape: f32[1,128], index: 16, kind: input, shape index: {}]   ;;  %s6997_s17 = inlined_call_operand.hbm [shape: bf16[128,512], index: 17, kind: input, shape index: {}]   ;;  %s6998_s18 = inlined_call_operand.vmem [shape: f32[1,512], index: 18, kind: input, shape index: {}]   ;;  %s6999_s19 = inlined_call_operand.hbm [shape: f32[2,16,512], index: 19, kind: output, shape index: {}]  }
   0x1   :  { %7003 = sst [smem:[#allocation15_spill]] %s6980_s0 }
   0x2   :  { %7004 = sst [smem:[#allocation16_spill]] %s6981_s1 }
   0x3   :  { %7005 = sst [smem:[#allocation17_spill]] %s6982_s2 }
   0x4   :  { %7006 = sst [smem:[#allocation18_spill]] %s6983_s3 }
   0x5   :  { %7007 = sst [smem:[#allocation19_spill]] %s6999_s19 }
   0x6   :  { %24 = vsyncpa [#allocation3], 0 }
   0x7   :  { %25 = vsyncpa [#allocation6], 0 }
   0x8   :  { %26 = vsyncpa [#allocation9], 0  ;;  %s61_s20 = sshll.u32 %s6989_s9, 4  ;;  %s62_s20 = int_to_ptr.hbm [resolvable:$true] %s61_s20 }
   0x9   :  { %27 = vsyncpa [#allocation4], 0  ;;  %s5824_s21 = smov [#allocation5]   ;;  %s7008_s23 = sld [smem:[#allocation16_spill]] }
   0xa   :  { %s63_s1 = sshll.u32 %s5824_s21, 4  ;;  %s5825_s25 = smov 64   ;;  %s64_s1 = int_to_ptr.vmem [resolvable:$true] %s63_s1 }
   0xb   :  { %s5826_s3 = smov 4   ;;  %s5827_s26 = smov [#allocation2]  }
   0xc   :  { %69 = dma.hbm_to_vmem [thread:$0]  %s62_s20, 4096, %s64_s1, [#allocation6], %s5825_s25, %s5825_s25, %s5826_s3  }
   0xd   :  { %s36_s27 = sshll.u32 %s5827_s26, 4  ;;  %s5828_s28 = smov 192   ;;  %s37_s27 = int_to_ptr.vmem [resolvable:$true] %s36_s27 }
   0xe   :  { %s5829_s9 = smov 12   ;;  %s80_s30 = sshll.u32 %s6993_s13, 4  ;;  %s81_s30 = int_to_ptr.hbm [resolvable:$true] %s80_s30 }
   0xf   :  { %s34_s24 = sshll.u32 %s7008_s23, 4  ;;  %s5830_s21 = smov [#allocation7]   ;;  %s35_s24 = int_to_ptr.hbm [resolvable:$true] %s34_s24 }
  0x10   :  { %42 = dma.hbm_to_vmem [thread:$0]  %s35_s24, 6144, %s37_s27, [#allocation3], %s5828_s28, %s5828_s28, %s5829_s9  }
  0x11   :  { %s82_s22 = sshll.u32 %s5830_s21, 4  ;;  %s99_s19 = sshll.u32 %s6997_s17, 4  ;;  %s83_s22 = int_to_ptr.vmem [resolvable:$true] %s82_s22  ;;  %s100_s19 = int_to_ptr.hbm [resolvable:$true] %s99_s19 }
  0x12   :  { %88 = dma.hbm_to_vmem [thread:$0]  %s81_s30, 1024, %s83_s22, [#allocation6], %s5825_s25, %s5825_s25, %s5826_s3  }
  0x13   :  { %s5831_s20 = smov [#allocation8]   ;;  %s5832_s24 = smov 256  }
  0x14   :  { %s101_s1 = sshll.u32 %s5831_s20, 4  ;;  %s5833_s26 = smov 16   ;;  %s102_s1 = int_to_ptr.vmem [resolvable:$true] %s101_s1 }
  0x15   :  { %107 = dma.hbm_to_vmem [thread:$0]  %s100_s19, 4096, %s102_s1, [#allocation9], %s5832_s24, %s5832_s24, %s5833_s26  }
  0x16   :  { %5816 = dma.done.wait [#allocation3], 6144  }
  0x17   :  { %5817 = vsyncadd [#allocation3], 4294961152 }
  0x18   :  { %5818 = dma.done.wait [#allocation6], 5120  }
  0x19   :  { %5819 = vsyncadd [#allocation6], 4294962176 }
  0x1a   :  { %5820 = dma.done.wait [#allocation9], 4096  }
  0x1b   :  { %5821 = vsyncadd [#allocation9], 4294963200  ;;  %v4386_v0 = vld [vmem:[#allocation2 + $0xa8] sm:$0xf]  ;;  %v5066_v1 = vld [vmem:[#allocation2 + $0xb0] sm:$0xf0] }
  0x1c   :  { %v5065_v2 = vld [vmem:[#allocation2 + $0xac] sm:$0xf]  ;;  %v4387_v3 = vor.u32 %v5066_v1, %v4386_v0  ;;  %v4388_v4 = vld [vmem:[#allocation2 + $0xb4] sm:$0xf0]  ;;  %v4374_v5 = vld [vmem:[#allocation2 + $0x90] sm:$0xf] }
  0x1d   :  { %v5063_v6 = vld [vmem:[#allocation2 + $0x98] sm:$0xf0]  ;;  %v4391_v7 = vor.u32 %v5065_v2, %v4388_v4  ;;  %v5062_v8 = vld [vmem:[#allocation2 + $0x94] sm:$0xf]  ;;  %v4376_v9 = vld [vmem:[#allocation2 + $0x9c] sm:$0xf0] }
  0x1e   :  { %301 = vmatpush.bf16.msra.mxu0 %v4387_v3  ;;  %v4375_v10 = vor.u32 %v5063_v6, %v4374_v5  ;;  %v4379_v11 = vor.u32 %v5062_v8, %v4376_v9  ;;  %v4362_v12 = vld [vmem:[#allocation2 + $0x78] sm:$0xf]  ;;  %v5060_v13 = vld [vmem:[#allocation2 + $0x80] sm:$0xf0]  ;;  %v5059_v14 = vld [vmem:[#allocation2 + $0x7c] sm:$0xf] }
  0x1f   :  { %320 = vmatpush.bf16.msra.mxu1 %v4391_v7  ;;  %v4364_v15 = vld [vmem:[#allocation2 + $0x84] sm:$0xf0]  ;;  %v4363_v16 = vor.u32 %v5060_v13, %v4362_v12  ;;  %v4350_v18 = vld [vmem:[#allocation2 + $0x60] sm:$0xf]  ;;  %v5057_v19 = vld [vmem:[#allocation2 + $0x68] sm:$0xf0] }
  0x20   :  { %v4367_v17 = vor.u32 %v5059_v14, %v4364_v15  ;;  %v5056_v20 = vld [vmem:[#allocation2 + $0x64] sm:$0xf]  ;;  %v4352_v21 = vld [vmem:[#allocation2 + $0x6c] sm:$0xf0]  ;;  %v4338_v22 = vld [vmem:[#allocation2 + $0x48] sm:$0xf]  ;;  %v4351_v23 = vor.u32 %v5057_v19, %v4350_v18 }
  0x21   :  { %v5054_v24 = vld [vmem:[#allocation2 + $0x50] sm:$0xf0]  ;;  %v5053_v25 = vld [vmem:[#allocation2 + $0x4c] sm:$0xf]  ;;  %v4340_v26 = vld [vmem:[#allocation2 + $0x54] sm:$0xf0]  ;;  %v4355_v27 = vor.u32 %v5056_v20, %v4352_v21 }
  0x22   :  { %302 = vmatpush.bf16.msra.mxu0 %v4375_v10  ;;  %v4326_v28 = vld [vmem:[#allocation2 + $0x30] sm:$0xf]  ;;  %v5051_v29 = vld [vmem:[#allocation2 + $0x38] sm:$0xf0]  ;;  %v4339_v30 = vor.u32 %v5054_v24, %v4338_v22  ;;  %v4343_v31 = vor.u32 %v5053_v25, %v4340_v26  ;;  %v5050_v32 = vld [vmem:[#allocation2 + $0x34] sm:$0xf] }
  0x23   :  { %321 = vmatpush.bf16.msra.mxu1 %v4379_v11  ;;  %v4328_v33 = vld [vmem:[#allocation2 + $0x3c] sm:$0xf0]  ;;  %v4327_v34 = vor.u32 %v5051_v29, %v4326_v28  ;;  %v4394_v35 = vld [vmem:[#allocation2 + $0xb0] sm:$0xf]  ;;  %v5067_v36 = vld [vmem:[#allocation2 + $0xb8] sm:$0xf0] }
  0x24   :  { %v4382_v37 = vld [vmem:[#allocation2 + $0x98] sm:$0xf]  ;;  %v4331_v38 = vor.u32 %v5050_v32, %v4328_v33  ;;  %v5048_v40 = vld [vmem:[#allocation2 + $0x20] sm:$0xf0]  ;;  %v4395_v41 = vor.u32 %v5067_v36, %v4394_v35  ;;  %v5047_v43 = vld [vmem:[#allocation2 + $0x1c] sm:$0xf] }
  0x25   :  { %v4314_v39 = vld [vmem:[#allocation2 + $0x18] sm:$0xf]  ;;  %v5064_v42 = vld [vmem:[#allocation2 + $0xa0] sm:$0xf0]  ;;  %v4316_v44 = vld [vmem:[#allocation2 + $0x24] sm:$0xf0] }
  0x26   :  { %303 = vmatpush.bf16.msra.mxu0 %v4363_v16  ;;  %339 = vmatpush.bf16.msra.mxu2 %v4395_v41  ;;  %v4383_v45 = vor.u32 %v5064_v42, %v4382_v37  ;;  %v4315_v46 = vor.u32 %v5048_v40, %v4314_v39  ;;  %v4370_v47 = vld [vmem:[#allocation2 + $0x80] sm:$0xf]  ;;  %v5061_v48 = vld [vmem:[#allocation2 + $0x88] sm:$0xf0]  ;;  %v4319_v49 = vor.u32 %v5047_v43, %v4316_v44  ;;  %v5044_v52 = vld [vmem:[#allocation2 + $0x4] sm:$0xf] }
  0x27   :  { %322 = vmatpush.bf16.msra.mxu1 %v4367_v17  ;;  %v4302_v50 = vld [vmem:[#allocation2] sm:$0xf]  ;;  %v5045_v51 = vld [vmem:[#allocation2 + $0x8] sm:$0xf0]  ;;  %v4304_v53 = vld [vmem:[#allocation2 + $0xc] sm:$0xf0]  ;;  %v4371_v55 = vor.u32 %v5061_v48, %v4370_v47 }
  0x28   :  { %s7009_s19 = sld [smem:[#allocation15_spill]]  ;;  %v4303_v56 = vor.u32 %v5045_v51, %v4302_v50  ;;  %v4358_v58 = vld [vmem:[#allocation2 + $0x68] sm:$0xf]  ;;  %v5058_v59 = vld [vmem:[#allocation2 + $0x70] sm:$0xf0]  ;;  %v4307_v60 = vor.u32 %v5044_v52, %v4304_v53  ;;  %s5834_s2 = smov 32  }
  0x29   :  { %v4359_v62 = vor.u32 %v5058_v59, %v4358_v58  ;;  %v4346_v63 = vld [vmem:[#allocation2 + $0x50] sm:$0xf]  ;;  %v5055_v0 = vld [vmem:[#allocation2 + $0x58] sm:$0xf0]  ;;  %v4334_v2 = vld [vmem:[#allocation2 + $0x38] sm:$0xf] }
  0x2a   :  { %304 = vmatpush.bf16.msra.mxu0 %v4351_v23  ;;  %340 = vmatpush.bf16.msra.mxu2 %v4383_v45  ;;  %v4347_v1 = vor.u32 %v5055_v0, %v4346_v63  ;;  %v5052_v3 = vld [vmem:[#allocation2 + $0x40] sm:$0xf0]  ;;  %v4322_v5 = vld [vmem:[#allocation2 + $0x20] sm:$0xf]  ;;  %v5049_v6 = vld [vmem:[#allocation2 + $0x28] sm:$0xf0] }
  0x2b   :  { %323 = vmatpush.bf16.msra.mxu1 %v4355_v27  ;;  %v4335_v4 = vor.u32 %v5052_v3, %v4334_v2  ;;  %v4323_v8 = vor.u32 %v5049_v6, %v4322_v5  ;;  %v4310_v10 = vld [vmem:[#allocation2 + $0x8] sm:$0xf]  ;;  %v5046_v11 = vld [vmem:[#allocation2 + $0x10] sm:$0xf0]  ;;  %s7010_s22 = sld [smem:[#allocation17_spill]]  ;;  %s5835_s23 = smov 96  }
  0x2c   :  { %v4311_v13 = vor.u32 %v5046_v11, %v4310_v10  ;;  %vm536_vm0 = vcmask 261120   ;;  %vm783_vm1 = vcmask 130048   ;;  %s7011_s24 = sld [smem:[#allocation18_spill]]  ;;  %vm1252_vm2 = vcmask 523264   ;;  %s5838_s9 = smov 512  }
  0x2d   :  { %vm1257_vm3 = vcmask 785408  }
  0x2e   :  { %305 = vmatpush.bf16.msra.mxu0 %v4339_v30  ;;  %v127_v54 = vld [vmem:[%s7009_s19] sm:$0xff]  ;;  %v128_v57 = vld [vmem:[%s7009_s19 + $0x8] sm:$0xff]  ;;  %341 = vmatpush.bf16.msra.mxu2 %v4371_v55  ;;  %v129_v7 = vld [vmem:[%s7009_s19 + $0x10] sm:$0xff] }
  0x2f   :  { %324 = vmatpush.bf16.msra.mxu1 %v4343_v31  ;;  %v131_v61 = vpack.c.bf16 %v128_v57, %v127_v54  ;;  %v130_v9 = vld [vmem:[%s7009_s19 + $0x18] sm:$0xff] }
  0x30   :  { %v132_v12 = vpack.c.bf16 %v130_v9, %v129_v7 }
  0x31   :  { %v5970_v14 = vld [vmem:[%s7010_s22] sm:$0x7] }
  0x32   :  { %306 = vmatpush.bf16.msra.mxu0 %v4327_v34  ;;  %342 = vmatpush.bf16.msra.mxu2 %v4359_v62  ;;  %v168_v17 = vperm.slane %v5970_v14, 1  ;;  %v167_v19 = vperm.slane %v5970_v14, 0 }
  0x33   :  { %325 = vmatpush.bf16.msra.mxu1 %v4331_v38 }
  0x36   :  { %307 = vmatpush.bf16.msra.mxu0 %v4315_v46  ;;  %343 = vmatpush.bf16.msra.mxu2 %v4347_v1 }
  0x37   :  { %326 = vmatpush.bf16.msra.mxu1 %v4319_v49 }
  0x3a   :  { %308 = vmatpush.bf16.msra.mxu0 %v4303_v56  ;;  %344 = vmatpush.bf16.msra.mxu2 %v4335_v4 }
  0x3b   :  { %327 = vmatpush.bf16.msra.mxu1 %v4307_v60  ;;  %v5991_v60 = vperm.slane %v5970_v14, 2 }
  0x3d   :  { %309 = vmatmul.bf16.vlgmr.msra.gmra.mxu0 %v131_v61 }
  0x3e   :  { %328 = vmatmul.bf16.vlgmr.msra.gmra.mxu1 %v131_v61  ;;  %345 = vmatpush.bf16.msra.mxu2 %v4323_v8 }
  0x42   :  { %346 = vmatpush.bf16.msra.mxu2 %v4311_v13 }
  0x45   :  { %347 = vmatmul.bf16.vlgmr.msra.gmra.mxu2 %v131_v61 }
  0x4d   :  { %314 = vmatmul.bf16.gmra.mxu0 %v132_v12 }
  0x4e   :  { %333 = vmatmul.bf16.gmra.mxu1 %v132_v12 }
  0x55   :  { %352 = vmatmul.bf16.gmra.mxu2 %v132_v12 }
  0xba   :  { %v310_v15 = vpop.f32.mrf.mxu0 }
  0xbb   :  { %v329_v16 = vpop.f32.mrf.mxu1  ;;  %v311_v24 = vadd.f32 %v310_v15, %v167_v19 }
  0xbc   :  { %v330_v18 = vadd.f32 %v329_v16, %v168_v17 }
  0xbd   :  { %v398_v30 = vpack.c.bf16 %v311_v24, %v311_v24 }
  0xbe   :  { %v454_v23 = vpack.c.bf16 %v330_v18, %v330_v18 }
  0xbf   :  { %v528_v36 = vunpack.c.l.b16 %v398_v30 }
  0xc0   :  { %v533_v28 = vunpack.c.l.b16 %v454_v23 }
  0xc2   :  { %v312_v20 = vpop.f32.mrf.mxu0 }
  0xc3   :  { %v331_v21 = vpop.f32.mrf.mxu1  ;;  %v313_v25 = vadd.f32 %v312_v20, %v167_v19 }
  0xc4   :  { %v332_v22 = vadd.f32 %v331_v21, %v168_v17 }
  0xc5   :  { %v399_v33 = vpack.c.bf16 %v313_v25, %v313_v25  ;;  %v5252_v38 = vpack.i.bf16 %v313_v25, %v311_v24 }
  0xc6   :  { %v5247_v26 = vpack.i.bf16 %v332_v22, %v330_v18  ;;  %v455_v27 = vpack.c.bf16 %v332_v22, %v332_v22 }
  0xc7   :  { %v529_v39 = vunpack.c.l.b16 %v399_v33 }
  0xc8   :  { %5248 = vrot.lane.b32.xlu2 %v5247_v26, %s5834_s2  ;;  %5238 = vrot.lane.b32.xlu1 %v5247_v26, %s5825_s25  ;;  %v534_v29 = vunpack.c.l.b16 %v455_v27  ;;  %v348_v59 = vpop.f32.mrf.mxu2 }
  0xc9   :  { %5228 = vrot.lane.b32.xlu0 %v5247_v26, %s5835_s23  ;;  %v530_v42 = vpack.c.b16 %v529_v39, %v528_v36  ;;  %v5994_v61 = vadd.f32 %v348_v59, %v5991_v60 }
  0xca   :  { %v315_v31 = vpop.f32.mrf.mxu0  ;;  %v535_v32 = vpack.c.b16 %v534_v29, %v533_v28 }
  0xcb   :  { %v334_v34 = vpop.f32.mrf.mxu1  ;;  %v316_v40 = vadd.f32 %v315_v31, %v167_v19 }
  0xcc   :  { %v541_v35 = vsel %vm536_vm0, %v535_v32, 0  ;;  %v335_v37 = vadd.f32 %v334_v34, %v168_v17 }
  0xcd   :  { %550 = vmatpush.bf16.xpose.msra.mxu3 %v541_v35  ;;  %v406_v51 = vpack.c.bf16 %v316_v40, %v316_v40 }
  0xce   :  { %v462_v43 = vpack.c.bf16 %v335_v37, %v335_v37 }
  0xcf   :  { %v649_v55 = vunpack.c.l.b16 %v406_v51 }
  0xd0   :  { %5253 = vrot.lane.b32.xlu2 %v5252_v38, %s5834_s2  ;;  %5243 = vrot.lane.b32.xlu1 %v5252_v38, %s5825_s25  ;;  %v654_v49 = vunpack.c.l.b16 %v462_v43  ;;  %v350_v62 = vpop.f32.mrf.mxu2 }
  0xd1   :  { %5233 = vrot.lane.b32.xlu0 %v5252_v38, %s5835_s23  ;;  %v5997_v63 = vadd.f32 %v350_v62, %v5991_v60 }
  0xd2   :  { %v317_v41 = vpop.f32.mrf.mxu0 }
  0xd3   :  { %v318_v44 = vadd.f32 %v317_v41, %v167_v19  ;;  %v336_v45 = vpop.f32.mrf.mxu1  ;;  %v6001_v0 = vpack.i.bf16 %v5997_v63, %v5994_v61 }
  0xd4   :  { %v337_v46 = vadd.f32 %v336_v45, %v168_v17  ;;  %4396 = vmatmul.msk.bf16.vlgmr.msra.gmra.mxu3 %vm536_vm0, %v530_v42 }
  0xd5   :  { %v5262_v47 = vpack.i.bf16 %v318_v44, %v316_v40  ;;  %v407_v52 = vpack.c.bf16 %v318_v44, %v318_v44 }
  0xd6   :  { %v463_v48 = vpack.c.bf16 %v337_v46, %v337_v46  ;;  %v5267_v50 = vpack.i.bf16 %v337_v46, %v335_v37 }
  0xd7   :  { %v650_v57 = vunpack.c.l.b16 %v407_v52 }
  0xd8   :  { %5263 = vrot.lane.b32.xlu1 %v5262_v47, %s5835_s23  ;;  %v655_v53 = vunpack.c.l.b16 %v463_v48  ;;  %5268 = vrot.lane.b32.xlu2 %v5267_v50, %s5825_s25  ;;  %v353_v10 = vpop.f32.mrf.mxu2 }
  0xd9   :  { %5258 = vrot.lane.b32.xlu0 %v5267_v50, %s5835_s23  ;;  %v651_v58 = vpack.c.b16 %v650_v57, %v649_v55  ;;  %v6010_v12 = vadd.f32 %v353_v10, %v5991_v60 }
  0xda   :  { %v656_v54 = vpack.c.b16 %v655_v53, %v654_v49 }
  0xdc   :  { %v661_v56 = vsel %vm536_vm0, %v656_v54, 0 }
  0xdd   :  { %670 = vmatpush.bf16.xpose.msrb.mxu2 %v661_v56 }
  0xe0   :  { %5278 = vrot.lane.b32.xlu1 %v5262_v47, %s5825_s25  ;;  %5283 = vrot.lane.b32.xlu2 %v5262_v47, %s5834_s2 }
  0xe1   :  { %5273 = vrot.lane.b32.xlu0 %v5267_v50, %s5834_s2 }
  0xe4   :  { %4400 = vmatmul.msk.bf16.vlgmr.msrb.gmra.mxu2 %vm536_vm0, %v651_v58 }
  0xe8   :  { %5293 = vrot.lane.b32.xlu2 %v6001_v0, %s5834_s2  ;;  %5288 = vrot.lane.b32.xlu1 %v6001_v0, %s5825_s25 }
  0xe9   :  { %5298 = vrot.lane.b32.xlu0 %v6001_v0, %s5835_s23 }
 0x122   :  { %v5249_v1 = vpop.permute.xlu2 %5248 }
 0x123   :  { %v5251_v14 = vunpack.i.h.bf16 %v5249_v1  ;;  %v5250_v18 = vunpack.i.l.bf16 %v5249_v1 }
 0x125   :  { %v461_v26 = vpack.c.bf16 %v5251_v14, %v5251_v14  ;;  %v460_v29 = vpack.c.bf16 %v5250_v18, %v5250_v18 }
 0x127   :  { %v625_v35 = vunpack.c.l.b16 %v461_v26  ;;  %v624_v38 = vunpack.c.l.b16 %v460_v29 }
 0x129   :  { %v626_v46 = vpack.c.b16 %v625_v35, %v624_v38 }
 0x12a   :  { %v6007_v2 = vpop.permute.xlu2 %5253 }
 0x12b   :  { %v631_v50 = vsel %vm536_vm0, %v626_v46, 0 }
 0x132   :  { %v5269_v3 = vpop.permute.xlu2 %5268 }
 0x133   :  { %v5271_v4 = vunpack.i.h.bf16 %v5269_v3  ;;  %v5270_v5 = vunpack.i.l.bf16 %v5269_v3 }
 0x135   :  { %v467_v6 = vpack.c.bf16 %v5271_v4, %v5271_v4  ;;  %v466_v7 = vpack.c.bf16 %v5270_v5, %v5270_v5 }
 0x137   :  { %v715_v8 = vunpack.c.l.b16 %v467_v6  ;;  %v714_v9 = vunpack.c.l.b16 %v466_v7 }
 0x139   :  { %v716_v11 = vpack.c.b16 %v715_v8, %v714_v9 }
 0x13a   :  { %v5239_v13 = vpop.permute.xlu1 %5238 }
 0x13b   :  { %v5241_v15 = vunpack.i.h.bf16 %v5239_v13  ;;  %v5240_v16 = vunpack.i.l.bf16 %v5239_v13  ;;  %v5229_v17 = vpop.permute.xlu0 %5228  ;;  %v721_v21 = vsel %vm536_vm0, %v716_v11, 0 }
 0x13c   :  { %v5231_v19 = vunpack.i.h.bf16 %v5229_v17  ;;  %v5230_v20 = vunpack.i.l.bf16 %v5229_v17  ;;  %730 = vmatpush.bf16.xpose.msra.mxu2 %v721_v21 }
 0x13d   :  { %v459_v22 = vpack.c.bf16 %v5241_v15, %v5241_v15  ;;  %v458_v23 = vpack.c.bf16 %v5240_v16, %v5240_v16 }
 0x13e   :  { %v457_v24 = vpack.c.bf16 %v5231_v19, %v5231_v19  ;;  %v456_v25 = vpack.c.bf16 %v5230_v20, %v5230_v20 }
 0x13f   :  { %v595_v27 = vunpack.c.l.b16 %v459_v22  ;;  %v594_v28 = vunpack.c.l.b16 %v458_v23  ;;  %v5256_v22 = vunpack.i.h.bf16 %v6007_v2  ;;  %v355_v23 = vpop.f32.mrf.mxu2 }
 0x140   :  { %v564_v30 = vunpack.c.l.b16 %v456_v25  ;;  %v565_v31 = vunpack.c.l.b16 %v457_v24  ;;  %v5255_v24 = vunpack.i.l.bf16 %v6007_v2 }
 0x141   :  { %v596_v32 = vpack.c.b16 %v595_v27, %v594_v28  ;;  %v405_v29 = vpack.c.bf16 %v5256_v22, %v5256_v22 }
 0x142   :  { %v5244_v33 = vpop.permute.xlu1 %5243  ;;  %v566_v34 = vpack.c.b16 %v565_v31, %v564_v30  ;;  %v404_v30 = vpack.c.bf16 %v5255_v24, %v5255_v24 }
 0x143   :  { %v5234_v36 = vpop.permute.xlu0 %5233  ;;  %v601_v37 = vsel %vm536_vm0, %v596_v32, 0  ;;  %v5246_v53 = vunpack.i.h.bf16 %v5244_v33  ;;  %v5245_v54 = vunpack.i.l.bf16 %v5244_v33  ;;  %v620_v35 = vunpack.c.l.b16 %v405_v29 }
 0x144   :  { %v5236_v39 = vunpack.i.h.bf16 %v5234_v36  ;;  %v5235_v40 = vunpack.i.l.bf16 %v5234_v36  ;;  %v571_v41 = vsel %vm536_vm0, %v566_v34, 0  ;;  %v5284_v34 = vpop.permute.xlu2 %5283  ;;  %v619_v36 = vunpack.c.l.b16 %v404_v30 }
 0x145   :  { %580 = vmatpush.bf16.xpose.msrb.mxu3 %v571_v41  ;;  %v403_v57 = vpack.c.bf16 %v5246_v53, %v5246_v53  ;;  %v402_v58 = vpack.c.bf16 %v5245_v54, %v5245_v54 }
 0x146   :  { %v401_v42 = vpack.c.bf16 %v5236_v39, %v5236_v39  ;;  %v400_v43 = vpack.c.bf16 %v5235_v40, %v5235_v40  ;;  %v621_v2 = vpack.c.b16 %v620_v35, %v619_v36 }
 0x147   :  { %v590_v5 = vunpack.c.l.b16 %v403_v57  ;;  %v589_v6 = vunpack.c.l.b16 %v402_v58 }
 0x148   :  { %v560_v44 = vunpack.c.l.b16 %v401_v42  ;;  %v559_v45 = vunpack.c.l.b16 %v400_v43  ;;  %v510_v42 = vpack.c.bf16 %v5994_v61, %v5994_v61  ;;  %v511_v43 = vpack.c.bf16 %v5997_v63, %v5997_v63 }
 0x149   :  { %v591_v16 = vpack.c.b16 %v590_v5, %v589_v6 }
 0x14a   :  { %v561_v47 = vpack.c.b16 %v560_v44, %v559_v45  ;;  %v6015_v48 = vpop.permute.xlu1 %5263 }
 0x14b   :  { %v5259_v49 = vpop.permute.xlu0 %5258  ;;  %v5266_v44 = vunpack.i.h.bf16 %v6015_v48  ;;  %v5265_v45 = vunpack.i.l.bf16 %v6015_v48 }
 0x14c   :  { %4397 = vmatmul.msk.bf16.vlgmr.msrb.gmra.mxu3 %vm536_vm0, %v561_v47  ;;  %v5261_v51 = vunpack.i.h.bf16 %v5259_v49  ;;  %v5260_v52 = vunpack.i.l.bf16 %v5259_v49  ;;  %v5294_v46 = vpop.permute.xlu2 %5293  ;;  %v983_v47 = vunpack.c.l.b16 %v510_v42  ;;  %v984_v49 = vunpack.c.l.b16 %v511_v43 }
 0x14d   :  { %610 = vmatpush.bf16.xpose.msra.mxu3 %v601_v37  ;;  %v409_v63 = vpack.c.bf16 %v5266_v44, %v5266_v44 }
 0x14e   :  { %v465_v55 = vpack.c.bf16 %v5261_v51, %v5261_v51  ;;  %v464_v56 = vpack.c.bf16 %v5260_v52, %v5260_v52  ;;  %v5295_v51 = vunpack.i.l.bf16 %v5294_v46  ;;  %v985_v61 = vpack.c.b16 %v984_v49, %v983_v47 }
 0x14f   :  { %v680_v0 = vunpack.c.l.b16 %v409_v63 }
 0x150   :  { %v685_v62 = vunpack.c.l.b16 %v465_v55  ;;  %v684_v1 = vunpack.c.l.b16 %v464_v56  ;;  %v516_v55 = vpack.c.bf16 %v5295_v51, %v5295_v51  ;;  %v408_v56 = vpack.c.bf16 %v5265_v45, %v5265_v45  ;;  %997 = vmatpush.bf16.msrb.mxu0 %v985_v61 }
 0x152   :  { %v5279_v59 = vpop.permute.xlu1 %5278  ;;  %v686_v9 = vpack.c.b16 %v685_v62, %v684_v1  ;;  %v1067_v58 = vunpack.c.l.b16 %v516_v55 }
 0x153   :  { %v5281_v3 = vunpack.i.h.bf16 %v5279_v59  ;;  %v5280_v4 = vunpack.i.l.bf16 %v5279_v59  ;;  %v5274_v14 = vpop.permute.xlu0 %5273  ;;  %v679_v59 = vunpack.c.l.b16 %v408_v56 }
 0x154   :  { %v5276_v19 = vunpack.i.h.bf16 %v5274_v14  ;;  %v5275_v20 = vunpack.i.l.bf16 %v5274_v14  ;;  %v691_v21 = vsel %vm536_vm0, %v686_v9, 0 }
 0x155   :  { %640 = vmatpush.bf16.xpose.msrb.mxu3 %v631_v50  ;;  %v411_v7 = vpack.c.bf16 %v5281_v3, %v5281_v3  ;;  %v410_v8 = vpack.c.bf16 %v5280_v4, %v5280_v4  ;;  %v5296_v50 = vunpack.i.h.bf16 %v5294_v46  ;;  %v681_v1 = vpack.c.b16 %v680_v0, %v679_v59 }
 0x156   :  { %v469_v25 = vpack.c.bf16 %v5276_v19, %v5276_v19  ;;  %v468_v26 = vpack.c.bf16 %v5275_v20, %v5275_v20  ;;  %v5286_v3 = vunpack.i.h.bf16 %v5284_v34  ;;  %v5285_v4 = vunpack.i.l.bf16 %v5284_v34 }
 0x157   :  { %v710_v10 = vunpack.c.l.b16 %v411_v7  ;;  %v709_v11 = vunpack.c.l.b16 %v410_v8  ;;  %v552_v13 = vpop.f32.mrf.mxu3  ;;  %v517_v54 = vpack.c.bf16 %v5296_v50, %v5296_v50 }
 0x158   :  { %v6019_v15 = vmul.f32 0.17677669, %v552_v13  ;;  %v745_v31 = vunpack.c.l.b16 %v469_v25  ;;  %v744_v32 = vunpack.c.l.b16 %v468_v26  ;;  %v413_v5 = vpack.c.bf16 %v5286_v3, %v5286_v3 }
 0x159   :  { %v711_v17 = vpack.c.b16 %v710_v10, %v709_v11  ;;  %v1068_v57 = vunpack.c.l.b16 %v517_v54  ;;  %v412_v6 = vpack.c.bf16 %v5285_v4, %v5285_v4  ;;  %v6053_v10 = vadd.f32 %v355_v23, %v5991_v60 }
 0x15a   :  { %v784_v18 = vsel %vm783_vm1, %v6019_v15, -inf  ;;  %v746_v37 = vpack.c.b16 %v745_v31, %v744_v32  ;;  %v740_v7 = vunpack.c.l.b16 %v413_v5  ;;  %v518_v11 = vpack.c.bf16 %v6010_v12, %v6010_v12  ;;  %v5289_v49 = vpop.permute.xlu1 %5288 }
 0x15b   :  { %4402 = vmatmul.msk.bf16.vlgmr.msra.gmra.mxu2 %vm536_vm0, %v711_v17  ;;  %785 = vmax.xlane.f32.xlu2 %v784_v18  ;;  %v1069_v62 = vpack.c.b16 %v1068_v57, %v1067_v58  ;;  %v739_v8 = vunpack.c.l.b16 %v412_v6  ;;  %v519_v13 = vpack.c.bf16 %v6053_v10, %v6053_v10  ;;  %v5299_v36 = vpop.permute.xlu0 %5298  ;;  %v5291_v50 = vunpack.i.h.bf16 %v5289_v49 }
 0x15c   :  { %4398 = vmatmul.msk.bf16.vlgmr.msra.gmra.mxu3 %vm536_vm0, %v591_v16  ;;  %v751_v41 = vsel %vm536_vm0, %v746_v37, 0  ;;  %v1095_v14 = vunpack.c.l.b16 %v518_v11  ;;  %v5301_v37 = vunpack.i.h.bf16 %v5299_v36  ;;  %v5290_v51 = vunpack.i.l.bf16 %v5289_v49 }
 0x15d   :  { %700 = vmatpush.bf16.xpose.msra.mxu3 %v691_v21  ;;  %v741_v9 = vpack.c.b16 %v740_v7, %v739_v8  ;;  %v1096_v16 = vunpack.c.l.b16 %v519_v13  ;;  %v515_v61 = vpack.c.bf16 %v5291_v50, %v5291_v50 }
 0x15e   :  { %v513_v42 = vpack.c.bf16 %v5301_v37, %v5301_v37  ;;  %v514_v54 = vpack.c.bf16 %v5290_v51, %v5290_v51 }
 0x15f   :  { %v554_v27 = vpop.f32.mrf.mxu3  ;;  %v1097_v17 = vpack.c.b16 %v1096_v16, %v1095_v14  ;;  %v1040_v63 = vunpack.c.l.b16 %v515_v61 }
 0x160   :  { %v6028_v28 = vmul.f32 0.17677669, %v554_v27  ;;  %v1012_v44 = vunpack.c.l.b16 %v513_v42  ;;  %v1039_v56 = vunpack.c.l.b16 %v514_v54 }
 0x161   :  { %1109 = vmatpush.bf16.msra.mxu0 %v1097_v17 }
 0x162   :  { %v787_v33 = vsel %vm783_vm1, %v6028_v28, -inf  ;;  %v1041_v57 = vpack.c.b16 %v1040_v63, %v1039_v56 }
 0x163   :  { %788 = vmax.xlane.f32.xlu0 %v787_v33 }
 0x164   :  { %1053 = vmatpush.bf16.msrb.mxu2 %v1041_v57 }
 0x167   :  { %v672_v38 = vpop.f32.mrf.mxu2 }
 0x168   :  { %v6032_v39 = vmul.f32 0.17677669, %v672_v38  ;;  %v5300_v38 = vunpack.i.l.bf16 %v5299_v36 }
 0x16a   :  { %v808_v40 = vsel %vm783_vm1, %v6032_v39, -inf  ;;  %v512_v43 = vpack.c.bf16 %v5300_v38, %v5300_v38 }
 0x16b   :  { %809 = vmax.xlane.f32.xlu0 %v808_v40 }
 0x16c   :  { %4399 = vmatmul.msk.bf16.vlgmr.msrb.gmra.mxu3 %vm536_vm0, %v621_v2  ;;  %v1011_v45 = vunpack.c.l.b16 %v512_v43 }
 0x16d   :  { %760 = vmatpush.bf16.xpose.msrb.mxu3 %v751_v41 }
 0x16e   :  { %v1013_v55 = vpack.c.b16 %v1012_v44, %v1011_v45 }
 0x16f   :  { %v674_v52 = vpop.f32.mrf.mxu2 }
 0x170   :  { %v6046_v53 = vmul.f32 0.17677669, %v674_v52  ;;  %1025 = vmatpush.bf16.msrb.mxu1 %v1013_v55 }
 0x172   :  { %v811_v48 = vsel %vm783_vm1, %v6046_v53, -inf }
 0x173   :  { %812 = vmax.xlane.f32.xlu0 %v811_v48 }
 0x17c   :  { %4401 = vmatmul.msk.bf16.vlgmr.msra.gmra.mxu3 %vm536_vm0, %v681_v1 }
 0x17d   :  { %1081 = vmatpush.bf16.msra.mxu3 %v1069_v62 }
 0x18c   :  { %4403 = vmatmul.msk.bf16.vlgmr.msrb.gmra.mxu3 %vm536_vm0, %v741_v9 }
 0x1cf   :  { %v582_v18 = vpop.f32.mrf.mxu3 }
 0x1d0   :  { %v6059_v19 = vmul.f32 0.17677669, %v582_v18  ;;  %v6114_v18 = vpop.xlane.xlu2 %785 }
 0x1d2   :  { %v790_v20 = vsel %vm783_vm1, %v6059_v19, -inf }
 0x1d3   :  { %791 = vmax.xlane.f32.xlu0 %v790_v20 }
 0x1d6   :  { %v6107_v9 = vpop.xlane.xlu0 %788 }
 0x1d7   :  { %v584_v21 = vpop.f32.mrf.mxu3 }
 0x1d8   :  { %v6063_v60 = vmul.f32 0.17677669, %v584_v21 }
 0x1da   :  { %v793_v22 = vsel %vm783_vm1, %v6063_v60, -inf }
 0x1db   :  { %794 = vmax.xlane.f32.xlu1 %v793_v22 }
 0x1de   :  { %v732_v23 = vpop.f32.mrf.mxu2  ;;  %v6109_v11 = vpop.xlane.xlu0 %809 }
 0x1df   :  { %v6067_v24 = vmul.f32 0.17677669, %v732_v23  ;;  %v612_v25 = vpop.f32.mrf.mxu3 }
 0x1e0   :  { %v6069_v26 = vmul.f32 0.17677669, %v612_v25 }
 0x1e1   :  { %v820_v27 = vsel %vm783_vm1, %v6067_v24, -inf }
 0x1e2   :  { %821 = vmax.xlane.f32.xlu2 %v820_v27  ;;  %v796_v29 = vsel %vm783_vm1, %v6069_v26, -inf }
 0x1e3   :  { %797 = vmax.xlane.f32.xlu0 %v796_v29 }
 0x1e6   :  { %v734_v30 = vpop.f32.mrf.mxu2  ;;  %v6111_v13 = vpop.xlane.xlu0 %812 }
 0x1e7   :  { %v6075_v31 = vmul.f32 0.17677669, %v734_v30  ;;  %v614_v32 = vpop.f32.mrf.mxu3 }
 0x1e8   :  { %v6077_v33 = vmul.f32 0.17677669, %v614_v32 }
 0x1e9   :  { %v823_v34 = vsel %vm783_vm1, %v6075_v31, -inf }
 0x1ea   :  { %v799_v35 = vsel %vm783_vm1, %v6077_v33, -inf }
 0x1eb   :  { %824 = vmax.xlane.f32.xlu0 %v823_v34  ;;  %800 = vmax.xlane.f32.xlu1 %v799_v35 }
 0x1ef   :  { %v642_v2 = vpop.f32.mrf.mxu3 }
 0x1f0   :  { %v6083_v40 = vmul.f32 0.17677669, %v642_v2 }
 0x1f2   :  { %v802_v41 = vsel %vm783_vm1, %v6083_v40, -inf }
 0x1f3   :  { %803 = vmax.xlane.f32.xlu2 %v802_v41 }
 0x1f7   :  { %v644_v46 = vpop.f32.mrf.mxu3 }
 0x1f8   :  { %v6087_v47 = vmul.f32 0.17677669, %v644_v46 }
 0x1fa   :  { %v805_v52 = vsel %vm783_vm1, %v6087_v47, -inf }
 0x1fb   :  { %806 = vmax.xlane.f32.xlu2 %v805_v52 }
 0x1ff   :  { %v702_v48 = vpop.f32.mrf.mxu3 }
 0x200   :  { %v6091_v58 = vmul.f32 0.17677669, %v702_v48 }
 0x202   :  { %v814_v0 = vsel %vm783_vm1, %v6091_v58, -inf }
 0x203   :  { %815 = vmax.xlane.f32.xlu0 %v814_v0 }
 0x207   :  { %v704_v59 = vpop.f32.mrf.mxu3 }
 0x208   :  { %v6095_v62 = vmul.f32 0.17677669, %v704_v59 }
 0x20a   :  { %v817_v1 = vsel %vm783_vm1, %v6095_v62, -inf }
 0x20b   :  { %818 = vmax.xlane.f32.xlu1 %v817_v1 }
 0x20f   :  { %v762_v3 = vpop.f32.mrf.mxu3 }
 0x210   :  { %v6099_v4 = vmul.f32 0.17677669, %v762_v3 }
 0x212   :  { %v826_v5 = vsel %vm783_vm1, %v6099_v4, -inf }
 0x213   :  { %827 = vmax.xlane.f32.xlu1 %v826_v5 }
 0x217   :  { %v764_v6 = vpop.f32.mrf.mxu3 }
 0x218   :  { %v6103_v7 = vmul.f32 0.17677669, %v764_v6 }
 0x21a   :  { %v829_v8 = vsel %vm783_vm1, %v6103_v7, -inf }
 0x21b   :  { %830 = vmax.xlane.f32.xlu2 %v829_v8 }
 0x246   :  { %v792_v14 = vpop.xlane.xlu0 %791 }
 0x247   :  { %v834_v16 = vsub.f32 %v6059_v19, %v792_v14 }
 0x249   :  { %v852_v17 = vmul.f32 1.442695, %v834_v16 }
 0x24b   :  { %5482 = vpow2.f32 %v852_v17 }
 0x24e   :  { %v795_v20 = vpop.xlane.xlu1 %794 }
 0x24f   :  { %v835_v21 = vsub.f32 %v6063_v60, %v795_v20 }
 0x251   :  { %v6117_v22 = vpop.eup %5482  ;;  %v854_v23 = vmul.f32 1.442695, %v835_v21 }
 0x252   :  { %v886_v25 = vsel %vm783_vm1, %v6117_v22, 0.0 }
 0x253   :  { %5484 = vpow2.f32 %v854_v23  ;;  %887 = vadd.xlane.f32.xlu2 %v886_v25  ;;  %v5302_v25 = vpack.i.bf16 %v6053_v10, %v6010_v12  ;;  %v833_v12 = vsub.f32 %v6028_v28, %v6107_v9 }
 0x255   :  { %v822_v27 = vpop.xlane.xlu2 %821 }
 0x256   :  { %v798_v29 = vpop.xlane.xlu0 %797  ;;  %v844_v32 = vsub.f32 %v6067_v24, %v822_v27 }
 0x257   :  { %v836_v30 = vsub.f32 %v6069_v26, %v798_v29 }
 0x258   :  { %v872_v35 = vmul.f32 1.442695, %v844_v32 }
 0x259   :  { %v6122_v19 = vpop.eup %5484  ;;  %v856_v34 = vmul.f32 1.442695, %v836_v30  ;;  %v841_v30 = vsub.f32 %v6046_v53, %v6111_v13  ;;  %v840_v13 = vsub.f32 %v6032_v39, %v6109_v11 }
 0x25a   :  { %v889_v60 = vsel %vm783_vm1, %v6122_v19, 0.0 }
 0x25b   :  { %5486 = vpow2.f32 %v856_v34  ;;  %890 = vadd.xlane.f32.xlu0 %v889_v60  ;;  %v866_v32 = vmul.f32 1.442695, %v841_v30  ;;  %v850_v34 = vmul.f32 1.442695, %v833_v12 }
 0x25c   :  { %5488 = vpow2.f32 %v872_v35 }
 0x25e   :  { %v801_v36 = vpop.xlane.xlu1 %800  ;;  %v825_v37 = vpop.xlane.xlu0 %824 }
 0x25f   :  { %v837_v38 = vsub.f32 %v6077_v33, %v801_v36  ;;  %v845_v26 = vsub.f32 %v6075_v31, %v825_v37  ;;  %v864_v36 = vmul.f32 1.442695, %v840_v13 }
 0x261   :  { %v6128_v2 = vpop.eup %5486  ;;  %v858_v41 = vmul.f32 1.442695, %v837_v38  ;;  %v874_v42 = vmul.f32 1.442695, %v845_v26 }
 0x262   :  { %v892_v24 = vsel %vm783_vm1, %v6128_v2, 0.0  ;;  %v6133_v44 = vpop.eup %5488 }
 0x263   :  { %893 = vadd.xlane.f32.xlu1 %v892_v24  ;;  %5490 = vpow2.f32 %v858_v41  ;;  %v916_v33 = vsel %vm783_vm1, %v6133_v44, 0.0 }
 0x264   :  { %5492 = vpow2.f32 %v874_v42 }
 0x266   :  { %v804_v43 = vpop.xlane.xlu2 %803 }
 0x267   :  { %v838_v45 = vsub.f32 %v6083_v40, %v804_v43 }
 0x269   :  { %v860_v46 = vmul.f32 1.442695, %v838_v45  ;;  %v6136_v49 = vpop.eup %5490 }
 0x26a   :  { %v895_v31 = vsel %vm783_vm1, %v6136_v49, 0.0  ;;  %v6143_v52 = vpop.eup %5492 }
 0x26b   :  { %5494 = vpow2.f32 %v860_v46  ;;  %917 = vadd.xlane.f32.xlu1 %v916_v33  ;;  %896 = vadd.xlane.f32.xlu2 %v895_v31  ;;  %v919_v55 = vsel %vm783_vm1, %v6143_v52, 0.0 }
 0x26e   :  { %v807_v50 = vpop.xlane.xlu2 %806 }
 0x26f   :  { %v839_v51 = vsub.f32 %v6087_v47, %v807_v50 }
 0x271   :  { %v6145_v61 = vpop.eup %5494  ;;  %v862_v40 = vmul.f32 1.442695, %v839_v51 }
 0x272   :  { %v898_v54 = vsel %vm783_vm1, %v6145_v61, 0.0 }
 0x273   :  { %5496 = vpow2.f32 %v862_v40  ;;  %899 = vadd.xlane.f32.xlu0 %v898_v54  ;;  %920 = vadd.xlane.f32.xlu2 %v919_v55 }
 0x276   :  { %v816_v63 = vpop.xlane.xlu0 %815 }
 0x277   :  { %v842_v56 = vsub.f32 %v6091_v58, %v816_v63 }
 0x279   :  { %v6152_v48 = vpop.eup %5496  ;;  %v868_v47 = vmul.f32 1.442695, %v842_v56 }
 0x27a   :  { %v901_v57 = vsel %vm783_vm1, %v6152_v48, 0.0 }
 0x27b   :  { %5498 = vpow2.f32 %v868_v47  ;;  %902 = vadd.xlane.f32.xlu1 %v901_v57 }
 0x27e   :  { %v819_v0 = vpop.xlane.xlu1 %818 }
 0x27f   :  { %v843_v59 = vsub.f32 %v6095_v62, %v819_v0 }
 0x281   :  { %v6157_v1 = vpop.eup %5498  ;;  %v870_v3 = vmul.f32 1.442695, %v843_v59 }
 0x282   :  { %v910_v5 = vsel %vm783_vm1, %v6157_v1, 0.0 }
 0x283   :  { %5500 = vpow2.f32 %v870_v3  ;;  %911 = vadd.xlane.f32.xlu2 %v910_v5 }
 0x286   :  { %v828_v58 = vpop.xlane.xlu1 %827 }
 0x287   :  { %v846_v6 = vsub.f32 %v6099_v4, %v828_v58 }
 0x289   :  { %v6162_v8 = vpop.eup %5500  ;;  %v876_v14 = vmul.f32 1.442695, %v846_v6 }
 0x28a   :  { %v913_v16 = vsel %vm783_vm1, %v6162_v8, 0.0 }
 0x28b   :  { %5502 = vpow2.f32 %v876_v14  ;;  %914 = vadd.xlane.f32.xlu1 %v913_v16 }
 0x28e   :  { %v831_v62 = vpop.xlane.xlu2 %830 }
 0x28f   :  { %v847_v17 = vsub.f32 %v6103_v7, %v831_v62  ;;  %v832_v7 = vsub.f32 %v6019_v15, %v6114_v18 }
 0x291   :  { %v6167_v20 = vpop.eup %5502  ;;  %v878_v21 = vmul.f32 1.442695, %v847_v17  ;;  %v848_v29 = vmul.f32 1.442695, %v832_v7 }
 0x292   :  { %v922_v23 = vsel %vm783_vm1, %v6167_v20, 0.0 }
 0x293   :  { %5504 = vpow2.f32 %v878_v21  ;;  %923 = vadd.xlane.f32.xlu0 %v922_v23 }
 0x294   :  { %5506 = vpow2.f32 %v848_v29 }
 0x295   :  { %5508 = vpow2.f32 %v866_v32 }
 0x296   :  { %5510 = vpow2.f32 %v850_v34 }
 0x299   :  { %v6171_v4 = vpop.eup %5504 }
 0x29a   :  { %v925_v27 = vsel %vm783_vm1, %v6171_v4, 0.0  ;;  %v6186_v10 = vpop.eup %5506 }
 0x29b   :  { %5303 = vrot.lane.b32.xlu2 %v5302_v25, %s5825_s25  ;;  %926 = vadd.xlane.f32.xlu1 %v925_v27  ;;  %v880_v60 = vsel %vm783_vm1, %v6186_v10, 0.0  ;;  %v6190_v18 = vpop.eup %5508 }
 0x29c   :  { %v907_v53 = vsel %vm783_vm1, %v6190_v18, 0.0  ;;  %v6196_v28 = vpop.eup %5510 }
 0x29d   :  { %v883_v37 = vsel %vm783_vm1, %v6196_v28, 0.0 }
 0x2a7   :  { %5313 = vrot.lane.b32.xlu0 %v5302_v25, %s5835_s23 }
 0x2b4   :  { %5308 = vrot.lane.b32.xlu1 %v5302_v25, %s5834_s2 }
 0x2c4   :  { %881 = vadd.xlane.f32.xlu2 %v880_v60 }
 0x2c6   :  { %v888_v15 = vpop.xlane.xlu2 %887 }
 0x2c7   :  { %5512 = vrcp.f32 %v888_v15 }
 0x2cc   :  { %908 = vadd.xlane.f32.xlu2 %v907_v53 }
 0x2cd   :  { %v5513_v35 = vpop.eup %5512 }
 0x2ce   :  { %v891_v9 = vpop.xlane.xlu0 %890  ;;  %v946_v38 = vmul.f32 %v5513_v35, %v6117_v22 }
 0x2cf   :  { %5514 = vrcp.f32 %v891_v9 }
 0x2d0   :  { %5516 = vpow2.f32 %v864_v36  ;;  %v962_v26 = vpack.c.bf16 %v946_v38, %v946_v38 }
 0x2d1   :  { %884 = vadd.xlane.f32.xlu0 %v883_v37 }
 0x2d2   :  { %v1006_v43 = vunpack.c.l.b16 %v962_v26 }
 0x2d5   :  { %v5515_v41 = vpop.eup %5514 }
 0x2d6   :  { %v947_v24 = vmul.f32 %v5515_v41, %v6122_v19  ;;  %v894_v42 = vpop.xlane.xlu1 %893  ;;  %v6202_v11 = vpop.eup %5516 }
 0x2d7   :  { %5518 = vrcp.f32 %v894_v42  ;;  %v904_v33 = vsel %vm783_vm1, %v6202_v11, 0.0 }
 0x2d8   :  { %v963_v39 = vpack.c.bf16 %v947_v24, %v947_v24 }
 0x2da   :  { %v1007_v45 = vunpack.c.l.b16 %v963_v39 }
 0x2dc   :  { %v1008_v46 = vpack.c.b16 %v1007_v45, %v1006_v43 }
 0x2dd   :  { %v5519_v31 = vpop.eup %5518 }
 0x2de   :  { %905 = vadd.xlane.f32.xlu1 %v904_v33  ;;  %4405 = vmatmul.msk.bf16.vlgmr.msrb.gmra.mxu1 %vm783_vm1, %v1008_v46  ;;  %v897_v22 = vpop.xlane.xlu2 %896  ;;  %v948_v50 = vmul.f32 %v5519_v31, %v6128_v2  ;;  %v918_v51 = vpop.xlane.xlu1 %917 }
 0x2df   :  { %5520 = vrcp.f32 %v897_v22 }
 0x2e0   :  { %v964_v54 = vpack.c.bf16 %v948_v50, %v948_v50 }
 0x2e2   :  { %v1034_v56 = vunpack.c.l.b16 %v964_v54 }
 0x2e5   :  { %v5521_v19 = vpop.eup %5520 }
 0x2e6   :  { %v900_v40 = vpop.xlane.xlu0 %899  ;;  %v949_v55 = vmul.f32 %v5521_v19, %v6136_v49  ;;  %v921_v0 = vpop.xlane.xlu2 %920 }
 0x2e7   :  { %5522 = vrcp.f32 %v900_v40 }
 0x2e8   :  { %v965_v63 = vpack.c.bf16 %v949_v55, %v949_v55 }
 0x2ea   :  { %v1035_v47 = vunpack.c.l.b16 %v965_v63 }
 0x2ec   :  { %v1036_v57 = vpack.c.b16 %v1035_v47, %v1034_v56 }
 0x2ed   :  { %v5523_v3 = vpop.eup %5522 }
 0x2ee   :  { %v903_v59 = vpop.xlane.xlu1 %902  ;;  %4406 = vmatmul.msk.bf16.vlgmr.msrb.gmra.mxu2 %vm783_vm1, %v1036_v57  ;;  %v950_v5 = vmul.f32 %v5523_v3, %v6145_v61 }
 0x2ef   :  { %5524 = vrcp.f32 %v903_v59 }
 0x2f0   :  { %5526 = vrcp.f32 %v921_v0  ;;  %v966_v58 = vpack.c.bf16 %v950_v5, %v950_v5 }
 0x2f1   :  { %5528 = vrcp.f32 %v918_v51 }
 0x2f2   :  { %v1062_v62 = vunpack.c.l.b16 %v966_v58 }
 0x2f5   :  { %v5525_v2 = vpop.eup %5524 }
 0x2f6   :  { %v951_v6 = vmul.f32 %v5525_v2, %v6152_v48  ;;  %v912_v49 = vpop.xlane.xlu2 %911  ;;  %v5527_v16 = vpop.eup %5526 }
 0x2f7   :  { %v5529_v21 = vpop.eup %5528  ;;  %v957_v23 = vmul.f32 %v5527_v16, %v6143_v52 }
 0x2f8   :  { %v967_v14 = vpack.c.bf16 %v951_v6, %v951_v6  ;;  %v956_v27 = vmul.f32 %v5529_v21, %v6133_v44 }
 0x2f9   :  { %v973_v30 = vpack.c.bf16 %v957_v23, %v957_v23 }
 0x2fa   :  { %v1063_v17 = vunpack.c.l.b16 %v967_v14  ;;  %v972_v48 = vpack.c.bf16 %v956_v27, %v956_v27 }
 0x2fb   :  { %v1147_v15 = vunpack.c.l.b16 %v973_v30 }
 0x2fc   :  { %v1064_v25 = vpack.c.b16 %v1063_v17, %v1062_v62  ;;  %v1146_v13 = vunpack.c.l.b16 %v972_v48 }
 0x2fe   :  { %4407 = vmatmul.msk.bf16.vlgmr.msra.gmra.mxu3 %vm783_vm1, %v1064_v25  ;;  %v5304_v61 = vpop.permute.xlu2 %5303  ;;  %v1148_v9 = vpack.c.b16 %v1147_v15, %v1146_v13  ;;  %v915_v52 = vpop.xlane.xlu1 %914 }
 0x2ff   :  { %v5306_v7 = vunpack.i.h.bf16 %v5304_v61  ;;  %v5305_v29 = vunpack.i.l.bf16 %v5304_v61  ;;  %5530 = vrcp.f32 %v915_v52 }
 0x300   :  { %5532 = vrcp.f32 %v912_v49 }
 0x301   :  { %v523_v32 = vpack.c.bf16 %v5306_v7, %v5306_v7  ;;  %v522_v12 = vpack.c.bf16 %v5305_v29, %v5305_v29 }
 0x303   :  { %v1152_v34 = vunpack.c.l.b16 %v523_v32  ;;  %v1151_v60 = vunpack.c.l.b16 %v522_v12 }
 0x305   :  { %v1153_v53 = vpack.c.b16 %v1152_v34, %v1151_v60  ;;  %v5531_v35 = vpop.eup %5530 }
 0x306   :  { %v924_v44 = vpop.xlane.xlu0 %923  ;;  %v5533_v36 = vpop.eup %5532  ;;  %v955_v37 = vmul.f32 %v5531_v35, %v6162_v8 }
 0x307   :  { %1165 = vmatpush.bf16.msra.mxu2 %v1153_v53  ;;  %v954_v41 = vmul.f32 %v5533_v36, %v6157_v1 }
 0x308   :  { %v971_v39 = vpack.c.bf16 %v955_v37, %v955_v37 }
 0x309   :  { %v970_v46 = vpack.c.bf16 %v954_v41, %v954_v41 }
 0x30a   :  { %4410 = vmatmul.msk.bf16.vlgmr.msra.gmra.mxu2 %vm783_vm1, %v1148_v9  ;;  %v1119_v31 = vunpack.c.l.b16 %v971_v39  ;;  %v5075_v39 = vld [vmem:[%s7011_s24 + $0x38] sm:$0xff] }
 0x30b   :  { %v1118_v51 = vunpack.c.l.b16 %v970_v46  ;;  %v5073_v46 = vld [vmem:[%s7011_s24 + $0x28] sm:$0xff] }
 0x30d   :  { %v1120_v40 = vpack.c.b16 %v1119_v31, %v1118_v51  ;;  %v5072_v31 = vld [vmem:[%s7011_s24 + $0x20] sm:$0xff]  ;;  %v5069_v51 = vld [vmem:[%s7011_s24 + $0x8] sm:$0xff] }
 0x30e   :  { %v927_v38 = vpop.xlane.xlu1 %926 }
 0x30f   :  { %5534 = vrcp.f32 %v927_v38 }
 0x310   :  { %5536 = vrcp.f32 %v924_v44 }
 0x315   :  { %v5535_v19 = vpop.eup %5534 }
 0x316   :  { %v5537_v8 = vpop.eup %5536  ;;  %v959_v1 = vmul.f32 %v5535_v19, %v6171_v4  ;;  %v5070_v19 = vld [vmem:[%s7011_s24 + $0x10] sm:$0xff] }
 0x317   :  { %v958_v54 = vmul.f32 %v5537_v8, %v6167_v20  ;;  %v5068_v8 = vld [vmem:[%s7011_s24] sm:$0xff] }
 0x318   :  { %v975_v47 = vpack.c.bf16 %v959_v1, %v959_v1 }
 0x319   :  { %v5314_v26 = vpop.permute.xlu0 %5313  ;;  %v974_v59 = vpack.c.bf16 %v958_v54, %v958_v54 }
 0x31a   :  { %v5316_v24 = vunpack.i.h.bf16 %v5314_v26  ;;  %v5315_v42 = vunpack.i.l.bf16 %v5314_v26  ;;  %v1175_v2 = vunpack.c.l.b16 %v975_v47 }
 0x31b   :  { %v1174_v6 = vunpack.c.l.b16 %v974_v59 }
 0x31c   :  { %v521_v43 = vpack.c.bf16 %v5316_v24, %v5316_v24  ;;  %v520_v45 = vpack.c.bf16 %v5315_v42, %v5315_v42 }
 0x31d   :  { %v1176_v49 = vpack.c.b16 %v1175_v2, %v1174_v6 }
 0x31e   :  { %v1124_v33 = vunpack.c.l.b16 %v521_v43  ;;  %v1123_v22 = vunpack.c.l.b16 %v520_v45  ;;  %v5074_v45 = vld [vmem:[%s7011_s24 + $0x30] sm:$0xff] }
 0x320   :  { %v1125_v50 = vpack.c.b16 %v1124_v33, %v1123_v22 }
 0x322   :  { %1137 = vmatpush.bf16.msra.mxu1 %v1125_v50  ;;  %v5071_v50 = vld [vmem:[%s7011_s24 + $0x18] sm:$0xff] }
 0x325   :  { %4409 = vmatmul.msk.bf16.vlgmr.msra.gmra.mxu1 %vm783_vm1, %v1120_v40 }
 0x326   :  { %v5309_v55 = vpop.permute.xlu1 %5308 }
 0x327   :  { %v5311_v63 = vunpack.i.h.bf16 %v5309_v55  ;;  %v5310_v56 = vunpack.i.l.bf16 %v5309_v55 }
 0x329   :  { %v525_v57 = vpack.c.bf16 %v5311_v63, %v5311_v63  ;;  %v524_v0 = vpack.c.bf16 %v5310_v56, %v5310_v56 }
 0x32b   :  { %v1180_v3 = vunpack.c.l.b16 %v525_v57  ;;  %v1179_v5 = vunpack.c.l.b16 %v524_v0 }
 0x32d   :  { %v1181_v58 = vpack.c.b16 %v1180_v3, %v1179_v5 }
 0x32f   :  { %1193 = vmatpush.bf16.msrb.mxu3 %v1181_v58 }
 0x332   :  { %4411 = vmatmul.msk.bf16.vlgmr.msrb.gmra.mxu3 %vm783_vm1, %v1176_v49 }
 0x337   :  { %v882_v4 = vpop.xlane.xlu2 %881 }
 0x338   :  { %5538 = vrcp.f32 %v882_v4 }
 0x33e   :  { %v5539_v20 = vpop.eup %5538 }
 0x33f   :  { %v944_v16 = vmul.f32 %v5539_v20, %v6186_v10  ;;  %v909_v21 = vpop.xlane.xlu2 %908 }
 0x341   :  { %v960_v17 = vpack.c.bf16 %v944_v16, %v944_v16 }
 0x343   :  { %v978_v27 = vunpack.c.l.b16 %v960_v17 }
 0x344   :  { %v885_v14 = vpop.xlane.xlu0 %884 }
 0x345   :  { %5540 = vrcp.f32 %v885_v14 }
 0x346   :  { %5542 = vrcp.f32 %v909_v21 }
 0x34b   :  { %v5541_v62 = vpop.eup %5540 }
 0x34c   :  { %v945_v23 = vmul.f32 %v5541_v62, %v6196_v28  ;;  %v5543_v30 = vpop.eup %5542 }
 0x34d   :  { %v953_v12 = vmul.f32 %v5543_v30, %v6190_v18 }
 0x34e   :  { %v961_v25 = vpack.c.bf16 %v945_v23, %v945_v23 }
 0x34f   :  { %v969_v60 = vpack.c.bf16 %v953_v12, %v953_v12 }
 0x350   :  { %v979_v61 = vunpack.c.l.b16 %v961_v25 }
 0x351   :  { %v906_v7 = vpop.xlane.xlu1 %905  ;;  %v1091_v28 = vunpack.c.l.b16 %v969_v60 }
 0x352   :  { %5544 = vrcp.f32 %v906_v7  ;;  %v980_v29 = vpack.c.b16 %v979_v61, %v978_v27 }
 0x354   :  { %4404 = vmatmul.msk.bf16.vlgmr.msrb.gmra.mxu0 %vm783_vm1, %v980_v29 }
 0x355   :  { %1332 = vmatpush.bf16.msrb.mxu0 %v5075_v39  ;;  %v5836_v39 = vmov 128.0  }
 0x356   :  { %5546 = vrcp.f32 %v5836_v39 }
 0x358   :  { %v5545_v32 = vpop.eup %5544 }
 0x359   :  { %v952_v10 = vmul.f32 %v5545_v32, %v6202_v11  ;;  %1333 = vmatpush.bf16.msrb.mxu0 %v5074_v45 }
 0x35b   :  { %v968_v48 = vpack.c.bf16 %v952_v10, %v952_v10  ;;  %v1027_v34 = vpop.f32.mrf.mxu1 }
 0x35d   :  { %v1090_v15 = vunpack.c.l.b16 %v968_v48  ;;  %1334 = vmatpush.bf16.msrb.mxu0 %v5073_v46 }
 0x35f   :  { %v1092_v53 = vpack.c.b16 %v1091_v28, %v1090_v15  ;;  %v5467_v15 = vld [vmem:[%s6984_s4] ss:$0 sm:$0xff] }
 0x361   :  { %1335 = vmatpush.bf16.msrb.mxu0 %v5072_v31 }
 0x363   :  { %v1029_v13 = vpop.f32.mrf.mxu1 }
 0x364   :  { %v5317_v9 = vpack.i.bf16 %v1029_v13, %v1027_v34  ;;  %4408 = vmatmul.msk.bf16.vlgmr.msra.gmra.mxu0 %vm783_vm1, %v1092_v53  ;;  %v5692_v13 = vld [vmem:[%s7009_s19] sm:$0xff] }
 0x365   :  { %1336 = vmatpush.bf16.msrb.mxu0 %v5071_v50 }
 0x366   :  { %5318 = vrot.lane.b32.xlu0 %v5317_v9, %s5834_s2 }
 0x369   :  { %1337 = vmatpush.bf16.msrb.mxu0 %v5070_v19 }
 0x36d   :  { %1338 = vmatpush.bf16.msrb.mxu0 %v5069_v51 }
 0x371   :  { %v1055_v52 = vpop.f32.mrf.mxu2  ;;  %1339 = vmatpush.bf16.msrb.mxu0 %v5068_v8 }
 0x379   :  { %v1057_v44 = vpop.f32.mrf.mxu2 }
 0x37a   :  { %v5322_v35 = vpack.i.bf16 %v1057_v44, %v1055_v52 }
 0x37c   :  { %5323 = vrot.lane.b32.xlu1 %v5322_v35, %s5825_s25  ;;  %v5693_v35 = vld [vmem:[%s7009_s19 + $0x8] sm:$0xff] }
 0x381   :  { %v1083_v18 = vpop.f32.mrf.mxu3 }
 0x389   :  { %v1085_v36 = vpop.f32.mrf.mxu3 }
 0x38a   :  { %v5327_v11 = vpack.i.bf16 %v1085_v36, %v1083_v18 }
 0x38c   :  { %5328 = vrot.lane.b32.xlu2 %v5327_v11, %s5835_s23 }
 0x38d   :  { %v1167_v37 = vpop.f32.mrf.mxu2 }
 0x395   :  { %v1169_v38 = vpop.f32.mrf.mxu2 }
 0x396   :  { %v5332_v41 = vpack.i.bf16 %v1169_v38, %v1167_v37  ;;  %v5694_v37 = vld [vmem:[%s7009_s19 + $0x10] sm:$0xff] }
 0x398   :  { %5333 = vrot.lane.b32.xlu1 %v5332_v41, %s5825_s25 }
 0x3a2   :  { %v1139_v26 = vpop.f32.mrf.mxu1 }
 0x3aa   :  { %v1141_v24 = vpop.f32.mrf.mxu1 }
 0x3ab   :  { %v5337_v42 = vpack.i.bf16 %v1141_v24, %v1139_v26  ;;  %v5695_v24 = vld [vmem:[%s7009_s19 + $0x18] sm:$0xff] }
 0x3ad   :  { %5338 = vrot.lane.b32.xlu0 %v5337_v42, %s5834_s2 }
 0x3b5   :  { %v1195_v43 = vpop.f32.mrf.mxu3 }
 0x3bd   :  { %v1197_v33 = vpop.f32.mrf.mxu3 }
 0x3be   :  { %v5342_v22 = vpack.i.bf16 %v1197_v33, %v1195_v43  ;;  %v5547_v43 = vpop.eup %5546 }
 0x3bf   :  { %v1366_v45 = vmul.f32 128.0, %v5547_v43  ;;  %vm1370_vm4 = vweird.f32 %v5547_v43 }
 0x3c0   :  { %5343 = vrot.lane.b32.xlu0 %v5342_v22, %s5835_s23 }
 0x3c1   :  { %v1367_v46 = vsub.f32 1.0, %v1366_v45  ;;  %v5077_v45 = vld [vmem:[%s6987_s7 + $0x4] sm:$0xf0] }
 0x3c3   :  { %v1368_v33 = vmul.f32 %v5547_v43, %v1367_v46  ;;  %v5076_v46 = vld [vmem:[%s6987_s7 + $0x4] sm:$0xf] }
 0x3c5   :  { %v1369_v22 = vadd.f32 %v5547_v43, %v1368_v33 }
 0x3c7   :  { %v6285_v31 = vsel %vm1370_vm4, %v5547_v43, %v1369_v22  ;;  %v4446_v43 = vld [vmem:[%s6987_s7] sm:$0xf] }
 0x3c8   :  { %v4447_v22 = vor.u32 %v5077_v45, %v4446_v43  ;;  %v5099_v45 = vld [vmem:[#allocation5 + $0x38] sm:$0xff] }
 0x3c9   :  { %1808 = vmatpush.bf16.msra.mxu3 %v5099_v45 }
 0x3d1   :  { %v999_v40 = vpop.f32.mrf.mxu0 }
 0x3d8   :  { %v5319_v1 = vpop.permute.xlu0 %5318 }
 0x3d9   :  { %v5321_v54 = vunpack.i.h.bf16 %v5319_v1  ;;  %v5320_v55 = vunpack.i.l.bf16 %v5319_v1  ;;  %v1001_v63 = vpop.f32.mrf.mxu0 }
 0x3db   :  { %v1248_v59 = vsel %vm536_vm0, %v999_v40, %v5320_v55  ;;  %v1249_v3 = vsel %vm536_vm0, %v1001_v63, %v5321_v54 }
 0x3e1   :  { %v1111_v20 = vpop.f32.mrf.mxu0 }
 0x3e6   :  { %v5329_v56 = vpop.permute.xlu2 %5328 }
 0x3e7   :  { %v5331_v5 = vunpack.i.h.bf16 %v5329_v56  ;;  %v5330_v2 = vunpack.i.l.bf16 %v5329_v56 }
 0x3e9   :  { %v1113_v23 = vpop.f32.mrf.mxu0 }
 0x3ee   :  { %v5324_v47 = vpop.permute.xlu1 %5323 }
 0x3ef   :  { %v5326_v57 = vunpack.i.h.bf16 %v5324_v47  ;;  %v5325_v0 = vunpack.i.l.bf16 %v5324_v47 }
 0x3f1   :  { %v1253_v58 = vsel %vm1252_vm2, %v1248_v59, %v5325_v0  ;;  %v1254_v6 = vsel %vm1252_vm2, %v1249_v3, %v5326_v57 }
 0x3f2   :  { %v1258_v49 = vsel %vm1257_vm3, %v1253_v58, %v5330_v2  ;;  %v1259_v4 = vsel %vm1257_vm3, %v1254_v6, %v5331_v5  ;;  %v4502_v2 = vld [vmem:[%s6987_s7 + $0x70] sm:$0xf]  ;;  %v5091_v58 = vld [vmem:[%s6987_s7 + $0x74] sm:$0xf0]  ;;  %v5090_v6 = vld [vmem:[%s6987_s7 + $0x74] sm:$0xf] }
 0x3f3   :  { %v1262_v14 = vpack.c.bf16 %v1259_v4, %v1258_v49  ;;  %v4503_v49 = vor.u32 %v5091_v58, %v4502_v2  ;;  %v4504_v4 = vld [vmem:[%s6987_s7 + $0x78] sm:$0xf0] }
 0x3f5   :  { %1340 = vmatmul.bf16.vlgmr.msrb.gmra.mxu0 %v1262_v14  ;;  %v4507_v14 = vor.u32 %v5090_v6, %v4504_v4  ;;  %1562 = vmatpush.bf16.msrb.mxu1 %v4503_v49 }
 0x3f7   :  { %1581 = vmatpush.bf16.msrb.mxu2 %v4507_v14 }
 0x40a   :  { %v5334_v21 = vpop.permute.xlu1 %5333 }
 0x40b   :  { %v5336_v61 = vunpack.i.h.bf16 %v5334_v21  ;;  %v5335_v7 = vunpack.i.l.bf16 %v5334_v21  ;;  %v4496_v21 = vld [vmem:[%s6987_s7 + $0x68] sm:$0xf0] }
 0x41f   :  { %v5339_v16 = vpop.permute.xlu0 %5338 }
 0x420   :  { %v5341_v62 = vunpack.i.h.bf16 %v5339_v16  ;;  %v5340_v17 = vunpack.i.l.bf16 %v5339_v16  ;;  %v5089_v16 = vld [vmem:[%s6987_s7 + $0x64] sm:$0xf0] }
 0x422   :  { %v1250_v25 = vsel %vm536_vm0, %v1111_v20, %v5340_v17  ;;  %v1251_v27 = vsel %vm536_vm0, %v1113_v23, %v5341_v62  ;;  %v4494_v20 = vld [vmem:[%s6987_s7 + $0x60] sm:$0xf]  ;;  %v5088_v62 = vld [vmem:[%s6987_s7 + $0x64] sm:$0xf] }
 0x423   :  { %v1255_v12 = vsel %vm1252_vm2, %v1250_v25, %v5335_v7  ;;  %v1256_v10 = vsel %vm1252_vm2, %v1251_v27, %v5336_v61  ;;  %v4495_v17 = vor.u32 %v5089_v16, %v4494_v20  ;;  %v4499_v23 = vor.u32 %v5088_v62, %v4496_v21  ;;  %v4486_v25 = vld [vmem:[%s6987_s7 + $0x50] sm:$0xf]  ;;  %v5087_v27 = vld [vmem:[%s6987_s7 + $0x54] sm:$0xf0]  ;;  %v5086_v61 = vld [vmem:[%s6987_s7 + $0x54] sm:$0xf] }
 0x424   :  { %v4487_v7 = vor.u32 %v5087_v27, %v4486_v25  ;;  %v5468_v62 = vld [vmem:[%s6985_s5] ss:$0 sm:$0xff] }
 0x425   :  { %1563 = vmatpush.bf16.msrb.mxu1 %v4495_v17  ;;  %1582 = vmatpush.bf16.msrb.mxu2 %v4499_v23  ;;  %v5469_v27 = vld [vmem:[%s6986_s6] ss:$0 sm:$0xff] }
 0x429   :  { %1564 = vmatpush.bf16.msrb.mxu1 %v4487_v7 }
 0x432   :  { %v5344_v29 = vpop.permute.xlu0 %5343 }
 0x433   :  { %v5346_v30 = vunpack.i.h.bf16 %v5344_v29  ;;  %v5345_v32 = vunpack.i.l.bf16 %v5344_v29  ;;  %v4488_v29 = vld [vmem:[%s6987_s7 + $0x58] sm:$0xf0] }
 0x435   :  { %v1260_v48 = vsel %vm1257_vm3, %v1255_v12, %v5345_v32  ;;  %v1261_v34 = vsel %vm1257_vm3, %v1256_v10, %v5346_v30  ;;  %v4491_v30 = vor.u32 %v5086_v61, %v4488_v29  ;;  %v4478_v32 = vld [vmem:[%s6987_s7 + $0x40] sm:$0xf]  ;;  %v5085_v12 = vld [vmem:[%s6987_s7 + $0x44] sm:$0xf0]  ;;  %v5084_v10 = vld [vmem:[%s6987_s7 + $0x44] sm:$0xf] }
 0x436   :  { %v1263_v60 = vpack.c.bf16 %v1261_v34, %v1260_v48  ;;  %v4479_v48 = vor.u32 %v5085_v12, %v4478_v32  ;;  %v4480_v34 = vld [vmem:[%s6987_s7 + $0x48] sm:$0xf0] }
 0x437   :  { %1583 = vmatpush.bf16.msrb.mxu2 %v4491_v30 }
 0x438   :  { %1345 = vmatmul.bf16.gmra.mxu0 %v1263_v60  ;;  %v4483_v60 = vor.u32 %v5084_v10, %v4480_v34  ;;  %1565 = vmatpush.bf16.msrb.mxu1 %v4479_v48 }
 0x43b   :  { %1584 = vmatpush.bf16.msrb.mxu2 %v4483_v60 }
 0x472   :  { %v1341_v28 = vpop.f32.mrf.mxu0 }
 0x473   :  { %v1342_v53 = vadd.f32 %v5467_v15, %v1341_v28  ;;  %v5083_v28 = vld [vmem:[%s6987_s7 + $0x34] sm:$0xf0] }
 0x475   :  { %v1351_v9 = vadd.f32 %v5692_v13, %v1342_v53  ;;  %v5082_v53 = vld [vmem:[%s6987_s7 + $0x34] sm:$0xf] }
 0x477   :  { %1357 = vadd.xlane.f32.xlu2 %v1351_v9 }
 0x47a   :  { %v1343_v52 = vpop.f32.mrf.mxu0 }
 0x47b   :  { %v1344_v44 = vadd.f32 %v5467_v15, %v1343_v52 }
 0x47d   :  { %v1352_v18 = vadd.f32 %v5693_v35, %v1344_v44  ;;  %v4462_v44 = vld [vmem:[%s6987_s7 + $0x20] sm:$0xf]  ;;  %v5081_v35 = vld [vmem:[%s6987_s7 + $0x24] sm:$0xf0] }
 0x47f   :  { %1359 = vadd.xlane.f32.xlu1 %v1352_v18 }
 0x4b5   :  { %v1346_v36 = vpop.f32.mrf.mxu0 }
 0x4b6   :  { %v1347_v11 = vadd.f32 %v5467_v15, %v1346_v36  ;;  %v4463_v36 = vor.u32 %v5081_v35, %v4462_v44 }
 0x4b8   :  { %v1353_v38 = vadd.f32 %v5694_v37, %v1347_v11  ;;  %v4464_v11 = vld [vmem:[%s6987_s7 + $0x28] sm:$0xf0] }
 0x4ba   :  { %1361 = vadd.xlane.f32.xlu0 %v1353_v38 }
 0x4bd   :  { %v1348_v41 = vpop.f32.mrf.mxu0 }
 0x4be   :  { %v1349_v26 = vadd.f32 %v5467_v15, %v1348_v41  ;;  %v4470_v15 = vld [vmem:[%s6987_s7 + $0x30] sm:$0xf]  ;;  %v5079_v41 = vld [vmem:[%s6987_s7 + $0x14] sm:$0xf0] }
 0x4bf   :  { %v4471_v13 = vor.u32 %v5083_v28, %v4470_v15 }
 0x4c0   :  { %v1354_v42 = vadd.f32 %v5695_v24, %v1349_v26  ;;  %v5078_v26 = vld [vmem:[%s6987_s7 + $0x14] sm:$0xf] }
 0x4c1   :  { %1566 = vmatpush.bf16.msrb.mxu1 %v4471_v13 }
 0x4c2   :  { %1363 = vadd.xlane.f32.xlu2 %v1354_v42 }
 0x4c5   :  { %1567 = vmatpush.bf16.msrb.mxu1 %v4463_v36 }
 0x4ea   :  { %v1358_v50 = vpop.xlane.xlu2 %1357 }
 0x4eb   :  { %v1372_v19 = vmul.f32 %v6285_v31, %v1358_v50  ;;  %v4448_v50 = vld [vmem:[%s6987_s7 + $0x8] sm:$0xf0] }
 0x4ed   :  { %v6288_v51 = vsub.f32 %v1351_v9, %v1372_v19  ;;  %v4472_v9 = vld [vmem:[%s6987_s7 + $0x38] sm:$0xf0] }
 0x4ee   :  { %v4475_v52 = vor.u32 %v5082_v53, %v4472_v9 }
 0x4ef   :  { %v1380_v8 = vmul.f32 %v6288_v51, %v6288_v51 }
 0x4f0   :  { %1585 = vmatpush.bf16.msrb.mxu2 %v4475_v52 }
 0x4f1   :  { %1384 = vadd.xlane.f32.xlu1 %v1380_v8  ;;  %v4451_v8 = vor.u32 %v5076_v46, %v4448_v50  ;;  %v5107_v46 = vld [vmem:[#allocation5 + $0x78] sm:$0xff]  ;;  %v5105_v50 = vld [vmem:[#allocation5 + $0x68] sm:$0xff] }
 0x4f2   :  { %v1360_v40 = vpop.xlane.xlu1 %1359  ;;  %1827 = vmatpush.bf16.msra.mxu0 %v5107_v46 }
 0x4f3   :  { %v1373_v1 = vmul.f32 %v6285_v31, %v1360_v40 }
 0x4f5   :  { %v6293_v54 = vsub.f32 %v1352_v18, %v1373_v1  ;;  %v5080_v18 = vld [vmem:[%s6987_s7 + $0x24] sm:$0xf] }
 0x4f6   :  { %v4467_v37 = vor.u32 %v5080_v18, %v4464_v11 }
 0x4f7   :  { %v1381_v55 = vmul.f32 %v6293_v54, %v6293_v54 }
 0x4f8   :  { %1586 = vmatpush.bf16.msrb.mxu2 %v4467_v37 }
 0x4f9   :  { %1386 = vadd.xlane.f32.xlu0 %v1381_v55 }
 0x52d   :  { %v1362_v63 = vpop.xlane.xlu0 %1361 }
 0x52e   :  { %v1374_v56 = vmul.f32 %v6285_v31, %v1362_v63 }
 0x530   :  { %v6298_v47 = vsub.f32 %v1353_v38, %v1374_v56  ;;  %v4454_v38 = vld [vmem:[%s6987_s7 + $0x10] sm:$0xf] }
 0x531   :  { %v4455_v24 = vor.u32 %v5079_v41, %v4454_v38 }
 0x532   :  { %v1382_v57 = vmul.f32 %v6298_v47, %v6298_v47 }
 0x533   :  { %1568 = vmatpush.bf16.msrb.mxu1 %v4455_v24 }
 0x534   :  { %1388 = vadd.xlane.f32.xlu2 %v1382_v57 }
 0x535   :  { %v1364_v0 = vpop.xlane.xlu2 %1363 }
 0x536   :  { %v1375_v59 = vmul.f32 %v6285_v31, %v1364_v0 }
 0x537   :  { %1569 = vmatpush.bf16.msrb.mxu1 %v4447_v22  ;;  %v5096_v22 = vld [vmem:[#allocation5 + $0x20] sm:$0xff] }
 0x538   :  { %v6303_v3 = vsub.f32 %v1354_v42, %v1375_v59  ;;  %v4456_v42 = vld [vmem:[%s6987_s7 + $0x18] sm:$0xf0] }
 0x539   :  { %v4459_v39 = vor.u32 %v5078_v26, %v4456_v42 }
 0x53a   :  { %v1383_v5 = vmul.f32 %v6303_v3, %v6303_v3 }
 0x53b   :  { %1587 = vmatpush.bf16.msrb.mxu2 %v4459_v39 }
 0x53c   :  { %1390 = vadd.xlane.f32.xlu1 %v1383_v5 }
 0x53f   :  { %1588 = vmatpush.bf16.msrb.mxu2 %v4451_v8  ;;  %v5104_v8 = vld [vmem:[#allocation5 + $0x60] sm:$0xff] }
 0x564   :  { %v1385_v33 = vpop.xlane.xlu1 %1384 }
 0x565   :  { %v1392_v19 = vmul.f32 %v1385_v33, %v6285_v31  ;;  %v5097_v33 = vld [vmem:[#allocation5 + $0x28] sm:$0xff] }
 0x567   :  { %v1396_v40 = vadd.f32 1e-12, %v1392_v19  ;;  %v5095_v19 = vld [vmem:[#allocation5 + $0x18] sm:$0xff] }
 0x569   :  { %5548 = vrsqrt.f32 %v1396_v40  ;;  %vm1406_vm6 = vweird.f32 %v1396_v40 }
 0x56c   :  { %v1387_v1 = vpop.xlane.xlu0 %1386 }
 0x56d   :  { %v1393_v55 = vmul.f32 %v1387_v1, %v6285_v31  ;;  %v5103_v1 = vld [vmem:[#allocation5 + $0x58] sm:$0xff] }
 0x56f   :  { %v5549_v63 = vpop.eup %5548  ;;  %v1397_v56 = vadd.f32 1e-12, %v1393_v55  ;;  %v5093_v55 = vld [vmem:[#allocation5 + $0x8] sm:$0xff] }
 0x570   :  { %v1401_v57 = vmul.f32 %v5549_v63, %v1396_v40  ;;  %vm1407_vm5 = vweird.f32 %v5549_v63  ;;  %v5094_v40 = vld [vmem:[#allocation5 + $0x10] sm:$0xff] }
 0x571   :  { %5550 = vrsqrt.f32 %v1397_v56  ;;  %vm1408_vm7 = vmor %vm1406_vm6, %vm1407_vm5  ;;  %vm1416_vm9 = vweird.f32 %v1397_v56 }
 0x572   :  { %v1402_v0 = vmul.f32 %v5549_v63, %v1401_v57 }
 0x574   :  { %v1403_v59 = vmul.f32 0.5, %v1402_v0  ;;  %v5092_v0 = vld [vmem:[#allocation5] sm:$0xff] }
 0x576   :  { %v1404_v5 = vsub.f32 1.5, %v1403_v59  ;;  %v5101_v59 = vld [vmem:[#allocation5 + $0x48] sm:$0xff] }
 0x577   :  { %v5551_v2 = vpop.eup %5550 }
 0x578   :  { %v1405_v58 = vmul.f32 %v5549_v63, %v1404_v5  ;;  %v1411_v6 = vmul.f32 %v5551_v2, %v1397_v56  ;;  %vm1417_vm8 = vweird.f32 %v5551_v2  ;;  %v5102_v56 = vld [vmem:[#allocation5 + $0x50] sm:$0xff] }
 0x579   :  { %vm1418_vm10 = vmor %vm1416_vm9, %vm1417_vm8 }
 0x57a   :  { %v1412_v49 = vmul.f32 %v5551_v2, %v1411_v6  ;;  %v1409_v4 = vsel %vm1408_vm7, %v5549_v63, %v1405_v58  ;;  %v1476_v63 = vld [vmem:[%s6988_s8] sm:$0x3] }
 0x57b   :  { %v1440_v16 = vmul.f32 %v1409_v4, %v6288_v51  ;;  %v6432_v57 = vperm.slane %v1476_v63, 0  ;;  %v5100_v58 = vld [vmem:[#allocation5 + $0x40] sm:$0xff] }
 0x57c   :  { %v1413_v14 = vmul.f32 0.5, %v1412_v49  ;;  %v6435_v49 = vperm.slane %v1476_v63, 1 }
 0x57d   :  { %v1447_v25 = vmul.f32 %v5468_v62, %v1440_v16 }
 0x57e   :  { %v1414_v20 = vsub.f32 1.5, %v1413_v14 }
 0x57f   :  { %v6413_v7 = vadd.f32 %v5469_v27, %v1447_v25 }
 0x580   :  { %v1415_v17 = vmul.f32 %v5551_v2, %v1414_v20 }
 0x582   :  { %v1419_v21 = vsel %vm1418_vm10, %v5551_v2, %v1415_v17 }
 0x583   :  { %v1441_v23 = vmul.f32 %v1419_v21, %v6293_v54 }
 0x585   :  { %v1448_v61 = vmul.f32 %v5468_v62, %v1441_v23 }
 0x587   :  { %v6415_v29 = vadd.f32 %v5469_v27, %v1448_v61 }
 0x589   :  { %v1458_v51 = vpack.c.bf16 %v6415_v29, %v6413_v7 }
 0x58b   :  { %1570 = vmatmul.bf16.vlgmr.msrb.gmra.mxu1 %v1458_v51  ;;  %1589 = vmatmul.bf16.vlgmr.msrb.gmra.mxu2 %v1458_v51 }
 0x5a7   :  { %v1389_v30 = vpop.xlane.xlu2 %1388 }
 0x5a8   :  { %v1394_v32 = vmul.f32 %v1389_v30, %v6285_v31 }
 0x5aa   :  { %v1398_v12 = vadd.f32 1e-12, %v1394_v32 }
 0x5ac   :  { %5552 = vrsqrt.f32 %v1398_v12  ;;  %vm1426_vm12 = vweird.f32 %v1398_v12 }
 0x5af   :  { %v1391_v54 = vpop.xlane.xlu1 %1390 }
 0x5b0   :  { %v1395_v10 = vmul.f32 %v1391_v54, %v6285_v31 }
 0x5b2   :  { %v5553_v48 = vpop.eup %5552  ;;  %v1399_v34 = vadd.f32 1e-12, %v1395_v10 }
 0x5b3   :  { %v1421_v60 = vmul.f32 %v5553_v48, %v1398_v12  ;;  %vm1427_vm11 = vweird.f32 %v5553_v48 }
 0x5b4   :  { %5554 = vrsqrt.f32 %v1399_v34  ;;  %vm1428_vm13 = vmor %vm1426_vm12, %vm1427_vm11  ;;  %vm1436_vm15 = vweird.f32 %v1399_v34 }
 0x5b5   :  { %v1422_v15 = vmul.f32 %v5553_v48, %v1421_v60 }
 0x5b7   :  { %v1423_v28 = vmul.f32 0.5, %v1422_v15 }
 0x5b9   :  { %v1424_v53 = vsub.f32 1.5, %v1423_v28 }
 0x5ba   :  { %v5555_v13 = vpop.eup %5554 }
 0x5bb   :  { %v1425_v9 = vmul.f32 %v5553_v48, %v1424_v53  ;;  %v1431_v52 = vmul.f32 %v5555_v13, %v1399_v34  ;;  %vm1437_vm14 = vweird.f32 %v5555_v13 }
 0x5bc   :  { %vm1438_vm4 = vmor %vm1436_vm15, %vm1437_vm14 }
 0x5bd   :  { %v1432_v44 = vmul.f32 %v5555_v13, %v1431_v52  ;;  %v1429_v18 = vsel %vm1428_vm13, %v5553_v48, %v1425_v9 }
 0x5be   :  { %v1442_v11 = vmul.f32 %v1429_v18, %v6298_v47  ;;  %v5098_v47 = vld [vmem:[#allocation5 + $0x30] sm:$0xff] }
 0x5bf   :  { %v1433_v35 = vmul.f32 0.5, %v1432_v44  ;;  %1809 = vmatpush.bf16.msra.mxu3 %v5098_v47 }
 0x5c0   :  { %v1449_v26 = vmul.f32 %v5468_v62, %v1442_v11 }
 0x5c1   :  { %v1434_v36 = vsub.f32 1.5, %v1433_v35 }
 0x5c2   :  { %v6423_v42 = vadd.f32 %v5469_v27, %v1449_v26 }
 0x5c3   :  { %v1435_v37 = vmul.f32 %v5555_v13, %v1434_v36  ;;  %1810 = vmatpush.bf16.msra.mxu3 %v5097_v33 }
 0x5c5   :  { %v1439_v38 = vsel %vm1438_vm4, %v5555_v13, %v1435_v37 }
 0x5c6   :  { %v1443_v41 = vmul.f32 %v1439_v38, %v6303_v3  ;;  %v5106_v3 = vld [vmem:[#allocation5 + $0x70] sm:$0xff] }
 0x5c7   :  { %1828 = vmatpush.bf16.msra.mxu0 %v5106_v3  ;;  %1811 = vmatpush.bf16.msra.mxu3 %v5096_v22 }
 0x5c8   :  { %v1450_v24 = vmul.f32 %v5468_v62, %v1443_v41 }
 0x5ca   :  { %v6425_v39 = vadd.f32 %v5469_v27, %v1450_v24 }
 0x5cb   :  { %1829 = vmatpush.bf16.msra.mxu0 %v5105_v50  ;;  %1812 = vmatpush.bf16.msra.mxu3 %v5095_v19 }
 0x5cc   :  { %v1459_v43 = vpack.c.bf16 %v6425_v39, %v6423_v42 }
 0x5ce   :  { %1575 = vmatmul.bf16.gmra.mxu1 %v1459_v43  ;;  %1594 = vmatmul.bf16.gmra.mxu2 %v1459_v43 }
 0x5cf   :  { %1830 = vmatpush.bf16.msra.mxu0 %v5104_v8  ;;  %1813 = vmatpush.bf16.msra.mxu3 %v5094_v40 }
 0x5d3   :  { %1831 = vmatpush.bf16.msra.mxu0 %v5103_v1  ;;  %1814 = vmatpush.bf16.msra.mxu3 %v5093_v55 }
 0x5d7   :  { %1832 = vmatpush.bf16.msra.mxu0 %v5102_v56  ;;  %1815 = vmatpush.bf16.msra.mxu3 %v5092_v0 }
 0x5db   :  { %1833 = vmatpush.bf16.msra.mxu0 %v5101_v59 }
 0x5df   :  { %1834 = vmatpush.bf16.msra.mxu0 %v5100_v58 }
 0x608   :  { %v1571_v5 = vpop.f32.mrf.mxu1 }
 0x609   :  { %v1572_v2 = vadd.f32 %v1571_v5, %v6432_v57 }
 0x60b   :  { %v1608_v6 = vmul.f32 %v1572_v2, %v1572_v2  ;;  %v1600_v18 = vmul.f32 0.5, %v1572_v2 }
 0x60d   :  { %v1616_v4 = vmul.f32 %v1608_v6, %v1572_v2 }
 0x60e   :  { %v1590_v14 = vpop.f32.mrf.mxu2 }
 0x60f   :  { %v1624_v20 = vmul.f32 0.044715, %v1616_v4  ;;  %v1591_v16 = vadd.f32 %v1590_v14, %v6435_v49 }
 0x610   :  { %v1573_v62 = vpop.f32.mrf.mxu1 }
 0x611   :  { %v1632_v17 = vadd.f32 %v1624_v20, %v1572_v2  ;;  %v1609_v21 = vmul.f32 %v1591_v16, %v1591_v16  ;;  %v1574_v23 = vadd.f32 %v1573_v62, %v6432_v57  ;;  %v1601_v45 = vmul.f32 0.5, %v1591_v16 }
 0x613   :  { %v1617_v25 = vmul.f32 %v1609_v21, %v1591_v16  ;;  %v1610_v27 = vmul.f32 %v1574_v23, %v1574_v23  ;;  %v1640_v61 = vmul.f32 0.7978846, %v1632_v17  ;;  %v1602_v36 = vmul.f32 0.5, %v1574_v23 }
 0x615   :  { %v1625_v51 = vmul.f32 0.044715, %v1617_v25  ;;  %v1618_v30 = vmul.f32 %v1610_v27, %v1574_v23  ;;  %5556 = vtanh.f32 %v1640_v61 }
 0x616   :  { %v1592_v32 = vpop.f32.mrf.mxu2 }
 0x617   :  { %v1633_v12 = vadd.f32 %v1625_v51, %v1591_v16  ;;  %v1626_v54 = vmul.f32 0.044715, %v1618_v30  ;;  %v1593_v10 = vadd.f32 %v1592_v32, %v6435_v49 }
 0x619   :  { %v1634_v48 = vadd.f32 %v1626_v54, %v1574_v23  ;;  %v1611_v34 = vmul.f32 %v1593_v10, %v1593_v10  ;;  %v1641_v60 = vmul.f32 0.7978846, %v1633_v12  ;;  %v1603_v47 = vmul.f32 0.5, %v1593_v10 }
 0x61b   :  { %v1642_v15 = vmul.f32 0.7978846, %v1634_v48  ;;  %v1619_v28 = vmul.f32 %v1611_v34, %v1593_v10  ;;  %v5557_v13 = vpop.eup %5556 }
 0x61c   :  { %v1656_v44 = vadd.f32 1.0, %v5557_v13 }
 0x61d   :  { %5558 = vtanh.f32 %v1642_v15  ;;  %v1627_v53 = vmul.f32 0.044715, %v1619_v28 }
 0x61e   :  { %5560 = vtanh.f32 %v1641_v60  ;;  %v1664_v38 = vmul.f32 %v1656_v44, %v1600_v18 }
 0x61f   :  { %v1635_v9 = vadd.f32 %v1627_v53, %v1593_v10 }
 0x621   :  { %v1643_v52 = vmul.f32 0.7978846, %v1635_v9 }
 0x623   :  { %v5559_v35 = vpop.eup %5558  ;;  %5562 = vtanh.f32 %v1643_v52 }
 0x624   :  { %v1658_v11 = vadd.f32 1.0, %v5559_v35  ;;  %v5561_v37 = vpop.eup %5560 }
 0x625   :  { %v1657_v26 = vadd.f32 1.0, %v5561_v37 }
 0x626   :  { %v1666_v41 = vmul.f32 %v1658_v11, %v1602_v36  ;;  %v5470_v11 = vld [vmem:[%s6990_s10] ss:$0 sm:$0xff] }
 0x627   :  { %v1665_v33 = vmul.f32 %v1657_v26, %v1601_v45 }
 0x628   :  { %v1672_v24 = vpack.c.bf16 %v1666_v41, %v1664_v38 }
 0x629   :  { %v5563_v43 = vpop.eup %5562 }
 0x62a   :  { %v1659_v46 = vadd.f32 1.0, %v5563_v43  ;;  %1816 = vmatmul.bf16.vlgmr.msra.gmra.mxu3 %v1672_v24 }
 0x62c   :  { %v1667_v3 = vmul.f32 %v1659_v46, %v1603_v47 }
 0x62e   :  { %v1673_v22 = vpack.c.bf16 %v1667_v3, %v1665_v33 }
 0x630   :  { %1835 = vmatmul.bf16.vlgmr.msra.gmra.mxu0 %v1673_v22 }
 0x64b   :  { %v1576_v50 = vpop.f32.mrf.mxu1 }
 0x64c   :  { %v1577_v19 = vadd.f32 %v1576_v50, %v6432_v57 }
 0x64e   :  { %v1612_v8 = vmul.f32 %v1577_v19, %v1577_v19  ;;  %v1604_v10 = vmul.f32 0.5, %v1577_v19 }
 0x650   :  { %v1620_v40 = vmul.f32 %v1612_v8, %v1577_v19 }
 0x651   :  { %v1595_v1 = vpop.f32.mrf.mxu2 }
 0x652   :  { %v1628_v55 = vmul.f32 0.044715, %v1620_v40  ;;  %v1596_v63 = vadd.f32 %v1595_v1, %v6435_v49 }
 0x653   :  { %v1578_v56 = vpop.f32.mrf.mxu1 }
 0x654   :  { %v1613_v0 = vmul.f32 %v1596_v63, %v1596_v63  ;;  %v1579_v59 = vadd.f32 %v1578_v56, %v6432_v57  ;;  %v1636_v5 = vadd.f32 %v1628_v55, %v1577_v19  ;;  %v1605_v9 = vmul.f32 0.5, %v1596_v63 }
 0x656   :  { %v1621_v2 = vmul.f32 %v1613_v0, %v1596_v63  ;;  %v1614_v58 = vmul.f32 %v1579_v59, %v1579_v59  ;;  %v1644_v14 = vmul.f32 0.7978846, %v1636_v5  ;;  %v1606_v48 = vmul.f32 0.5, %v1579_v59 }
 0x658   :  { %v1629_v6 = vmul.f32 0.044715, %v1621_v2  ;;  %v1622_v4 = vmul.f32 %v1614_v58, %v1579_v59  ;;  %5564 = vtanh.f32 %v1644_v14 }
 0x659   :  { %v1597_v20 = vpop.f32.mrf.mxu2 }
 0x65a   :  { %v1598_v16 = vadd.f32 %v1597_v20, %v6435_v49  ;;  %v1630_v62 = vmul.f32 0.044715, %v1622_v4  ;;  %v1637_v17 = vadd.f32 %v1629_v6, %v1596_v63 }
 0x65c   :  { %v1615_v21 = vmul.f32 %v1598_v16, %v1598_v16  ;;  %v1638_v23 = vadd.f32 %v1630_v62, %v1579_v59  ;;  %v1645_v61 = vmul.f32 0.7978846, %v1637_v17  ;;  %v1607_v52 = vmul.f32 0.5, %v1598_v16 }
 0x65e   :  { %v1623_v25 = vmul.f32 %v1615_v21, %v1598_v16  ;;  %v1646_v27 = vmul.f32 0.7978846, %v1638_v23  ;;  %v5565_v57 = vpop.eup %5564  ;;  %v4659_v21 = vld [vmem:[#allocation2 + $0x168] sm:$0xf]  ;;  %v5130_v23 = vld [vmem:[#allocation2 + $0x170] sm:$0xf0] }
 0x65f   :  { %v1660_v12 = vadd.f32 1.0, %v5565_v57  ;;  %v5131_v57 = vld [vmem:[#allocation2 + $0x178] sm:$0xf0] }
 0x660   :  { %v1631_v51 = vmul.f32 0.044715, %v1623_v25  ;;  %5566 = vtanh.f32 %v1646_v27  ;;  %v5129_v25 = vld [vmem:[#allocation2 + $0x16c] sm:$0xf]  ;;  %v4660_v27 = vor.u32 %v5130_v23, %v4659_v21  ;;  %v4595_v21 = vld [vmem:[#allocation2 + $0xe0] sm:$0xf] }
 0x661   :  { %5568 = vtanh.f32 %v1645_v61  ;;  %v1668_v60 = vmul.f32 %v1660_v12, %v1604_v10  ;;  %v4661_v61 = vld [vmem:[#allocation2 + $0x174] sm:$0xf0]  ;;  %v4647_v12 = vld [vmem:[#allocation2 + $0x150] sm:$0xf]  ;;  %v5126_v10 = vld [vmem:[#allocation2 + $0x154] sm:$0xf] }
 0x662   :  { %v1639_v30 = vadd.f32 %v1631_v51, %v1598_v16  ;;  %v4667_v51 = vld [vmem:[#allocation2 + $0x170] sm:$0xf]  ;;  %2118 = vmatpush.bf16.msra.mxu1 %v4660_v27  ;;  %v5113_v23 = vld [vmem:[#allocation2 + $0xe8] sm:$0xf0] }
 0x663   :  { %v4596_v27 = vor.u32 %v5113_v23, %v4595_v21 }
 0x664   :  { %v1647_v32 = vmul.f32 0.7978846, %v1639_v30  ;;  %v4664_v30 = vor.u32 %v5129_v25, %v4661_v61  ;;  %v4575_v61 = vld [vmem:[#allocation2 + $0xc0] sm:$0xf] }
 0x666   :  { %v5567_v54 = vpop.eup %5566  ;;  %5570 = vtanh.f32 %v1647_v32  ;;  %v4668_v32 = vor.u32 %v5131_v57, %v4667_v51  ;;  %2137 = vmatpush.bf16.msra.mxu2 %v4664_v30  ;;  %v5109_v51 = vld [vmem:[#allocation2 + $0xc8] sm:$0xf0]  ;;  %v5108_v57 = vld [vmem:[#allocation2 + $0xc4] sm:$0xf] }
 0x667   :  { %v1662_v49 = vadd.f32 1.0, %v5567_v54  ;;  %v5569_v34 = vpop.eup %5568  ;;  %v5127_v54 = vld [vmem:[#allocation2 + $0x158] sm:$0xf0] }
 0x668   :  { %v1661_v53 = vadd.f32 1.0, %v5569_v34  ;;  %2156 = vmatpush.bf16.msrb.mxu3 %v4668_v32  ;;  %v4655_v34 = vld [vmem:[#allocation2 + $0x158] sm:$0xf]  ;;  %v4576_v32 = vor.u32 %v5109_v51, %v4575_v61 }
 0x669   :  { %v1670_v15 = vmul.f32 %v1662_v49, %v1606_v48  ;;  %v4648_v48 = vor.u32 %v5127_v54, %v4647_v12  ;;  %v4649_v49 = vld [vmem:[#allocation2 + $0x15c] sm:$0xf0]  ;;  %v4577_v12 = vld [vmem:[#allocation2 + $0xcc] sm:$0xf0]  ;;  %v4583_v54 = vld [vmem:[#allocation2 + $0xc8] sm:$0xf] }
 0x66a   :  { %v1669_v35 = vmul.f32 %v1661_v53, %v1605_v9  ;;  %v4635_v53 = vld [vmem:[#allocation2 + $0x138] sm:$0xf]  ;;  %v5123_v9 = vld [vmem:[#allocation2 + $0x13c] sm:$0xf] }
 0x66b   :  { %v1674_v28 = vpack.c.bf16 %v1670_v15, %v1668_v60  ;;  %v5128_v60 = vld [vmem:[#allocation2 + $0x160] sm:$0xf0]  ;;  %v4652_v15 = vor.u32 %v5126_v10, %v4649_v49  ;;  %2119 = vmatpush.bf16.msra.mxu1 %v4648_v48  ;;  %v5110_v10 = vld [vmem:[#allocation2 + $0xd0] sm:$0xf0]  ;;  %v4580_v49 = vor.u32 %v5108_v57, %v4577_v12 }
 0x66c   :  { %v5571_v13 = vpop.eup %5570 }
 0x66d   :  { %1821 = vmatmul.bf16.gmra.mxu3 %v1674_v28  ;;  %v1663_v44 = vadd.f32 1.0, %v5571_v13  ;;  %v4656_v28 = vor.u32 %v5128_v60, %v4655_v34  ;;  %2138 = vmatpush.bf16.msra.mxu2 %v4652_v15  ;;  %v5124_v13 = vld [vmem:[#allocation2 + $0x140] sm:$0xf0]  ;;  %v4584_v34 = vor.u32 %v5110_v10, %v4583_v54 }
 0x66f   :  { %v1671_v18 = vmul.f32 %v1663_v44, %v1607_v52  ;;  %2157 = vmatpush.bf16.msrb.mxu3 %v4656_v28  ;;  %v4636_v52 = vor.u32 %v5124_v13, %v4635_v53  ;;  %v4637_v44 = vld [vmem:[#allocation2 + $0x144] sm:$0xf0] }
 0x671   :  { %v1675_v36 = vpack.c.bf16 %v1671_v18, %v1669_v35  ;;  %v4643_v35 = vld [vmem:[#allocation2 + $0x140] sm:$0xf]  ;;  %v5125_v18 = vld [vmem:[#allocation2 + $0x148] sm:$0xf0]  ;;  %2120 = vmatpush.bf16.msra.mxu1 %v4636_v52 }
 0x673   :  { %1840 = vmatmul.bf16.gmra.mxu0 %v1675_v36  ;;  %v4640_v36 = vor.u32 %v5123_v9, %v4637_v44 }
 0x675   :  { %2139 = vmatpush.bf16.msra.mxu2 %v4640_v36 }
 0x6ad   :  { %v1817_v37 = vpop.f32.mrf.mxu3  ;;  %v1836_v38 = vpop.f32.mrf.mxu0 }
 0x6ae   :  { %v1818_v41 = vadd.f32 %v5470_v11, %v1817_v37  ;;  %v4623_v37 = vld [vmem:[#allocation2 + $0x120] sm:$0xf] }
 0x6b0   :  { %v1837_v26 = vadd.f32 %v1836_v38, %v1818_v41  ;;  %v5121_v38 = vld [vmem:[#allocation2 + $0x128] sm:$0xf0]  ;;  %v5120_v41 = vld [vmem:[#allocation2 + $0x124] sm:$0xf] }
 0x6b2   :  { %v1846_v24 = vadd.f32 %v1837_v26, %v6413_v7  ;;  %v4624_v26 = vor.u32 %v5121_v38, %v4623_v37 }
 0x6b4   :  { %1852 = vadd.xlane.f32.xlu0 %v1846_v24  ;;  %2121 = vmatpush.bf16.msra.mxu1 %v4624_v26 }
 0x6b5   :  { %v1819_v43 = vpop.f32.mrf.mxu3  ;;  %v1838_v47 = vpop.f32.mrf.mxu0 }
 0x6b6   :  { %v1820_v45 = vadd.f32 %v5470_v11, %v1819_v43  ;;  %v4631_v43 = vld [vmem:[#allocation2 + $0x128] sm:$0xf] }
 0x6b8   :  { %v1839_v46 = vadd.f32 %v1838_v47, %v1820_v45  ;;  %v5122_v45 = vld [vmem:[#allocation2 + $0x130] sm:$0xf0] }
 0x6ba   :  { %v1847_v33 = vadd.f32 %v1839_v46, %v6415_v29  ;;  %v4632_v46 = vor.u32 %v5122_v45, %v4631_v43  ;;  %v5471_v43 = vld [vmem:[%s6991_s11] ss:$0 sm:$0xff] }
 0x6bc   :  { %1854 = vadd.xlane.f32.xlu2 %v1847_v33 }
 0x6f0   :  { %v1822_v3 = vpop.f32.mrf.mxu3  ;;  %v1841_v22 = vpop.f32.mrf.mxu0 }
 0x6f1   :  { %v1823_v50 = vadd.f32 %v5470_v11, %v1822_v3  ;;  %v5118_v3 = vld [vmem:[#allocation2 + $0x110] sm:$0xf0] }
 0x6f3   :  { %v1842_v19 = vadd.f32 %v1841_v22, %v1823_v50  ;;  %v5117_v22 = vld [vmem:[#allocation2 + $0x10c] sm:$0xf] }
 0x6f5   :  { %v1848_v8 = vadd.f32 %v1842_v19, %v6423_v42  ;;  %v4613_v19 = vld [vmem:[#allocation2 + $0x114] sm:$0xf0] }
 0x6f7   :  { %1856 = vadd.xlane.f32.xlu1 %v1848_v8 }
 0x6f8   :  { %v1824_v40 = vpop.f32.mrf.mxu3  ;;  %v1843_v55 = vpop.f32.mrf.mxu0 }
 0x6f9   :  { %v1825_v1 = vadd.f32 %v5470_v11, %v1824_v40  ;;  %v4644_v11 = vor.u32 %v5125_v18, %v4643_v35  ;;  %v5119_v40 = vld [vmem:[#allocation2 + $0x118] sm:$0xf0] }
 0x6fb   :  { %v1844_v63 = vadd.f32 %v1843_v55, %v1825_v1  ;;  %2158 = vmatpush.bf16.msrb.mxu3 %v4644_v11  ;;  %v4616_v1 = vor.u32 %v5117_v22, %v4613_v19 }
 0x6fd   :  { %v1849_v7 = vadd.f32 %v1844_v63, %v6425_v39  ;;  %v4599_v63 = vld [vmem:[#allocation2 + $0xf0] sm:$0xf] }
 0x6ff   :  { %1858 = vadd.xlane.f32.xlu0 %v1849_v7  ;;  %2159 = vmatpush.bf16.msrb.mxu3 %v4632_v46 }
 0x727   :  { %v1853_v56 = vpop.xlane.xlu0 %1852 }
 0x728   :  { %v1860_v0 = vmul.f32 %v1853_v56, %v6285_v31  ;;  %v5114_v56 = vld [vmem:[#allocation2 + $0xf4] sm:$0xf] }
 0x72a   :  { %v6452_v59 = vsub.f32 %v1846_v24, %v1860_v0  ;;  %v4625_v24 = vld [vmem:[#allocation2 + $0x12c] sm:$0xf0] }
 0x72b   :  { %v4628_v47 = vor.u32 %v5120_v41, %v4625_v24 }
 0x72c   :  { %v1868_v29 = vmul.f32 %v6452_v59, %v6452_v59 }
 0x72d   :  { %2140 = vmatpush.bf16.msra.mxu2 %v4628_v47 }
 0x72e   :  { %1872 = vadd.xlane.f32.xlu2 %v1868_v29  ;;  %v4601_v29 = vld [vmem:[#allocation2 + $0xfc] sm:$0xf0] }
 0x72f   :  { %v1855_v5 = vpop.xlane.xlu2 %1854 }
 0x730   :  { %v1861_v42 = vmul.f32 %v1855_v5, %v6285_v31  ;;  %v4607_v5 = vld [vmem:[#allocation2 + $0xf8] sm:$0xf] }
 0x731   :  { %2141 = vmatpush.bf16.msra.mxu2 %v4616_v1 }
 0x732   :  { %v6457_v2 = vsub.f32 %v1847_v33, %v1861_v42  ;;  %v4611_v33 = vld [vmem:[#allocation2 + $0x108] sm:$0xf]  ;;  %v5116_v42 = vld [vmem:[#allocation2 + $0x100] sm:$0xf0] }
 0x733   :  { %v4612_v50 = vor.u32 %v5118_v3, %v4611_v33  ;;  %v5472_v3 = vld [vmem:[%s6992_s12] ss:$0 sm:$0xff] }
 0x734   :  { %v1869_v58 = vmul.f32 %v6457_v2, %v6457_v2 }
 0x735   :  { %2122 = vmatpush.bf16.msra.mxu1 %v4612_v50 }
 0x736   :  { %1874 = vadd.xlane.f32.xlu1 %v1869_v58  ;;  %v4604_v58 = vor.u32 %v5114_v56, %v4601_v29 }
 0x738   :  { %2142 = vmatpush.bf16.msra.mxu2 %v4604_v58 }
 0x76a   :  { %v1857_v39 = vpop.xlane.xlu1 %1856 }
 0x76b   :  { %v1862_v6 = vmul.f32 %v1857_v39, %v6285_v31  ;;  %v4608_v39 = vor.u32 %v5116_v42, %v4607_v5 }
 0x76d   :  { %v6462_v4 = vsub.f32 %v1848_v8, %v1862_v6  ;;  %v4619_v8 = vld [vmem:[#allocation2 + $0x110] sm:$0xf]  ;;  %v4587_v6 = vld [vmem:[#allocation2 + $0xd8] sm:$0xf] }
 0x76e   :  { %v4620_v55 = vor.u32 %v5119_v40, %v4619_v8 }
 0x76f   :  { %v1870_v14 = vmul.f32 %v6462_v4, %v6462_v4 }
 0x770   :  { %2160 = vmatpush.bf16.msrb.mxu3 %v4620_v55 }
 0x771   :  { %1876 = vadd.xlane.f32.xlu0 %v1870_v14  ;;  %v5112_v14 = vld [vmem:[#allocation2 + $0xe0] sm:$0xf0] }
 0x772   :  { %v1859_v20 = vpop.xlane.xlu0 %1858 }
 0x773   :  { %v1863_v16 = vmul.f32 %v1859_v20, %v6285_v31  ;;  %v5111_v20 = vld [vmem:[#allocation2 + $0xdc] sm:$0xf] }
 0x774   :  { %2161 = vmatpush.bf16.msrb.mxu3 %v4608_v39 }
 0x775   :  { %v6467_v62 = vsub.f32 %v1849_v7, %v1863_v16  ;;  %v5115_v7 = vld [vmem:[#allocation2 + $0xf8] sm:$0xf0]  ;;  %v4588_v16 = vor.u32 %v5112_v14, %v4587_v6 }
 0x776   :  { %v4600_v0 = vor.u32 %v5115_v7, %v4599_v63 }
 0x777   :  { %v1871_v17 = vmul.f32 %v6467_v62, %v6467_v62 }
 0x778   :  { %2123 = vmatpush.bf16.msra.mxu1 %v4600_v0  ;;  %2162 = vmatpush.bf16.msrb.mxu3 %v4596_v27 }
 0x779   :  { %1878 = vadd.xlane.f32.xlu2 %v1871_v17  ;;  %v4589_v17 = vld [vmem:[#allocation2 + $0xe4] sm:$0xf0] }
 0x77a   :  { %v4592_v25 = vor.u32 %v5111_v20, %v4589_v17 }
 0x77c   :  { %2124 = vmatpush.bf16.msra.mxu1 %v4588_v16  ;;  %2143 = vmatpush.bf16.msra.mxu2 %v4592_v25 }
 0x77d   :  { %2163 = vmatpush.bf16.msrb.mxu3 %v4584_v34 }
 0x780   :  { %2125 = vmatpush.bf16.msra.mxu1 %v4576_v32  ;;  %2144 = vmatpush.bf16.msra.mxu2 %v4580_v49 }
 0x7a1   :  { %v1873_v30 = vpop.xlane.xlu2 %1872 }
 0x7a2   :  { %v1880_v48 = vmul.f32 %v1873_v30, %v6285_v31 }
 0x7a4   :  { %v1884_v60 = vadd.f32 1e-12, %v1880_v48 }
 0x7a6   :  { %5572 = vrsqrt.f32 %v1884_v60  ;;  %vm1894_vm6 = vweird.f32 %v1884_v60 }
 0x7a9   :  { %v1875_v15 = vpop.xlane.xlu1 %1874 }
 0x7aa   :  { %v1881_v28 = vmul.f32 %v1875_v15, %v6285_v31 }
 0x7ac   :  { %v5573_v53 = vpop.eup %5572  ;;  %v1885_v13 = vadd.f32 1e-12, %v1881_v28 }
 0x7ad   :  { %v1889_v9 = vmul.f32 %v5573_v53, %v1884_v60  ;;  %vm1895_vm5 = vweird.f32 %v5573_v53 }
 0x7ae   :  { %5574 = vrsqrt.f32 %v1885_v13  ;;  %vm1896_vm7 = vmor %vm1894_vm6, %vm1895_vm5  ;;  %vm1904_vm9 = vweird.f32 %v1885_v13 }
 0x7af   :  { %v1890_v52 = vmul.f32 %v5573_v53, %v1889_v9 }
 0x7b1   :  { %v1891_v44 = vmul.f32 0.5, %v1890_v52 }
 0x7b3   :  { %v1892_v35 = vsub.f32 1.5, %v1891_v44 }
 0x7b4   :  { %v5575_v18 = vpop.eup %5574 }
 0x7b5   :  { %v1893_v36 = vmul.f32 %v5573_v53, %v1892_v35  ;;  %v1899_v11 = vmul.f32 %v5575_v18, %v1885_v13  ;;  %vm1905_vm8 = vweird.f32 %v5575_v18 }
 0x7b6   :  { %vm1906_vm10 = vmor %vm1904_vm9, %vm1905_vm8 }
 0x7b7   :  { %v1900_v37 = vmul.f32 %v5575_v18, %v1899_v11  ;;  %v1897_v38 = vsel %vm1896_vm7, %v5573_v53, %v1893_v36 }
 0x7b8   :  { %v1928_v24 = vmul.f32 %v1897_v38, %v6452_v59 }
 0x7b9   :  { %v1901_v41 = vmul.f32 0.5, %v1900_v37 }
 0x7ba   :  { %v1935_v33 = vmul.f32 %v5471_v43, %v1928_v24 }
 0x7bb   :  { %v1902_v26 = vsub.f32 1.5, %v1901_v41 }
 0x7bc   :  { %v6481_v50 = vadd.f32 %v5472_v3, %v1935_v33 }
 0x7bd   :  { %v1903_v45 = vmul.f32 %v5575_v18, %v1902_v26 }
 0x7bf   :  { %v1907_v47 = vsel %vm1906_vm10, %v5575_v18, %v1903_v45 }
 0x7c0   :  { %v1929_v46 = vmul.f32 %v1907_v47, %v6457_v2 }
 0x7c2   :  { %v1936_v22 = vmul.f32 %v5471_v43, %v1929_v46 }
 0x7c4   :  { %v6483_v19 = vadd.f32 %v5472_v3, %v1936_v22 }
 0x7c6   :  { %v1946_v59 = vpack.c.bf16 %v6483_v19, %v6481_v50 }
 0x7c8   :  { %2126 = vmatmul.bf16.vlgmr.msra.gmra.mxu1 %v1946_v59  ;;  %2145 = vmatmul.bf16.vlgmr.msra.gmra.mxu2 %v1946_v59 }
 0x7c9   :  { %2164 = vmatmul.bf16.vlgmr.msrb.gmra.mxu3 %v1946_v59 }
 0x7e4   :  { %v1877_v8 = vpop.xlane.xlu0 %1876 }
 0x7e5   :  { %v1882_v40 = vmul.f32 %v1877_v8, %v6285_v31 }
 0x7e7   :  { %v1886_v2 = vadd.f32 1e-12, %v1882_v40 }
 0x7e9   :  { %5576 = vrsqrt.f32 %v1886_v2  ;;  %vm1914_vm12 = vweird.f32 %v1886_v2 }
 0x7ec   :  { %v1879_v1 = vpop.xlane.xlu2 %1878 }
 0x7ed   :  { %v1883_v55 = vmul.f32 %v1879_v1, %v6285_v31 }
 0x7ef   :  { %v5577_v63 = vpop.eup %5576  ;;  %v1887_v7 = vadd.f32 1e-12, %v1883_v55 }
 0x7f0   :  { %v1909_v56 = vmul.f32 %v5577_v63, %v1886_v2  ;;  %vm1915_vm11 = vweird.f32 %v5577_v63 }
 0x7f1   :  { %5578 = vrsqrt.f32 %v1887_v7  ;;  %vm1916_vm13 = vmor %vm1914_vm12, %vm1915_vm11  ;;  %vm1924_vm15 = vweird.f32 %v1887_v7 }
 0x7f2   :  { %v1910_v0 = vmul.f32 %v5577_v63, %v1909_v56 }
 0x7f4   :  { %v1911_v29 = vmul.f32 0.5, %v1910_v0 }
 0x7f6   :  { %v1912_v5 = vsub.f32 1.5, %v1911_v29 }
 0x7f7   :  { %v5579_v42 = vpop.eup %5578 }
 0x7f8   :  { %v1913_v58 = vmul.f32 %v5577_v63, %v1912_v5  ;;  %v1919_v39 = vmul.f32 %v5579_v42, %v1887_v7  ;;  %vm1925_vm14 = vweird.f32 %v5579_v42 }
 0x7f9   :  { %vm1926_vm4 = vmor %vm1924_vm15, %vm1925_vm14 }
 0x7fa   :  { %v1920_v6 = vmul.f32 %v5579_v42, %v1919_v39  ;;  %v1917_v14 = vsel %vm1916_vm13, %v5577_v63, %v1913_v58 }
 0x7fb   :  { %v1930_v17 = vmul.f32 %v1917_v14, %v6462_v4  ;;  %v4572_v4 = vld [vmem:[%s7010_s22 + $0x3] sm:$0x7]  ;;  %s7012_s22 = sld [smem:[#allocation19_spill]] }
 0x7fc   :  { %v1921_v20 = vmul.f32 0.5, %v1920_v6  ;;  %v1984_v12 = vperm.slane %v4572_v4, 0  ;;  %v1986_v46 = vperm.slane %v4572_v4, 2 }
 0x7fd   :  { %v1937_v27 = vmul.f32 %v5471_v43, %v1930_v17 }
 0x7fe   :  { %v1922_v16 = vsub.f32 1.5, %v1921_v20 }
 0x7ff   :  { %v6491_v51 = vadd.f32 %v5472_v3, %v1937_v27 }
 0x800   :  { %v1923_v21 = vmul.f32 %v5579_v42, %v1922_v16 }
 0x801   :  { %s4285_s28 = sshll.u32 %s7012_s22, 4  ;;  %s4286_s28 = int_to_ptr.hbm [resolvable:$true] %s4285_s28 }
 0x802   :  { %v1927_v23 = vsel %vm1926_vm4, %v5579_v42, %v1923_v21 }
 0x803   :  { %v1931_v25 = vmul.f32 %v1927_v23, %v6467_v62  ;;  %v1985_v62 = vperm.slane %v4572_v4, 1 }
 0x805   :  { %v1938_v61 = vmul.f32 %v5471_v43, %v1931_v25 }
 0x807   :  { %v6493_v57 = vadd.f32 %v5472_v3, %v1938_v61 }
 0x809   :  { %v1947_v30 = vpack.c.bf16 %v6493_v57, %v6491_v51 }
 0x80b   :  { %2131 = vmatmul.bf16.gmra.mxu1 %v1947_v30  ;;  %2150 = vmatmul.bf16.gmra.mxu2 %v1947_v30 }
 0x80c   :  { %2169 = vmatmul.bf16.gmra.mxu3 %v1947_v30 }
 0x845   :  { %v2127_v32 = vpop.f32.mrf.mxu1 }
 0x846   :  { %v2128_v48 = vadd.f32 %v2127_v32, %v1984_v12 }
 0x848   :  { %v2215_v36 = vpack.c.bf16 %v2128_v48, %v2128_v48 }
 0x84a   :  { %v2345_v38 = vunpack.c.l.b16 %v2215_v36 }
 0x84b   :  { %v2146_v54 = vpop.f32.mrf.mxu2 }
 0x84c   :  { %v2147_v34 = vadd.f32 %v2146_v54, %v1985_v62  ;;  %v2165_v26 = vpop.f32.mrf.mxu3 }
 0x84d   :  { %v2129_v10 = vpop.f32.mrf.mxu1  ;;  %v2166_v22 = vadd.f32 %v2165_v26, %v1986_v46 }
 0x84e   :  { %v2130_v49 = vadd.f32 %v2129_v10, %v1984_v12  ;;  %v2271_v53 = vpack.c.bf16 %v2147_v34, %v2147_v34 }
 0x84f   :  { %v2327_v63 = vpack.c.bf16 %v2166_v22, %v2166_v22 }
 0x850   :  { %v5352_v60 = vpack.i.bf16 %v2130_v49, %v2128_v48  ;;  %v2350_v52 = vunpack.c.l.b16 %v2271_v53  ;;  %v2216_v35 = vpack.c.bf16 %v2130_v49, %v2130_v49 }
 0x851   :  { %v2798_v20 = vunpack.c.l.b16 %v2327_v63 }
 0x852   :  { %5353 = vrot.lane.b32.xlu2 %v5352_v60, %s5825_s25  ;;  %v2346_v37 = vunpack.c.l.b16 %v2216_v35 }
 0x853   :  { %v2148_v15 = vpop.f32.mrf.mxu2 }
 0x854   :  { %v2149_v28 = vadd.f32 %v2148_v15, %v1985_v62  ;;  %v2347_v41 = vpack.c.b16 %v2346_v37, %v2345_v38  ;;  %v2167_v24 = vpop.f32.mrf.mxu3 }
 0x855   :  { %v2168_v33 = vadd.f32 %v2167_v24, %v1986_v46 }
 0x856   :  { %v5357_v13 = vpack.i.bf16 %v2149_v28, %v2147_v34  ;;  %v2272_v9 = vpack.c.bf16 %v2149_v28, %v2149_v28 }
 0x857   :  { %v2328_v40 = vpack.c.bf16 %v2168_v33, %v2168_v33  ;;  %v5407_v32 = vpack.i.bf16 %v2168_v33, %v2166_v22 }
 0x858   :  { %5358 = vrot.lane.b32.xlu0 %v5357_v13, %s5834_s2  ;;  %5348 = vrot.lane.b32.xlu1 %v5357_v13, %s5825_s25  ;;  %v2351_v44 = vunpack.c.l.b16 %v2272_v9 }
 0x859   :  { %v2799_v58 = vunpack.c.l.b16 %v2328_v40 }
 0x85a   :  { %v2352_v18 = vpack.c.b16 %v2351_v44, %v2350_v52 }
 0x85b   :  { %v2800_v27 = vpack.c.b16 %v2799_v58, %v2798_v20 }
 0x85c   :  { %v2357_v11 = vsel %vm536_vm0, %v2352_v18, 0 }
 0x85d   :  { %2366 = vmatpush.bf16.xpose.msrb.mxu0 %v2357_v11 }
 0x860   :  { %5368 = vrot.lane.b32.xlu1 %v5357_v13, %s5835_s23  ;;  %5363 = vrot.lane.b32.xlu0 %v5352_v60, %s5834_s2 }
 0x864   :  { %4669 = vmatmul.msk.bf16.vlgmr.msrb.gmra.mxu0 %vm536_vm0, %v2347_v41 }
 0x868   :  { %5373 = vrot.lane.b32.xlu1 %v5352_v60, %s5835_s23 }
 0x888   :  { %v2132_v43 = vpop.f32.mrf.mxu1 }
 0x889   :  { %v2133_v39 = vadd.f32 %v2132_v43, %v1984_v12 }
 0x88b   :  { %v2223_v23 = vpack.c.bf16 %v2133_v39, %v2133_v39 }
 0x88d   :  { %v2465_v54 = vunpack.c.l.b16 %v2223_v23 }
 0x88e   :  { %v2151_v45 = vpop.f32.mrf.mxu2 }
 0x88f   :  { %v2170_v47 = vpop.f32.mrf.mxu3  ;;  %v2152_v3 = vadd.f32 %v2151_v45, %v1985_v62 }
 0x890   :  { %v2134_v59 = vpop.f32.mrf.mxu1  ;;  %v2171_v7 = vadd.f32 %v2170_v47, %v1986_v46 }
 0x891   :  { %v2279_v55 = vpack.c.bf16 %v2152_v3, %v2152_v3  ;;  %v2135_v56 = vadd.f32 %v2134_v59, %v1984_v12 }
 0x892   :  { %v2335_v61 = vpack.c.bf16 %v2171_v7, %v2171_v7 }
 0x893   :  { %v2470_v6 = vunpack.c.l.b16 %v2279_v55  ;;  %v2224_v16 = vpack.c.bf16 %v2135_v56, %v2135_v56  ;;  %v5392_v4 = vpack.i.bf16 %v2135_v56, %v2133_v39 }
 0x895   :  { %v2466_v30 = vunpack.c.l.b16 %v2224_v16 }
 0x896   :  { %v2153_v8 = vpop.f32.mrf.mxu2 }
 0x897   :  { %v2154_v2 = vadd.f32 %v2153_v8, %v1985_v62  ;;  %v2172_v1 = vpop.f32.mrf.mxu3  ;;  %v2910_v62 = vunpack.c.l.b16 %v2335_v61  ;;  %v2467_v10 = vpack.c.b16 %v2466_v30, %v2465_v54 }
 0x898   :  { %v2173_v0 = vadd.f32 %v2172_v1, %v1986_v46 }
 0x899   :  { %v5397_v29 = vpack.i.bf16 %v2154_v2, %v2152_v3  ;;  %v2280_v5 = vpack.c.bf16 %v2154_v2, %v2154_v2 }
 0x89a   :  { %v6508_v42 = vpack.i.bf16 %v2173_v0, %v2171_v7  ;;  %v2336_v21 = vpack.c.bf16 %v2173_v0, %v2173_v0 }
 0x89b   :  { %5398 = vrot.lane.b32.xlu1 %v5397_v29, %s5835_s23  ;;  %5388 = vrot.lane.b32.xlu0 %v5397_v29, %s5834_s2  ;;  %v2471_v14 = vunpack.c.l.b16 %v2280_v5 }
 0x89c   :  { %5378 = vrot.lane.b32.xlu2 %v5397_v29, %s5825_s25  ;;  %v2911_v12 = vunpack.c.l.b16 %v2336_v21 }
 0x89d   :  { %v2472_v17 = vpack.c.b16 %v2471_v14, %v2470_v6 }
 0x89e   :  { %v2912_v48 = vpack.c.b16 %v2911_v12, %v2910_v62 }
 0x89f   :  { %v2477_v25 = vsel %vm536_vm0, %v2472_v17, 0 }
 0x8a0   :  { %2486 = vmatpush.bf16.xpose.msra.mxu0 %v2477_v25 }
 0x8a3   :  { %5408 = vrot.lane.b32.xlu1 %v5407_v32, %s5825_s25  ;;  %5393 = vrot.lane.b32.xlu0 %v5392_v4, %s5834_s2 }
 0x8a4   :  { %5383 = vrot.lane.b32.xlu2 %v5392_v4, %s5825_s25 }
 0x8a7   :  { %4673 = vmatmul.msk.bf16.vlgmr.msra.gmra.mxu0 %vm536_vm0, %v2467_v10 }
 0x8a8   :  { %2812 = vmatpush.bf16.msrb.mxu0 %v2800_v27 }
 0x8ab   :  { %5413 = vrot.lane.b32.xlu0 %v5407_v32, %s5834_s2 }
 0x8ac   :  { %2924 = vmatpush.bf16.msra.mxu0 %v2912_v48  ;;  %5403 = vrot.lane.b32.xlu2 %v5392_v4, %s5835_s23  ;;  %v5354_v60 = vpop.permute.xlu2 %5353 }
 0x8ad   :  { %v5356_v18 = vunpack.i.h.bf16 %v5354_v60  ;;  %v5355_v36 = vunpack.i.l.bf16 %v5354_v60 }
 0x8af   :  { %v2220_v43 = vpack.c.bf16 %v5356_v18, %v5356_v18  ;;  %v2219_v45 = vpack.c.bf16 %v5355_v36, %v5355_v36 }
 0x8b1   :  { %v2406_v7 = vunpack.c.l.b16 %v2220_v43  ;;  %v2405_v56 = vunpack.c.l.b16 %v2219_v45 }
 0x8b3   :  { %v2407_v14 = vpack.c.b16 %v2406_v7, %v2405_v56 }
 0x8b4   :  { %5418 = vrot.lane.b32.xlu2 %v5407_v32, %s5835_s23 }
 0x8ca   :  { %v5349_v49 = vpop.permute.xlu1 %5348  ;;  %v5359_v34 = vpop.permute.xlu0 %5358 }
 0x8cb   :  { %v5351_v15 = vunpack.i.h.bf16 %v5349_v49  ;;  %v5350_v28 = vunpack.i.l.bf16 %v5349_v49  ;;  %v5361_v53 = vunpack.i.h.bf16 %v5359_v34  ;;  %v5360_v13 = vunpack.i.l.bf16 %v5359_v34 }
 0x8cd   :  { %v2276_v9 = vpack.c.bf16 %v5351_v15, %v5351_v15  ;;  %v2275_v52 = vpack.c.bf16 %v5350_v28, %v5350_v28  ;;  %v2278_v44 = vpack.c.bf16 %v5361_v53, %v5361_v53  ;;  %v2277_v35 = vpack.c.bf16 %v5360_v13, %v5360_v13 }
 0x8cf   :  { %v2411_v11 = vunpack.c.l.b16 %v2276_v9  ;;  %v2410_v37 = vunpack.c.l.b16 %v2275_v52  ;;  %v2441_v38 = vunpack.c.l.b16 %v2278_v44  ;;  %v2440_v41 = vunpack.c.l.b16 %v2277_v35 }
 0x8d1   :  { %v2412_v26 = vpack.c.b16 %v2411_v11, %v2410_v37  ;;  %v2442_v24 = vpack.c.b16 %v2441_v38, %v2440_v41 }
 0x8d2   :  { %v5369_v47 = vpop.permute.xlu1 %5368  ;;  %v5364_v46 = vpop.permute.xlu0 %5363 }
 0x8d3   :  { %v5371_v33 = vunpack.i.h.bf16 %v5369_v47  ;;  %v5370_v3 = vunpack.i.l.bf16 %v5369_v47  ;;  %v5366_v22 = vunpack.i.h.bf16 %v5364_v46  ;;  %v5365_v59 = vunpack.i.l.bf16 %v5364_v46 }
 0x8d4   :  { %v2417_v8 = vsel %vm536_vm0, %v2412_v26, 0  ;;  %v2447_v40 = vsel %vm536_vm0, %v2442_v24, 0 }
 0x8d5   :  { %v2274_v2 = vpack.c.bf16 %v5371_v33, %v5371_v33  ;;  %v2273_v1 = vpack.c.bf16 %v5370_v3, %v5370_v3  ;;  %v2222_v55 = vpack.c.bf16 %v5366_v22, %v5366_v22  ;;  %v2221_v63 = vpack.c.bf16 %v5365_v59, %v5365_v59  ;;  %2426 = vmatpush.bf16.xpose.msrb.mxu2 %v2417_v8 }
 0x8d6   :  { %2456 = vmatpush.bf16.xpose.msra.mxu3 %v2447_v40 }
 0x8d7   :  { %v2381_v0 = vunpack.c.l.b16 %v2274_v2  ;;  %v2380_v29 = vunpack.c.l.b16 %v2273_v1  ;;  %v2436_v5 = vunpack.c.l.b16 %v2222_v55  ;;  %v2435_v58 = vunpack.c.l.b16 %v2221_v63 }
 0x8d9   :  { %v2382_v39 = vpack.c.b16 %v2381_v0, %v2380_v29  ;;  %v2437_v6 = vpack.c.b16 %v2436_v5, %v2435_v58 }
 0x8da   :  { %v5374_v20 = vpop.permute.xlu1 %5373 }
 0x8db   :  { %v5376_v16 = vunpack.i.h.bf16 %v5374_v20  ;;  %v5375_v17 = vunpack.i.l.bf16 %v5374_v20  ;;  %v2387_v21 = vsel %vm536_vm0, %v2382_v39, 0 }
 0x8dc   :  { %4671 = vmatmul.msk.bf16.vlgmr.msrb.gmra.mxu2 %vm536_vm0, %v2407_v14  ;;  %2396 = vmatpush.bf16.xpose.msrb.mxu1 %v2387_v21 }
 0x8dd   :  { %v2218_v23 = vpack.c.bf16 %v5376_v16, %v5376_v16  ;;  %v2217_v25 = vpack.c.bf16 %v5375_v17, %v5375_v17  ;;  %4672 = vmatmul.msk.bf16.vlgmr.msra.gmra.mxu3 %vm536_vm0, %v2437_v6 }
 0x8df   :  { %v2376_v27 = vunpack.c.l.b16 %v2218_v23  ;;  %v2375_v61 = vunpack.c.l.b16 %v2217_v25 }
 0x8e1   :  { %v2377_v30 = vpack.c.b16 %v2376_v27, %v2375_v61  ;;  %v2368_v32 = vpop.f32.mrf.mxu0 }
 0x8e2   :  { %v6526_v4 = vmul.f32 0.17677669, %v2368_v32 }
 0x8e3   :  { %4670 = vmatmul.msk.bf16.vlgmr.msrb.gmra.mxu1 %vm536_vm0, %v2377_v30 }
 0x8e4   :  { %v2599_v12 = vsel %vm783_vm1, %v6526_v4, -inf }
 0x8e5   :  { %2600 = vmax.xlane.f32.xlu0 %v2599_v12 }
 0x8e9   :  { %v2370_v54 = vpop.f32.mrf.mxu0 }
 0x8ea   :  { %v6531_v62 = vmul.f32 0.17677669, %v2370_v54 }
 0x8ec   :  { %v2602_v10 = vsel %vm783_vm1, %v6531_v62, -inf }
 0x8ed   :  { %2603 = vmax.xlane.f32.xlu2 %v2602_v10 }
 0x8f6   :  { %v5379_v48 = vpop.permute.xlu2 %5378 }
 0x8f7   :  { %v5381_v49 = vunpack.i.h.bf16 %v5379_v48  ;;  %v5380_v34 = vunpack.i.l.bf16 %v5379_v48 }
 0x8f9   :  { %v2284_v60 = vpack.c.bf16 %v5381_v49, %v5381_v49  ;;  %v2283_v15 = vpack.c.bf16 %v5380_v34, %v5380_v34 }
 0x8fb   :  { %v2531_v28 = vunpack.c.l.b16 %v2284_v60  ;;  %v2530_v53 = vunpack.c.l.b16 %v2283_v15 }
 0x8fd   :  { %v2532_v13 = vpack.c.b16 %v2531_v28, %v2530_v53 }
 0x8fe   :  { %v5384_v9 = vpop.permute.xlu2 %5383 }
 0x8ff   :  { %v5386_v52 = vunpack.i.h.bf16 %v5384_v9  ;;  %v5385_v44 = vunpack.i.l.bf16 %v5384_v9  ;;  %v2537_v35 = vsel %vm536_vm0, %v2532_v13, 0 }
 0x900   :  { %2546 = vmatpush.bf16.xpose.msra.mxu2 %v2537_v35 }
 0x901   :  { %v2228_v18 = vpack.c.bf16 %v5386_v52, %v5386_v52  ;;  %v2227_v36 = vpack.c.bf16 %v5385_v44, %v5385_v44 }
 0x903   :  { %v2526_v11 = vunpack.c.l.b16 %v2228_v18  ;;  %v2525_v37 = vunpack.c.l.b16 %v2227_v36 }
 0x905   :  { %v2527_v38 = vpack.c.b16 %v2526_v11, %v2525_v37 }
 0x906   :  { %v5404_v41 = vpop.permute.xlu2 %5403 }
 0x907   :  { %4675 = vmatmul.msk.bf16.vlgmr.msra.gmra.mxu2 %vm536_vm0, %v2527_v38  ;;  %v5406_v1 = vunpack.i.h.bf16 %v5404_v41  ;;  %v5405_v55 = vunpack.i.l.bf16 %v5404_v41 }
 0x909   :  { %v2226_v20 = vpack.c.bf16 %v5406_v1, %v5406_v1  ;;  %v2225_v16 = vpack.c.bf16 %v5405_v55, %v5405_v55 }
 0x90b   :  { %v2496_v34 = vunpack.c.l.b16 %v2226_v20  ;;  %v2495_v60 = vunpack.c.l.b16 %v2225_v16 }
 0x90d   :  { %v5399_v26 = vpop.permute.xlu1 %5398  ;;  %v5389_v24 = vpop.permute.xlu0 %5388  ;;  %v2497_v44 = vpack.c.b16 %v2496_v34, %v2495_v60 }
 0x90e   :  { %v5401_v43 = vunpack.i.h.bf16 %v5399_v26  ;;  %v5400_v45 = vunpack.i.l.bf16 %v5399_v26  ;;  %v5419_v47 = vpop.permute.xlu2 %5418  ;;  %v5391_v46 = vunpack.i.h.bf16 %v5389_v24  ;;  %v5390_v33 = vunpack.i.l.bf16 %v5389_v24 }
 0x90f   :  { %v5421_v3 = vunpack.i.h.bf16 %v5419_v47  ;;  %v5420_v22 = vunpack.i.l.bf16 %v5419_v47 }
 0x910   :  { %v2282_v59 = vpack.c.bf16 %v5401_v43, %v5401_v43  ;;  %v2281_v8 = vpack.c.bf16 %v5400_v45, %v5400_v45  ;;  %v2286_v40 = vpack.c.bf16 %v5391_v46, %v5391_v46  ;;  %v2285_v2 = vpack.c.bf16 %v5390_v33, %v5390_v33 }
 0x911   :  { %v2330_v63 = vpack.c.bf16 %v5421_v3, %v5421_v3  ;;  %v2329_v7 = vpack.c.bf16 %v5420_v22, %v5420_v22 }
 0x912   :  { %v2501_v56 = vunpack.c.l.b16 %v2282_v59  ;;  %v2500_v0 = vunpack.c.l.b16 %v2281_v8  ;;  %v2561_v29 = vunpack.c.l.b16 %v2286_v40  ;;  %v2560_v5 = vunpack.c.l.b16 %v2285_v2 }
 0x913   :  { %v2827_v58 = vunpack.c.l.b16 %v2330_v63  ;;  %v2826_v39 = vunpack.c.l.b16 %v2329_v7 }
 0x914   :  { %v2502_v6 = vpack.c.b16 %v2501_v56, %v2500_v0  ;;  %v2562_v14 = vpack.c.b16 %v2561_v29, %v2560_v5 }
 0x915   :  { %v5409_v17 = vpop.permute.xlu1 %5408  ;;  %v5394_v21 = vpop.permute.xlu0 %5393  ;;  %v2828_v30 = vpack.c.b16 %v2827_v58, %v2826_v39 }
 0x916   :  { %v5411_v23 = vunpack.i.h.bf16 %v5409_v17  ;;  %v5410_v25 = vunpack.i.l.bf16 %v5409_v17  ;;  %v5396_v27 = vunpack.i.h.bf16 %v5394_v21  ;;  %v5395_v61 = vunpack.i.l.bf16 %v5394_v21 }
 0x917   :  { %v2507_v32 = vsel %vm536_vm0, %v2502_v6, 0  ;;  %v2567_v12 = vsel %vm536_vm0, %v2562_v14, 0 }
 0x918   :  { %v2332_v54 = vpack.c.bf16 %v5411_v23, %v5411_v23  ;;  %v2331_v10 = vpack.c.bf16 %v5410_v25, %v5410_v25  ;;  %v2230_v48 = vpack.c.bf16 %v5396_v27, %v5396_v27  ;;  %v2229_v49 = vpack.c.bf16 %v5395_v61, %v5395_v61  ;;  %2516 = vmatpush.bf16.xpose.msra.mxu1 %v2507_v32 }
 0x919   :  { %2576 = vmatpush.bf16.xpose.msrb.mxu3 %v2567_v12 }
 0x91a   :  { %v2855_v15 = vunpack.c.l.b16 %v2332_v54  ;;  %v2854_v28 = vunpack.c.l.b16 %v2331_v10  ;;  %v2556_v53 = vunpack.c.l.b16 %v2230_v48  ;;  %v2555_v13 = vunpack.c.l.b16 %v2229_v49 }
 0x91c   :  { %v2856_v9 = vpack.c.b16 %v2855_v15, %v2854_v28  ;;  %v2557_v52 = vpack.c.b16 %v2556_v53, %v2555_v13 }
 0x91d   :  { %v5414_v35 = vpop.permute.xlu0 %5413 }
 0x91e   :  { %v5416_v18 = vunpack.i.h.bf16 %v5414_v35  ;;  %v5415_v36 = vunpack.i.l.bf16 %v5414_v35  ;;  %2868 = vmatpush.bf16.msrb.mxu2 %v2856_v9 }
 0x91f   :  { %4674 = vmatmul.msk.bf16.vlgmr.msra.gmra.mxu1 %vm536_vm0, %v2497_v44 }
 0x920   :  { %2840 = vmatpush.bf16.msrb.mxu1 %v2828_v30  ;;  %v2334_v11 = vpack.c.bf16 %v5416_v18, %v5416_v18  ;;  %v2333_v37 = vpack.c.bf16 %v5415_v36, %v5415_v36  ;;  %4676 = vmatmul.msk.bf16.vlgmr.msrb.gmra.mxu3 %vm536_vm0, %v2557_v52 }
 0x922   :  { %v2883_v38 = vunpack.c.l.b16 %v2334_v11  ;;  %v2882_v41 = vunpack.c.l.b16 %v2333_v37 }
 0x924   :  { %v2884_v26 = vpack.c.b16 %v2883_v38, %v2882_v41  ;;  %v2488_v24 = vpop.f32.mrf.mxu0 }
 0x925   :  { %v6541_v43 = vmul.f32 0.17677669, %v2488_v24 }
 0x926   :  { %2896 = vmatpush.bf16.msra.mxu3 %v2884_v26 }
 0x927   :  { %v2623_v45 = vsel %vm783_vm1, %v6541_v43, -inf }
 0x928   :  { %2624 = vmax.xlane.f32.xlu2 %v2623_v45 }
 0x92c   :  { %v2490_v47 = vpop.f32.mrf.mxu0 }
 0x92d   :  { %v6545_v46 = vmul.f32 0.17677669, %v2490_v47 }
 0x92f   :  { %v2626_v33 = vsel %vm783_vm1, %v6545_v46, -inf }
 0x930   :  { %2627 = vmax.xlane.f32.xlu2 %v2626_v33 }
 0x958   :  { %v6586_v13 = vpop.xlane.xlu0 %2600 }
 0x95f   :  { %v2428_v3 = vpop.f32.mrf.mxu2 }
 0x960   :  { %v2587_v22 = vmul.f32 0.17677669, %v2428_v3  ;;  %v2458_v59 = vpop.f32.mrf.mxu3  ;;  %v2398_v8 = vpop.f32.mrf.mxu1 }
 0x961   :  { %v2585_v40 = vmul.f32 0.17677669, %v2398_v8  ;;  %v2589_v55 = vmul.f32 0.17677669, %v2458_v59  ;;  %v6582_v28 = vpop.xlane.xlu2 %2603 }
 0x962   :  { %v2611_v2 = vsel %vm783_vm1, %v2587_v22, -inf }
 0x963   :  { %2612 = vmax.xlane.f32.xlu0 %v2611_v2  ;;  %v2605_v1 = vsel %vm783_vm1, %v2585_v40, -inf  ;;  %v2617_v39 = vsel %vm783_vm1, %v2589_v55, -inf }
 0x964   :  { %2606 = vmax.xlane.f32.xlu2 %v2605_v1 }
 0x967   :  { %v2430_v58 = vpop.f32.mrf.mxu2 }
 0x968   :  { %v2460_v63 = vpop.f32.mrf.mxu3  ;;  %v2400_v7 = vpop.f32.mrf.mxu1  ;;  %v2588_v6 = vmul.f32 0.17677669, %v2430_v58 }
 0x969   :  { %v2590_v56 = vmul.f32 0.17677669, %v2460_v63  ;;  %v6551_v0 = vmul.f32 0.17677669, %v2400_v7 }
 0x96a   :  { %v2614_v14 = vsel %vm783_vm1, %v2588_v6, -inf }
 0x96b   :  { %v2620_v29 = vsel %vm783_vm1, %v2590_v56, -inf  ;;  %v2608_v5 = vsel %vm783_vm1, %v6551_v0, -inf }
 0x96c   :  { %2621 = vmax.xlane.f32.xlu0 %v2620_v29  ;;  %2609 = vmax.xlane.f32.xlu1 %v2608_v5 }
 0x96d   :  { %2618 = vmax.xlane.f32.xlu2 %v2617_v39 }
 0x974   :  { %2615 = vmax.xlane.f32.xlu1 %v2614_v14 }
 0x98a   :  { %v2548_v20 = vpop.f32.mrf.mxu2 }
 0x98b   :  { %v6558_v16 = vmul.f32 0.17677669, %v2548_v20 }
 0x98d   :  { %v2635_v17 = vsel %vm783_vm1, %v6558_v16, -inf }
 0x98e   :  { %2636 = vmax.xlane.f32.xlu0 %v2635_v17 }
 0x992   :  { %v2550_v27 = vpop.f32.mrf.mxu2 }
 0x993   :  { %v6566_v61 = vmul.f32 0.17677669, %v2550_v27 }
 0x995   :  { %v2638_v10 = vsel %vm783_vm1, %v6566_v61, -inf }
 0x99b   :  { %v6584_v53 = vpop.xlane.xlu2 %2624 }
 0x99c   :  { %v2518_v21 = vpop.f32.mrf.mxu1 }
 0x99d   :  { %v6562_v23 = vmul.f32 0.17677669, %v2518_v21 }
 0x99f   :  { %v2629_v25 = vsel %vm783_vm1, %v6562_v23, -inf }
 0x9a0   :  { %2630 = vmax.xlane.f32.xlu2 %v2629_v25 }
 0x9a3   :  { %v2578_v30 = vpop.f32.mrf.mxu3  ;;  %v6588_v9 = vpop.xlane.xlu2 %2627 }
 0x9a4   :  { %v6568_v32 = vmul.f32 0.17677669, %v2578_v30  ;;  %v2520_v54 = vpop.f32.mrf.mxu1 }
 0x9a5   :  { %v6574_v48 = vmul.f32 0.17677669, %v2520_v54 }
 0x9a6   :  { %v2641_v12 = vsel %vm783_vm1, %v6568_v32, -inf }
 0x9a7   :  { %2642 = vmax.xlane.f32.xlu1 %v2641_v12  ;;  %v2632_v60 = vsel %vm783_vm1, %v6574_v48, -inf }
 0x9a8   :  { %2639 = vmax.xlane.f32.xlu2 %v2638_v10 }
 0x9ab   :  { %v2580_v49 = vpop.f32.mrf.mxu3 }
 0x9ac   :  { %v6576_v34 = vmul.f32 0.17677669, %v2580_v49 }
 0x9ae   :  { %v2644_v15 = vsel %vm783_vm1, %v6576_v34, -inf }
 0x9af   :  { %2633 = vmax.xlane.f32.xlu1 %v2632_v60  ;;  %2645 = vmax.xlane.f32.xlu0 %v2644_v15 }
 0x9d6   :  { %v2613_v52 = vpop.xlane.xlu0 %2612 }
 0x9d7   :  { %v2651_v44 = vsub.f32 %v2587_v22, %v2613_v52  ;;  %v2607_v35 = vpop.xlane.xlu2 %2606 }
 0x9d8   :  { %v2649_v18 = vsub.f32 %v2585_v40, %v2607_v35 }
 0x9d9   :  { %v2671_v36 = vmul.f32 1.442695, %v2651_v44 }
 0x9da   :  { %v2667_v11 = vmul.f32 1.442695, %v2649_v18 }
 0x9db   :  { %5580 = vpow2.f32 %v2671_v36 }
 0x9dc   :  { %5582 = vpow2.f32 %v2667_v11 }
 0x9df   :  { %v2622_v37 = vpop.xlane.xlu0 %2621  ;;  %v2610_v38 = vpop.xlane.xlu1 %2609 }
 0x9e0   :  { %v2654_v41 = vsub.f32 %v2590_v56, %v2622_v37  ;;  %v2619_v26 = vpop.xlane.xlu2 %2618  ;;  %v2650_v22 = vsub.f32 %v6551_v0, %v2610_v38 }
 0x9e1   :  { %v6590_v24 = vpop.eup %5580  ;;  %v2653_v45 = vsub.f32 %v2589_v55, %v2619_v26 }
 0x9e2   :  { %v6592_v47 = vpop.eup %5582  ;;  %v2677_v33 = vmul.f32 1.442695, %v2654_v41  ;;  %v2707_v3 = vsel %vm783_vm1, %v6590_v24, 0.0  ;;  %v2669_v40 = vmul.f32 1.442695, %v2650_v22 }
 0x9e3   :  { %v2675_v59 = vmul.f32 1.442695, %v2653_v45  ;;  %2708 = vadd.xlane.f32.xlu1 %v2707_v3  ;;  %v2701_v8 = vsel %vm783_vm1, %v6592_v47, 0.0  ;;  %v2655_v45 = vsub.f32 %v6541_v43, %v6584_v53  ;;  %v2647_v3 = vsub.f32 %v6526_v4, %v6586_v13 }
 0x9e4   :  { %5584 = vpow2.f32 %v2677_v33  ;;  %2702 = vadd.xlane.f32.xlu0 %v2701_v8  ;;  %v2656_v8 = vsub.f32 %v6545_v46, %v6588_v9 }
 0x9e5   :  { %5586 = vpow2.f32 %v2675_v59  ;;  %v2679_v22 = vmul.f32 1.442695, %v2655_v45  ;;  %v2663_v59 = vmul.f32 1.442695, %v2647_v3 }
 0x9e6   :  { %5588 = vpow2.f32 %v2669_v40  ;;  %v2681_v53 = vmul.f32 1.442695, %v2656_v8 }
 0x9e7   :  { %v2616_v2 = vpop.xlane.xlu1 %2615 }
 0x9e8   :  { %v2652_v1 = vsub.f32 %v2588_v6, %v2616_v2 }
 0x9ea   :  { %v6599_v55 = vpop.eup %5584  ;;  %v2673_v63 = vmul.f32 1.442695, %v2652_v1 }
 0x9eb   :  { %v2716_v7 = vsel %vm783_vm1, %v6599_v55, 0.0  ;;  %v6603_v56 = vpop.eup %5586 }
 0x9ec   :  { %5590 = vpow2.f32 %v2673_v63  ;;  %2717 = vadd.xlane.f32.xlu1 %v2716_v7  ;;  %v2713_v0 = vsel %vm783_vm1, %v6603_v56, 0.0  ;;  %v6607_v29 = vpop.eup %5588 }
 0x9ed   :  { %2714 = vadd.xlane.f32.xlu2 %v2713_v0  ;;  %v2704_v39 = vsel %vm783_vm1, %v6607_v29, 0.0 }
 0x9f2   :  { %v6609_v5 = vpop.eup %5590 }
 0x9f3   :  { %v2710_v58 = vsel %vm783_vm1, %v6609_v5, 0.0 }
 0x9f4   :  { %2711 = vadd.xlane.f32.xlu0 %v2710_v58 }
 0x9f5   :  { %2705 = vadd.xlane.f32.xlu2 %v2704_v39 }
 0xa01   :  { %v2637_v6 = vpop.xlane.xlu0 %2636 }
 0xa02   :  { %v2659_v14 = vsub.f32 %v6558_v16, %v2637_v6 }
 0xa04   :  { %v2687_v20 = vmul.f32 1.442695, %v2659_v14 }
 0xa06   :  { %5592 = vpow2.f32 %v2687_v20 }
 0xa0c   :  { %v6616_v17 = vpop.eup %5592 }
 0xa0d   :  { %v2731_v21 = vsel %vm783_vm1, %v6616_v17, 0.0 }
 0xa0e   :  { %2732 = vadd.xlane.f32.xlu0 %v2731_v21 }
 0xa13   :  { %v2631_v25 = vpop.xlane.xlu2 %2630 }
 0xa14   :  { %v2657_v27 = vsub.f32 %v6562_v23, %v2631_v25 }
 0xa16   :  { %v2683_v30 = vmul.f32 1.442695, %v2657_v27 }
 0xa18   :  { %5594 = vpow2.f32 %v2683_v30 }
 0xa1a   :  { %v2643_v12 = vpop.xlane.xlu1 %2642 }
 0xa1b   :  { %v2661_v54 = vsub.f32 %v6568_v32, %v2643_v12  ;;  %v2640_v10 = vpop.xlane.xlu2 %2639 }
 0xa1c   :  { %v2660_v49 = vsub.f32 %v6566_v61, %v2640_v10 }
 0xa1d   :  { %v2691_v16 = vmul.f32 1.442695, %v2661_v54 }
 0xa1e   :  { %v6623_v60 = vpop.eup %5594  ;;  %v2689_v15 = vmul.f32 1.442695, %v2660_v49 }
 0xa1f   :  { %5596 = vpow2.f32 %v2691_v16  ;;  %v2725_v52 = vsel %vm783_vm1, %v6623_v60, 0.0 }
 0xa20   :  { %5598 = vpow2.f32 %v2689_v15  ;;  %2726 = vadd.xlane.f32.xlu1 %v2725_v52 }
 0xa22   :  { %v2634_v44 = vpop.xlane.xlu1 %2633  ;;  %v2646_v23 = vpop.xlane.xlu0 %2645 }
 0xa23   :  { %v2658_v35 = vsub.f32 %v6574_v48, %v2634_v44  ;;  %v2662_v36 = vsub.f32 %v6576_v34, %v2646_v23 }
 0xa25   :  { %v6628_v18 = vpop.eup %5596  ;;  %v2685_v32 = vmul.f32 1.442695, %v2658_v35  ;;  %v2693_v38 = vmul.f32 1.442695, %v2662_v36 }
 0xa26   :  { %v6631_v61 = vpop.eup %5598  ;;  %v2737_v11 = vsel %vm783_vm1, %v6628_v18, 0.0 }
 0xa27   :  { %5600 = vpow2.f32 %v2685_v32  ;;  %2738 = vadd.xlane.f32.xlu2 %v2737_v11  ;;  %v2734_v37 = vsel %vm783_vm1, %v6631_v61, 0.0 }
 0xa28   :  { %2735 = vadd.xlane.f32.xlu1 %v2734_v37  ;;  %5602 = vpow2.f32 %v2693_v38 }
 0xa29   :  { %5604 = vpow2.f32 %v2679_v22 }
 0xa2a   :  { %5606 = vpow2.f32 %v2663_v59 }
 0xa2d   :  { %v6637_v41 = vpop.eup %5600 }
 0xa2e   :  { %v2728_v48 = vsel %vm783_vm1, %v6637_v41, 0.0  ;;  %v6641_v34 = vpop.eup %5602 }
 0xa2f   :  { %2729 = vadd.xlane.f32.xlu0 %v2728_v48  ;;  %v2740_v26 = vsel %vm783_vm1, %v6641_v34, 0.0  ;;  %v6659_v43 = vpop.eup %5604 }
 0xa30   :  { %v6661_v4 = vpop.eup %5606  ;;  %v2719_v46 = vsel %vm783_vm1, %v6659_v43, 0.0 }
 0xa31   :  { %v2695_v6 = vsel %vm783_vm1, %v6661_v4, 0.0 }
 0xa37   :  { %2741 = vadd.xlane.f32.xlu0 %v2740_v26 }
 0xa3f   :  { %5433 = vrot.lane.b32.xlu2 %v6508_v42, %s5835_s23 }
 0xa41   :  { %5423 = vrot.lane.b32.xlu1 %v6508_v42, %s5825_s25 }
 0xa4b   :  { %5428 = vrot.lane.b32.xlu0 %v6508_v42, %s5834_s2  ;;  %v2648_v42 = vsub.f32 %v6531_v62, %v6582_v28 }
 0xa4d   :  { %v2665_v13 = vmul.f32 1.442695, %v2648_v42 }
 0xa56   :  { %v2709_v33 = vpop.xlane.xlu1 %2708 }
 0xa57   :  { %v2703_v40 = vpop.xlane.xlu0 %2702 }
 0xa5f   :  { %v2718_v2 = vpop.xlane.xlu1 %2717 }
 0xa60   :  { %5608 = vrcp.f32 %v2718_v2  ;;  %v2715_v1 = vpop.xlane.xlu2 %2714 }
 0xa61   :  { %5610 = vrcp.f32 %v2709_v33 }
 0xa62   :  { %5612 = vrcp.f32 %v2715_v1 }
 0xa63   :  { %5614 = vrcp.f32 %v2703_v40 }
 0xa64   :  { %5616 = vpow2.f32 %v2681_v53 }
 0xa66   :  { %v5609_v63 = vpop.eup %5608 }
 0xa67   :  { %v5611_v9 = vpop.eup %5610  ;;  %v2766_v7 = vmul.f32 %v5609_v63, %v6599_v55  ;;  %v2712_v62 = vpop.xlane.xlu0 %2711 }
 0xa68   :  { %2720 = vadd.xlane.f32.xlu2 %v2719_v46  ;;  %v5613_v28 = vpop.eup %5612  ;;  %5618 = vrcp.f32 %v2712_v62  ;;  %v2706_v39 = vpop.xlane.xlu2 %2705  ;;  %v2763_v20 = vmul.f32 %v5611_v9, %v6590_v24 }
 0xa69   :  { %5620 = vpow2.f32 %v2665_v13  ;;  %v2782_v0 = vpack.c.bf16 %v2766_v7, %v2766_v7  ;;  %v2765_v58 = vmul.f32 %v5613_v28, %v6603_v56  ;;  %v5615_v14 = vpop.eup %5614 }
 0xa6a   :  { %5622 = vrcp.f32 %v2706_v39  ;;  %v6670_v25 = vpop.eup %5616  ;;  %v2761_v55 = vmul.f32 %v5615_v14, %v6592_v47  ;;  %v2779_v56 = vpack.c.bf16 %v2763_v20, %v2763_v20 }
 0xa6b   :  { %2696 = vadd.xlane.f32.xlu1 %v2695_v6  ;;  %v2781_v21 = vpack.c.bf16 %v2765_v58, %v2765_v58  ;;  %v2878_v27 = vunpack.c.l.b16 %v2782_v0  ;;  %v2722_v24 = vsel %vm783_vm1, %v6670_v25, 0.0 }
 0xa6c   :  { %v2777_v15 = vpack.c.bf16 %v2761_v55, %v2761_v55  ;;  %v2849_v47 = vunpack.c.l.b16 %v2779_v56 }
 0xa6d   :  { %v2877_v30 = vunpack.c.l.b16 %v2781_v21 }
 0xa6e   :  { %v5619_v12 = vpop.eup %5618  ;;  %v2821_v36 = vunpack.c.l.b16 %v2777_v15 }
 0xa6f   :  { %v6673_v54 = vpop.eup %5620  ;;  %v2879_v10 = vpack.c.b16 %v2878_v27, %v2877_v30  ;;  %v2764_v49 = vmul.f32 %v5619_v12, %v6609_v5 }
 0xa70   :  { %v5623_v16 = vpop.eup %5622  ;;  %v2698_v32 = vsel %vm783_vm1, %v6673_v54, 0.0 }
 0xa71   :  { %v2762_v52 = vmul.f32 %v5623_v16, %v6607_v29  ;;  %v2780_v44 = vpack.c.bf16 %v2764_v49, %v2764_v49  ;;  %4680 = vmatmul.msk.bf16.vlgmr.msra.gmra.mxu3 %vm783_vm1, %v2879_v10 }
 0xa73   :  { %2723 = vadd.xlane.f32.xlu1 %v2722_v24  ;;  %v2778_v23 = vpack.c.bf16 %v2762_v52, %v2762_v52  ;;  %v2850_v35 = vunpack.c.l.b16 %v2780_v44 }
 0xa75   :  { %2699 = vadd.xlane.f32.xlu0 %v2698_v32  ;;  %v2822_v5 = vunpack.c.l.b16 %v2778_v23  ;;  %v2851_v11 = vpack.c.b16 %v2850_v35, %v2849_v47 }
 0xa77   :  { %v2823_v37 = vpack.c.b16 %v2822_v5, %v2821_v36  ;;  %4679 = vmatmul.msk.bf16.vlgmr.msrb.gmra.mxu2 %vm783_vm1, %v2851_v11 }
 0xa79   :  { %4678 = vmatmul.msk.bf16.vlgmr.msrb.gmra.mxu1 %vm783_vm1, %v2823_v37 }
 0xa81   :  { %v2733_v29 = vpop.xlane.xlu0 %2732 }
 0xa93   :  { %v2727_v38 = vpop.xlane.xlu1 %2726 }
 0xa94   :  { %5624 = vrcp.f32 %v2727_v38 }
 0xa9a   :  { %v2739_v48 = vpop.xlane.xlu2 %2738  ;;  %v5625_v33 = vpop.eup %5624 }
 0xa9b   :  { %v2736_v59 = vpop.xlane.xlu1 %2735  ;;  %v2769_v2 = vmul.f32 %v5625_v33, %v6623_v60 }
 0xa9d   :  { %v2785_v63 = vpack.c.bf16 %v2769_v2, %v2769_v2 }
 0xa9f   :  { %v2933_v62 = vunpack.c.l.b16 %v2785_v63 }
 0xaa2   :  { %v5434_v26 = vpop.permute.xlu2 %5433  ;;  %v2730_v45 = vpop.xlane.xlu0 %2729 }
 0xaa3   :  { %v5436_v3 = vunpack.i.h.bf16 %v5434_v26  ;;  %v5435_v22 = vunpack.i.l.bf16 %v5434_v26  ;;  %5626 = vrcp.f32 %v2730_v45 }
 0xaa4   :  { %5628 = vrcp.f32 %v2736_v59 }
 0xaa5   :  { %v2338_v8 = vpack.c.bf16 %v5436_v3, %v5436_v3  ;;  %v2337_v40 = vpack.c.bf16 %v5435_v22, %v5435_v22  ;;  %5630 = vrcp.f32 %v2733_v29 }
 0xaa7   :  { %v2939_v42 = vunpack.c.l.b16 %v2338_v8  ;;  %v2938_v1 = vunpack.c.l.b16 %v2337_v40 }
 0xaa9   :  { %v5627_v53 = vpop.eup %5626  ;;  %v2940_v13 = vpack.c.b16 %v2939_v42, %v2938_v1 }
 0xaaa   :  { %v2770_v46 = vmul.f32 %v5627_v53, %v6637_v41  ;;  %v5629_v7 = vpop.eup %5628  ;;  %v2742_v0 = vpop.xlane.xlu0 %2741 }
 0xaab   :  { %2952 = vmatpush.bf16.msra.mxu1 %v2940_v13  ;;  %v5631_v58 = vpop.eup %5630  ;;  %v2772_v6 = vmul.f32 %v5629_v7, %v6631_v61  ;;  %5632 = vrcp.f32 %v2742_v0 }
 0xaac   :  { %v2786_v9 = vpack.c.bf16 %v2770_v46, %v2770_v46  ;;  %v2771_v60 = vmul.f32 %v5631_v58, %v6616_v17  ;;  %5634 = vrcp.f32 %v2739_v48 }
 0xaad   :  { %v2788_v41 = vpack.c.bf16 %v2772_v6, %v2772_v6 }
 0xaae   :  { %v2934_v28 = vunpack.c.l.b16 %v2786_v9  ;;  %v2787_v30 = vpack.c.bf16 %v2771_v60, %v2771_v60 }
 0xaaf   :  { %v2962_v49 = vunpack.c.l.b16 %v2788_v41 }
 0xab0   :  { %v2935_v39 = vpack.c.b16 %v2934_v28, %v2933_v62  ;;  %v2961_v61 = vunpack.c.l.b16 %v2787_v30  ;;  %v5138_v30 = vld [vmem:[%s7011_s24 + $0x70] sm:$0xff] }
 0xab1   :  { %v5633_v12 = vpop.eup %5632 }
 0xab2   :  { %4682 = vmatmul.msk.bf16.vlgmr.msra.gmra.mxu1 %vm783_vm1, %v2935_v39  ;;  %v5635_v16 = vpop.eup %5634  ;;  %v2774_v52 = vmul.f32 %v5633_v12, %v6641_v34  ;;  %v2963_v44 = vpack.c.b16 %v2962_v49, %v2961_v61  ;;  %v5137_v12 = vld [vmem:[%s7011_s24 + $0x68] sm:$0xff]  ;;  %v5135_v61 = vld [vmem:[%s7011_s24 + $0x58] sm:$0xff] }
 0xab3   :  { %v5424_v14 = vpop.permute.xlu1 %5423  ;;  %v2773_v17 = vmul.f32 %v5635_v16, %v6628_v18 }
 0xab4   :  { %v5426_v20 = vunpack.i.h.bf16 %v5424_v14  ;;  %v5425_v21 = vunpack.i.l.bf16 %v5424_v14  ;;  %v2790_v35 = vpack.c.bf16 %v2774_v52, %v2774_v52 }
 0xab5   :  { %v2789_v5 = vpack.c.bf16 %v2773_v17, %v2773_v17 }
 0xab6   :  { %v2340_v55 = vpack.c.bf16 %v5426_v20, %v5426_v20  ;;  %v2339_v27 = vpack.c.bf16 %v5425_v21, %v5425_v21  ;;  %v2990_v29 = vunpack.c.l.b16 %v2790_v35 }
 0xab7   :  { %v2989_v48 = vunpack.c.l.b16 %v2789_v5 }
 0xab8   :  { %v2967_v56 = vunpack.c.l.b16 %v2340_v55  ;;  %v2966_v10 = vunpack.c.l.b16 %v2339_v27  ;;  %v5139_v27 = vld [vmem:[%s7011_s24 + $0x78] sm:$0xff] }
 0xab9   :  { %v2991_v34 = vpack.c.b16 %v2990_v29, %v2989_v48 }
 0xaba   :  { %v2968_v15 = vpack.c.b16 %v2967_v56, %v2966_v10  ;;  %v5136_v10 = vld [vmem:[%s7011_s24 + $0x60] sm:$0xff] }
 0xabc   :  { %2980 = vmatpush.bf16.msra.mxu2 %v2968_v15 }
 0xabd   :  { %v5429_v24 = vpop.permute.xlu0 %5428 }
 0xabe   :  { %v5431_v47 = vunpack.i.h.bf16 %v5429_v24  ;;  %v5430_v23 = vunpack.i.l.bf16 %v5429_v24  ;;  %v5133_v24 = vld [vmem:[%s7011_s24 + $0x48] sm:$0xff] }
 0xabf   :  { %4683 = vmatmul.msk.bf16.vlgmr.msra.gmra.mxu2 %vm783_vm1, %v2963_v44  ;;  %v5134_v44 = vld [vmem:[%s7011_s24 + $0x50] sm:$0xff] }
 0xac0   :  { %v2342_v32 = vpack.c.bf16 %v5431_v47, %v5431_v47  ;;  %v2341_v36 = vpack.c.bf16 %v5430_v23, %v5430_v23  ;;  %v5132_v47 = vld [vmem:[%s7011_s24 + $0x40] sm:$0xff] }
 0xac2   :  { %v2995_v11 = vunpack.c.l.b16 %v2342_v32  ;;  %v2994_v37 = vunpack.c.l.b16 %v2341_v36 }
 0xac4   :  { %v2996_v38 = vpack.c.b16 %v2995_v11, %v2994_v37 }
 0xac6   :  { %3008 = vmatpush.bf16.msrb.mxu3 %v2996_v38 }
 0xac9   :  { %4684 = vmatmul.msk.bf16.vlgmr.msrb.gmra.mxu3 %vm783_vm1, %v2991_v34 }
 0xadb   :  { %v2721_v59 = vpop.xlane.xlu2 %2720 }
 0xade   :  { %v2697_v18 = vpop.xlane.xlu1 %2696 }
 0xadf   :  { %5636 = vrcp.f32 %v2697_v18 }
 0xae5   :  { %v5637_v45 = vpop.eup %5636 }
 0xae6   :  { %v2759_v33 = vmul.f32 %v5637_v45, %v6661_v4  ;;  %v2724_v3 = vpop.xlane.xlu1 %2723 }
 0xae8   :  { %v2700_v26 = vpop.xlane.xlu0 %2699  ;;  %v2775_v8 = vpack.c.bf16 %v2759_v33, %v2759_v33 }
 0xae9   :  { %5638 = vrcp.f32 %v2700_v26 }
 0xaea   :  { %5640 = vrcp.f32 %v2724_v3  ;;  %v2793_v42 = vunpack.c.l.b16 %v2775_v8 }
 0xaeb   :  { %5642 = vrcp.f32 %v2721_v59 }
 0xaef   :  { %v5639_v22 = vpop.eup %5638 }
 0xaf0   :  { %v2760_v40 = vmul.f32 %v5639_v22, %v6673_v54  ;;  %v5641_v63 = vpop.eup %5640 }
 0xaf1   :  { %v5643_v9 = vpop.eup %5642  ;;  %v2768_v4 = vmul.f32 %v5641_v63, %v6670_v25 }
 0xaf2   :  { %v2776_v2 = vpack.c.bf16 %v2760_v40, %v2760_v40  ;;  %v2767_v62 = vmul.f32 %v5643_v9, %v6659_v43 }
 0xaf3   :  { %v2784_v0 = vpack.c.bf16 %v2768_v4, %v2768_v4 }
 0xaf4   :  { %v2794_v1 = vunpack.c.l.b16 %v2776_v2  ;;  %v2898_v53 = vpop.f32.mrf.mxu3  ;;  %v2783_v39 = vpack.c.bf16 %v2767_v62, %v2767_v62 }
 0xaf5   :  { %v2906_v60 = vunpack.c.l.b16 %v2784_v0 }
 0xaf6   :  { %v2795_v13 = vpack.c.b16 %v2794_v1, %v2793_v42  ;;  %v2842_v46 = vpop.f32.mrf.mxu1  ;;  %v2905_v20 = vunpack.c.l.b16 %v2783_v39 }
 0xaf8   :  { %4677 = vmatmul.msk.bf16.vlgmr.msrb.gmra.mxu0 %vm783_vm1, %v2795_v13  ;;  %v2907_v41 = vpack.c.b16 %v2906_v60, %v2905_v20 }
 0xaf9   :  { %3147 = vmatpush.bf16.msrb.mxu0 %v5139_v27 }
 0xafa   :  { %v2870_v7 = vpop.f32.mrf.mxu2 }
 0xafc   :  { %v2900_v28 = vpop.f32.mrf.mxu3 }
 0xafd   :  { %v5447_v54 = vpack.i.bf16 %v2900_v28, %v2898_v53  ;;  %3148 = vmatpush.bf16.msrb.mxu0 %v5138_v30 }
 0xafe   :  { %v2844_v58 = vpop.f32.mrf.mxu1 }
 0xaff   :  { %v5437_v6 = vpack.i.bf16 %v2844_v58, %v2842_v46  ;;  %5448 = vrot.lane.b32.xlu2 %v5447_v54, %s5835_s23 }
 0xb01   :  { %5438 = vrot.lane.b32.xlu0 %v5437_v6, %s5834_s2  ;;  %3149 = vmatpush.bf16.msrb.mxu0 %v5137_v12  ;;  %v5473_v6 = vld [vmem:[%s6984_s4 + $0x1] ss:$0 sm:$0xff] }
 0xb02   :  { %v2872_v14 = vpop.f32.mrf.mxu2 }
 0xb03   :  { %v5442_v21 = vpack.i.bf16 %v2872_v14, %v2870_v7 }
 0xb05   :  { %5443 = vrot.lane.b32.xlu1 %v5442_v21, %s5825_s25  ;;  %3150 = vmatpush.bf16.msrb.mxu0 %v5136_v10 }
 0xb08   :  { %4681 = vmatmul.msk.bf16.vlgmr.msra.gmra.mxu0 %vm783_vm1, %v2907_v41 }
 0xb09   :  { %3151 = vmatpush.bf16.msrb.mxu0 %v5135_v61 }
 0xb0d   :  { %3152 = vmatpush.bf16.msrb.mxu0 %v5134_v44 }
 0xb11   :  { %3153 = vmatpush.bf16.msrb.mxu0 %v5133_v24 }
 0xb15   :  { %3154 = vmatpush.bf16.msrb.mxu0 %v5132_v47 }
 0xb2f   :  { %v2954_v43 = vpop.f32.mrf.mxu1 }
 0xb37   :  { %v2956_v25 = vpop.f32.mrf.mxu1 }
 0xb38   :  { %v5452_v55 = vpack.i.bf16 %v2956_v25, %v2954_v43 }
 0xb3a   :  { %5453 = vrot.lane.b32.xlu0 %v5452_v55, %s5834_s2 }
 0xb42   :  { %v2982_v56 = vpop.f32.mrf.mxu2 }
 0xb4a   :  { %v2984_v49 = vpop.f32.mrf.mxu2 }
 0xb4b   :  { %v5457_v16 = vpack.i.bf16 %v2984_v49, %v2982_v56 }
 0xb4c   :  { %v3010_v15 = vpop.f32.mrf.mxu3 }
 0xb4d   :  { %5458 = vrot.lane.b32.xlu0 %v5457_v16, %s5825_s25 }
 0xb54   :  { %v3012_v52 = vpop.f32.mrf.mxu3 }
 0xb55   :  { %v5462_v17 = vpack.i.bf16 %v3012_v52, %v3010_v15 }
 0xb57   :  { %5463 = vrot.lane.b32.xlu1 %v5462_v17, %s5835_s23 }
 0xb59   :  { %v5449_v11 = vpop.permute.xlu2 %5448 }
 0xb5a   :  { %v5451_v18 = vunpack.i.h.bf16 %v5449_v11  ;;  %v5450_v26 = vunpack.i.l.bf16 %v5449_v11 }
 0xb73   :  { %v5439_v23 = vpop.permute.xlu0 %5438 }
 0xb74   :  { %v5440_v32 = vunpack.i.l.bf16 %v5439_v23  ;;  %v5441_v37 = vunpack.i.h.bf16 %v5439_v23 }
 0xb75   :  { %v2814_v35 = vpop.f32.mrf.mxu0 }
 0xb76   :  { %v3063_v29 = vsel %vm536_vm0, %v2814_v35, %v5440_v32  ;;  %v4811_v32 = vld [vmem:[%s6987_s7 + $0xf0] sm:$0xf] }
 0xb77   :  { %v5444_v36 = vpop.permute.xlu1 %5443 }
 0xb78   :  { %v5445_v5 = vunpack.i.l.bf16 %v5444_v36  ;;  %v5446_v38 = vunpack.i.h.bf16 %v5444_v36  ;;  %v5155_v36 = vld [vmem:[%s6987_s7 + $0xf4] sm:$0xf0] }
 0xb79   :  { %v4812_v11 = vor.u32 %v5155_v36, %v4811_v32 }
 0xb7a   :  { %v3067_v48 = vsel %vm1252_vm2, %v3063_v29, %v5445_v5  ;;  %v5154_v5 = vld [vmem:[%s6987_s7 + $0xf4] sm:$0xf] }
 0xb7b   :  { %v3071_v3 = vsel %vm1257_vm3, %v3067_v48, %v5450_v26  ;;  %3374 = vmatpush.bf16.msrb.mxu1 %v4812_v11  ;;  %v5153_v48 = vld [vmem:[%s6987_s7 + $0xe4] sm:$0xf0]  ;;  %v4805_v26 = vld [vmem:[%s6987_s7 + $0xe8] sm:$0xf0] }
 0xb7d   :  { %v2816_v34 = vpop.f32.mrf.mxu0 }
 0xb7e   :  { %v3064_v45 = vsel %vm536_vm0, %v2816_v34, %v5441_v37  ;;  %v4813_v37 = vld [vmem:[%s6987_s7 + $0xf8] sm:$0xf0]  ;;  %v5152_v34 = vld [vmem:[%s6987_s7 + $0xe4] sm:$0xf] }
 0xb7f   :  { %v3068_v33 = vsel %vm1252_vm2, %v3064_v45, %v5446_v38  ;;  %v4816_v29 = vor.u32 %v5154_v5, %v4813_v37  ;;  %v4803_v38 = vld [vmem:[%s6987_s7 + $0xe0] sm:$0xf]  ;;  %v4808_v45 = vor.u32 %v5152_v34, %v4805_v26 }
 0xb80   :  { %v3072_v22 = vsel %vm1257_vm3, %v3068_v33, %v5451_v18  ;;  %v4804_v18 = vor.u32 %v5153_v48, %v4803_v38  ;;  %v4795_v33 = vld [vmem:[%s6987_s7 + $0xd0] sm:$0xf]  ;;  %v5474_v48 = vld [vmem:[%s6985_s5 + $0x1] ss:$0 sm:$0xff] }
 0xb81   :  { %v3075_v59 = vpack.c.bf16 %v3072_v22, %v3071_v3  ;;  %3393 = vmatpush.bf16.msrb.mxu2 %v4816_v29  ;;  %v5151_v3 = vld [vmem:[%s6987_s7 + $0xd4] sm:$0xf0]  ;;  %v5150_v22 = vld [vmem:[%s6987_s7 + $0xd4] sm:$0xf] }
 0xb82   :  { %3375 = vmatpush.bf16.msrb.mxu1 %v4804_v18 }
 0xb83   :  { %3155 = vmatmul.bf16.vlgmr.msrb.gmra.mxu0 %v3075_v59  ;;  %v4796_v59 = vor.u32 %v5151_v3, %v4795_v33 }
 0xb85   :  { %v2926_v40 = vpop.f32.mrf.mxu0  ;;  %3394 = vmatpush.bf16.msrb.mxu2 %v4808_v45  ;;  %v5475_v45 = vld [vmem:[%s6986_s6 + $0x1] ss:$0 sm:$0xff] }
 0xb86   :  { %3376 = vmatpush.bf16.msrb.mxu1 %v4796_v59 }
 0xb8d   :  { %v2928_v63 = vpop.f32.mrf.mxu0 }
 0xbac   :  { %v5454_v8 = vpop.permute.xlu0 %5453 }
 0xbad   :  { %v5456_v42 = vunpack.i.h.bf16 %v5454_v8  ;;  %v5455_v1 = vunpack.i.l.bf16 %v5454_v8  ;;  %v4797_v8 = vld [vmem:[%s6987_s7 + $0xd8] sm:$0xf0] }
 0xbaf   :  { %v3066_v9 = vsel %vm536_vm0, %v2928_v63, %v5456_v42  ;;  %v3065_v4 = vsel %vm536_vm0, %v2926_v40, %v5455_v1  ;;  %v4800_v40 = vor.u32 %v5150_v22, %v4797_v8  ;;  %v5149_v42 = vld [vmem:[%s6987_s7 + $0xc4] sm:$0xf0]  ;;  %v5148_v1 = vld [vmem:[%s6987_s7 + $0xc4] sm:$0xf] }
 0xbb1   :  { %3395 = vmatpush.bf16.msrb.mxu2 %v4800_v40 }
 0xbbf   :  { %v5459_v2 = vpop.permute.xlu0 %5458 }
 0xbc0   :  { %v5461_v53 = vunpack.i.h.bf16 %v5459_v2  ;;  %v5460_v13 = vunpack.i.l.bf16 %v5459_v2  ;;  %v4787_v2 = vld [vmem:[%s6987_s7 + $0xc0] sm:$0xf] }
 0xbc2   :  { %v3069_v28 = vsel %vm1252_vm2, %v3065_v4, %v5460_v13  ;;  %v3070_v0 = vsel %vm1252_vm2, %v3066_v9, %v5461_v53  ;;  %v4788_v53 = vor.u32 %v5149_v42, %v4787_v2  ;;  %v4789_v13 = vld [vmem:[%s6987_s7 + $0xc8] sm:$0xf0]  ;;  %v5147_v9 = vld [vmem:[%s6987_s7 + $0xb4] sm:$0xf0]  ;;  %v5146_v4 = vld [vmem:[%s6987_s7 + $0xb4] sm:$0xf] }
 0xbc3   :  { %v4792_v63 = vor.u32 %v5148_v1, %v4789_v13 }
 0xbc4   :  { %3377 = vmatpush.bf16.msrb.mxu1 %v4788_v53 }
 0xbc5   :  { %3396 = vmatpush.bf16.msrb.mxu2 %v4792_v63 }
 0xbc9   :  { %v5464_v46 = vpop.permute.xlu1 %5463 }
 0xbca   :  { %v5466_v7 = vunpack.i.h.bf16 %v5464_v46  ;;  %v5465_v62 = vunpack.i.l.bf16 %v5464_v46  ;;  %v4779_v46 = vld [vmem:[%s6987_s7 + $0xb0] sm:$0xf] }
 0xbcc   :  { %v3073_v54 = vsel %vm1257_vm3, %v3069_v28, %v5465_v62  ;;  %v3074_v58 = vsel %vm1257_vm3, %v3070_v0, %v5466_v7  ;;  %v4780_v7 = vor.u32 %v5147_v9, %v4779_v46  ;;  %v4781_v62 = vld [vmem:[%s6987_s7 + $0xb8] sm:$0xf0]  ;;  %v4771_v0 = vld [vmem:[%s6987_s7 + $0xa0] sm:$0xf] }
 0xbcd   :  { %v3076_v39 = vpack.c.bf16 %v3074_v58, %v3073_v54  ;;  %v4784_v28 = vor.u32 %v5146_v4, %v4781_v62  ;;  %v5145_v54 = vld [vmem:[%s6987_s7 + $0xa4] sm:$0xf0]  ;;  %v5144_v58 = vld [vmem:[%s6987_s7 + $0xa4] sm:$0xf] }
 0xbce   :  { %3378 = vmatpush.bf16.msrb.mxu1 %v4780_v7 }
 0xbcf   :  { %3160 = vmatmul.bf16.gmra.mxu0 %v3076_v39  ;;  %3397 = vmatpush.bf16.msrb.mxu2 %v4784_v28  ;;  %v4772_v39 = vor.u32 %v5145_v54, %v4771_v0 }
 0xbd2   :  { %3379 = vmatpush.bf16.msrb.mxu1 %v4772_v39 }
 0xc00   :  { %v3156_v60 = vpop.f32.mrf.mxu0 }
 0xc01   :  { %v3157_v14 = vadd.f32 %v5473_v6, %v3156_v60 }
 0xc03   :  { %v3166_v20 = vadd.f32 %v3157_v14, %v6481_v50  ;;  %v4763_v14 = vld [vmem:[%s6987_s7 + $0x90] sm:$0xf] }
 0xc05   :  { %3174 = vadd.xlane.f32.xlu2 %v3166_v20 }
 0xc08   :  { %v3158_v21 = vpop.f32.mrf.mxu0 }
 0xc09   :  { %v3159_v41 = vadd.f32 %v5473_v6, %v3158_v21  ;;  %v5142_v21 = vld [vmem:[%s6987_s7 + $0x94] sm:$0xf] }
 0xc0b   :  { %v3167_v43 = vadd.f32 %v3159_v41, %v6483_v19 }
 0xc0d   :  { %3176 = vadd.xlane.f32.xlu0 %v3167_v43 }
 0xc4c   :  { %v3161_v25 = vpop.f32.mrf.mxu0 }
 0xc4d   :  { %v3162_v55 = vadd.f32 %v5473_v6, %v3161_v25 }
 0xc4f   :  { %v3168_v27 = vadd.f32 %v3162_v55, %v6491_v51 }
 0xc51   :  { %3178 = vadd.xlane.f32.xlu1 %v3168_v27 }
 0xc54   :  { %v3163_v30 = vpop.f32.mrf.mxu0 }
 0xc55   :  { %v3164_v12 = vadd.f32 %v5473_v6, %v3163_v30  ;;  %v4773_v6 = vld [vmem:[%s6987_s7 + $0xa8] sm:$0xf0]  ;;  %v4755_v30 = vld [vmem:[%s6987_s7 + $0x80] sm:$0xf] }
 0xc56   :  { %v4776_v60 = vor.u32 %v5144_v58, %v4773_v6 }
 0xc57   :  { %v3169_v56 = vadd.f32 %v3164_v12, %v6493_v57  ;;  %v5141_v12 = vld [vmem:[%s6987_s7 + $0x84] sm:$0xf0] }
 0xc58   :  { %3398 = vmatpush.bf16.msrb.mxu2 %v4776_v60 }
 0xc59   :  { %3180 = vadd.xlane.f32.xlu2 %v3169_v56 }
 0xc78   :  { %v3175_v10 = vpop.xlane.xlu2 %3174 }
 0xc79   :  { %v3182_v49 = vmul.f32 %v3175_v10, %v6285_v31 }
 0xc7b   :  { %v6749_v50 = vsub.f32 %v3166_v20, %v3182_v49  ;;  %v5143_v20 = vld [vmem:[%s6987_s7 + $0x94] sm:$0xf0]  ;;  %v4756_v49 = vor.u32 %v5141_v12, %v4755_v30  ;;  %v5161_v12 = vld [vmem:[#allocation5 + $0xa8] sm:$0xff] }
 0xc7c   :  { %v4764_v41 = vor.u32 %v5143_v20, %v4763_v14  ;;  %v5171_v30 = vld [vmem:[#allocation5 + $0xf8] sm:$0xff] }
 0xc7d   :  { %v3190_v16 = vmul.f32 %v6749_v50, %v6749_v50  ;;  %3641 = vmatpush.bf16.msra.mxu0 %v5171_v30 }
 0xc7e   :  { %3380 = vmatpush.bf16.msrb.mxu1 %v4764_v41 }
 0xc7f   :  { %3194 = vadd.xlane.f32.xlu0 %v3190_v16  ;;  %v4757_v16 = vld [vmem:[%s6987_s7 + $0x88] sm:$0xf0] }
 0xc80   :  { %v3177_v19 = vpop.xlane.xlu0 %3176 }
 0xc81   :  { %v3183_v15 = vmul.f32 %v3177_v19, %v6285_v31 }
 0xc82   :  { %3381 = vmatpush.bf16.msrb.mxu1 %v4756_v49  ;;  %v5159_v49 = vld [vmem:[#allocation5 + $0x98] sm:$0xff] }
 0xc83   :  { %v6754_v61 = vsub.f32 %v3167_v43, %v3183_v15  ;;  %v4765_v43 = vld [vmem:[%s6987_s7 + $0x98] sm:$0xf0] }
 0xc84   :  { %v4768_v55 = vor.u32 %v5142_v21, %v4765_v43 }
 0xc85   :  { %v3191_v51 = vmul.f32 %v6754_v61, %v6754_v61 }
 0xc86   :  { %3399 = vmatpush.bf16.msrb.mxu2 %v4768_v55 }
 0xc87   :  { %3196 = vadd.xlane.f32.xlu1 %v3191_v51 }
 0xcc4   :  { %v3179_v57 = vpop.xlane.xlu1 %3178 }
 0xcc5   :  { %v3184_v52 = vmul.f32 %v3179_v57, %v6285_v31 }
 0xcc7   :  { %v6759_v17 = vsub.f32 %v3168_v27, %v3184_v52 }
 0xcc9   :  { %v3192_v44 = vmul.f32 %v6759_v17, %v6759_v17 }
 0xccb   :  { %3198 = vadd.xlane.f32.xlu2 %v3192_v44 }
 0xccc   :  { %v3181_v24 = vpop.xlane.xlu2 %3180 }
 0xccd   :  { %v3185_v47 = vmul.f32 %v3181_v24, %v6285_v31 }
 0xccf   :  { %v6764_v23 = vsub.f32 %v3169_v56, %v3185_v47  ;;  %v5140_v56 = vld [vmem:[%s6987_s7 + $0x84] sm:$0xf] }
 0xcd0   :  { %v4760_v19 = vor.u32 %v5140_v56, %v4757_v16  ;;  %v5160_v56 = vld [vmem:[#allocation5 + $0xa0] sm:$0xff] }
 0xcd1   :  { %v3193_v35 = vmul.f32 %v6764_v23, %v6764_v23  ;;  %v5168_v16 = vld [vmem:[#allocation5 + $0xe0] sm:$0xff] }
 0xcd2   :  { %3400 = vmatpush.bf16.msrb.mxu2 %v4760_v19  ;;  %v5158_v19 = vld [vmem:[#allocation5 + $0x90] sm:$0xff] }
 0xcd3   :  { %3200 = vadd.xlane.f32.xlu0 %v3193_v35 }
 0xcf2   :  { %v3195_v25 = vpop.xlane.xlu0 %3194 }
 0xcf3   :  { %v3202_v27 = vmul.f32 %v3195_v25, %v6285_v31 }
 0xcf5   :  { %v3206_v10 = vadd.f32 1e-12, %v3202_v27  ;;  %v5163_v27 = vld [vmem:[#allocation5 + $0xb8] sm:$0xff] }
 0xcf6   :  { %3622 = vmatpush.bf16.msra.mxu3 %v5163_v27 }
 0xcf7   :  { %5644 = vrsqrt.f32 %v3206_v10  ;;  %vm3216_vm1 = vweird.f32 %v3206_v10 }
 0xcfa   :  { %v3197_v15 = vpop.xlane.xlu1 %3196 }
 0xcfb   :  { %v3203_v51 = vmul.f32 %v3197_v15, %v6285_v31  ;;  %v5167_v15 = vld [vmem:[#allocation5 + $0xd8] sm:$0xff] }
 0xcfd   :  { %v5645_v57 = vpop.eup %5644  ;;  %v3207_v52 = vadd.f32 1e-12, %v3203_v51  ;;  %v4752_v51 = vld [vmem:[%s6988_s8 + $0x2] sm:$0x3] }
 0xcfe   :  { %v3211_v44 = vmul.f32 %v5645_v57, %v3206_v10  ;;  %vm3217_vm0 = vweird.f32 %v5645_v57  ;;  %v5169_v10 = vld [vmem:[#allocation5 + $0xe8] sm:$0xff] }
 0xcff   :  { %5646 = vrsqrt.f32 %v3207_v52  ;;  %vm3218_vm2 = vmor %vm3216_vm1, %vm3217_vm0  ;;  %vm3226_vm5 = vweird.f32 %v3207_v52 }
 0xd00   :  { %v3212_v24 = vmul.f32 %v5645_v57, %v3211_v44  ;;  %v6893_v44 = vperm.slane %v4752_v51, 0 }
 0xd02   :  { %v3213_v47 = vmul.f32 0.5, %v3212_v24  ;;  %v5156_v24 = vld [vmem:[#allocation5 + $0x80] sm:$0xff] }
 0xd04   :  { %v3214_v35 = vsub.f32 1.5, %v3213_v47 }
 0xd05   :  { %v5647_v32 = vpop.eup %5646 }
 0xd06   :  { %v3215_v36 = vmul.f32 %v5645_v57, %v3214_v35  ;;  %v3221_v5 = vmul.f32 %v5647_v32, %v3207_v52  ;;  %vm3227_vm3 = vweird.f32 %v5647_v32  ;;  %v5166_v52 = vld [vmem:[#allocation5 + $0xd0] sm:$0xff]  ;;  %v5165_v35 = vld [vmem:[#allocation5 + $0xc8] sm:$0xff] }
 0xd07   :  { %vm3228_vm6 = vmor %vm3226_vm5, %vm3227_vm3 }
 0xd08   :  { %v3222_v11 = vmul.f32 %v5647_v32, %v3221_v5  ;;  %v3219_v37 = vsel %vm3218_vm2, %v5645_v57, %v3215_v36  ;;  %v5157_v57 = vld [vmem:[#allocation5 + $0x88] sm:$0xff]  ;;  %v6896_v5 = vperm.slane %v4752_v51, 1 }
 0xd09   :  { %v3250_v34 = vmul.f32 %v3219_v37, %v6749_v50 }
 0xd0a   :  { %v3223_v29 = vmul.f32 0.5, %v3222_v11  ;;  %v5164_v11 = vld [vmem:[#allocation5 + $0xc0] sm:$0xff] }
 0xd0b   :  { %v3257_v33 = vmul.f32 %v5474_v48, %v3250_v34 }
 0xd0c   :  { %v3224_v38 = vsub.f32 1.5, %v3223_v29 }
 0xd0d   :  { %v6874_v59 = vadd.f32 %v5475_v45, %v3257_v33 }
 0xd0e   :  { %v3225_v18 = vmul.f32 %v5647_v32, %v3224_v38 }
 0xd10   :  { %v3229_v26 = vsel %vm3228_vm6, %v5647_v32, %v3225_v18 }
 0xd11   :  { %v3251_v3 = vmul.f32 %v3229_v26, %v6754_v61 }
 0xd13   :  { %v3258_v22 = vmul.f32 %v5474_v48, %v3251_v3 }
 0xd15   :  { %v6876_v8 = vadd.f32 %v5475_v45, %v3258_v22 }
 0xd17   :  { %v3268_v40 = vpack.c.bf16 %v6876_v8, %v6874_v59 }
 0xd19   :  { %3382 = vmatmul.bf16.vlgmr.msrb.gmra.mxu1 %v3268_v40  ;;  %3401 = vmatmul.bf16.vlgmr.msrb.gmra.mxu2 %v3268_v40 }
 0xd3e   :  { %v3199_v50 = vpop.xlane.xlu2 %3198 }
 0xd3f   :  { %v3204_v2 = vmul.f32 %v3199_v50, %v6285_v31 }
 0xd41   :  { %v3208_v42 = vadd.f32 1e-12, %v3204_v2 }
 0xd43   :  { %5648 = vrsqrt.f32 %v3208_v42  ;;  %vm3236_vm8 = vweird.f32 %v3208_v42 }
 0xd46   :  { %v3201_v1 = vpop.xlane.xlu0 %3200 }
 0xd47   :  { %v3205_v53 = vmul.f32 %v3201_v1, %v6285_v31 }
 0xd49   :  { %v5649_v13 = vpop.eup %5648  ;;  %v3209_v61 = vadd.f32 1e-12, %v3205_v53 }
 0xd4a   :  { %v3231_v63 = vmul.f32 %v5649_v13, %v3208_v42  ;;  %vm3237_vm7 = vweird.f32 %v5649_v13 }
 0xd4b   :  { %5650 = vrsqrt.f32 %v3209_v61  ;;  %vm3238_vm9 = vmor %vm3236_vm8, %vm3237_vm7  ;;  %vm3246_vm11 = vweird.f32 %v3209_v61 }
 0xd4c   :  { %v3232_v46 = vmul.f32 %v5649_v13, %v3231_v63 }
 0xd4e   :  { %v3233_v9 = vmul.f32 0.5, %v3232_v46 }
 0xd50   :  { %v3234_v4 = vsub.f32 1.5, %v3233_v9 }
 0xd51   :  { %v5651_v7 = vpop.eup %5650 }
 0xd52   :  { %v3235_v62 = vmul.f32 %v5649_v13, %v3234_v4  ;;  %v3241_v28 = vmul.f32 %v5651_v7, %v3209_v61  ;;  %vm3247_vm10 = vweird.f32 %v5651_v7 }
 0xd53   :  { %vm3248_vm12 = vmor %vm3246_vm11, %vm3247_vm10 }
 0xd54   :  { %v3242_v0 = vmul.f32 %v5651_v7, %v3241_v28  ;;  %v3239_v54 = vsel %vm3238_vm9, %v5649_v13, %v3235_v62 }
 0xd55   :  { %v3252_v6 = vmul.f32 %v3239_v54, %v6759_v17  ;;  %v5162_v17 = vld [vmem:[#allocation5 + $0xb0] sm:$0xff] }
 0xd56   :  { %v3243_v58 = vmul.f32 0.5, %v3242_v0  ;;  %3623 = vmatpush.bf16.msra.mxu3 %v5162_v17 }
 0xd57   :  { %v3259_v21 = vmul.f32 %v5474_v48, %v3252_v6 }
 0xd58   :  { %v3244_v39 = vsub.f32 1.5, %v3243_v58 }
 0xd59   :  { %v6884_v43 = vadd.f32 %v5475_v45, %v3259_v21 }
 0xd5a   :  { %v3245_v60 = vmul.f32 %v5651_v7, %v3244_v39  ;;  %3624 = vmatpush.bf16.msra.mxu3 %v5161_v12 }
 0xd5c   :  { %v3249_v14 = vsel %vm3248_vm12, %v5651_v7, %v3245_v60 }
 0xd5d   :  { %v3253_v20 = vmul.f32 %v3249_v14, %v6764_v23  ;;  %v5170_v23 = vld [vmem:[#allocation5 + $0xf0] sm:$0xff] }
 0xd5e   :  { %3642 = vmatpush.bf16.msra.mxu0 %v5170_v23  ;;  %3625 = vmatpush.bf16.msra.mxu3 %v5160_v56 }
 0xd5f   :  { %v3260_v41 = vmul.f32 %v5474_v48, %v3253_v20 }
 0xd61   :  { %v6886_v25 = vadd.f32 %v5475_v45, %v3260_v41 }
 0xd62   :  { %3643 = vmatpush.bf16.msra.mxu0 %v5169_v10  ;;  %3626 = vmatpush.bf16.msra.mxu3 %v5159_v49 }
 0xd63   :  { %v3269_v55 = vpack.c.bf16 %v6886_v25, %v6884_v43 }
 0xd65   :  { %3387 = vmatmul.bf16.gmra.mxu1 %v3269_v55  ;;  %3406 = vmatmul.bf16.gmra.mxu2 %v3269_v55 }
 0xd66   :  { %3644 = vmatpush.bf16.msra.mxu0 %v5168_v16  ;;  %3627 = vmatpush.bf16.msra.mxu3 %v5158_v19 }
 0xd6a   :  { %3645 = vmatpush.bf16.msra.mxu0 %v5167_v15  ;;  %3628 = vmatpush.bf16.msra.mxu3 %v5157_v57 }
 0xd6e   :  { %3646 = vmatpush.bf16.msra.mxu0 %v5166_v52  ;;  %3629 = vmatpush.bf16.msra.mxu3 %v5156_v24 }
 0xd72   :  { %3647 = vmatpush.bf16.msra.mxu0 %v5165_v35 }
 0xd76   :  { %3648 = vmatpush.bf16.msra.mxu0 %v5164_v11 }
 0xd96   :  { %v3383_v47 = vpop.f32.mrf.mxu1 }
 0xd97   :  { %v3384_v32 = vadd.f32 %v3383_v47, %v6893_v44 }
 0xd99   :  { %v3420_v36 = vmul.f32 %v3384_v32, %v3384_v32  ;;  %v3412_v58 = vmul.f32 0.5, %v3384_v32 }
 0xd9b   :  { %v3428_v37 = vmul.f32 %v3420_v36, %v3384_v32 }
 0xd9c   :  { %v3402_v29 = vpop.f32.mrf.mxu2 }
 0xd9d   :  { %v3436_v38 = vmul.f32 0.044715, %v3428_v37  ;;  %v3403_v48 = vadd.f32 %v3402_v29, %v6896_v5 }
 0xd9e   :  { %v3385_v34 = vpop.f32.mrf.mxu1 }
 0xd9f   :  { %v3444_v18 = vadd.f32 %v3436_v38, %v3384_v32  ;;  %v3421_v26 = vmul.f32 %v3403_v48, %v3403_v48  ;;  %v3386_v45 = vadd.f32 %v3385_v34, %v6893_v44  ;;  %v3413_v27 = vmul.f32 0.5, %v3403_v48 }
 0xda1   :  { %v3429_v33 = vmul.f32 %v3421_v26, %v3403_v48  ;;  %v3422_v3 = vmul.f32 %v3386_v45, %v3386_v45  ;;  %v3452_v22 = vmul.f32 0.7978846, %v3444_v18  ;;  %v3414_v39 = vmul.f32 0.5, %v3386_v45 }
 0xda3   :  { %v3437_v40 = vmul.f32 0.044715, %v3429_v33  ;;  %v3430_v50 = vmul.f32 %v3422_v3, %v3386_v45  ;;  %5652 = vtanh.f32 %v3452_v22 }
 0xda4   :  { %v3404_v2 = vpop.f32.mrf.mxu2 }
 0xda5   :  { %v3445_v42 = vadd.f32 %v3437_v40, %v3403_v48  ;;  %v3438_v1 = vmul.f32 0.044715, %v3430_v50  ;;  %v3405_v53 = vadd.f32 %v3404_v2, %v6896_v5 }
 0xda7   :  { %v3446_v13 = vadd.f32 %v3438_v1, %v3386_v45  ;;  %v3423_v61 = vmul.f32 %v3405_v53, %v3405_v53  ;;  %v3453_v63 = vmul.f32 0.7978846, %v3445_v42  ;;  %v3415_v17 = vmul.f32 0.5, %v3405_v53 }
 0xda9   :  { %v3454_v46 = vmul.f32 0.7978846, %v3446_v13  ;;  %v3431_v9 = vmul.f32 %v3423_v61, %v3405_v53  ;;  %v5653_v7 = vpop.eup %5652 }
 0xdaa   :  { %v3468_v0 = vadd.f32 1.0, %v5653_v7 }
 0xdab   :  { %5654 = vtanh.f32 %v3454_v46  ;;  %v3439_v4 = vmul.f32 0.044715, %v3431_v9 }
 0xdac   :  { %5656 = vtanh.f32 %v3453_v63  ;;  %v3476_v14 = vmul.f32 %v3468_v0, %v3412_v58 }
 0xdad   :  { %v3447_v62 = vadd.f32 %v3439_v4, %v3405_v53 }
 0xdaf   :  { %v3455_v28 = vmul.f32 0.7978846, %v3447_v62 }
 0xdb1   :  { %v5655_v54 = vpop.eup %5654  ;;  %5658 = vtanh.f32 %v3455_v28 }
 0xdb2   :  { %v3470_v6 = vadd.f32 1.0, %v5655_v54  ;;  %v5657_v60 = vpop.eup %5656 }
 0xdb3   :  { %v3469_v21 = vadd.f32 1.0, %v5657_v60 }
 0xdb4   :  { %v3478_v20 = vmul.f32 %v3470_v6, %v3414_v39  ;;  %v5476_v6 = vld [vmem:[%s6990_s10 + $0x1] ss:$0 sm:$0xff] }
 0xdb5   :  { %v3477_v12 = vmul.f32 %v3469_v21, %v3413_v27 }
 0xdb6   :  { %v3484_v41 = vpack.c.bf16 %v3478_v20, %v3476_v14 }
 0xdb7   :  { %v5659_v55 = vpop.eup %5658 }
 0xdb8   :  { %v3471_v30 = vadd.f32 1.0, %v5659_v55  ;;  %3630 = vmatmul.bf16.vlgmr.msra.gmra.mxu3 %v3484_v41 }
 0xdba   :  { %v3479_v23 = vmul.f32 %v3471_v30, %v3415_v17 }
 0xdbc   :  { %v3485_v56 = vpack.c.bf16 %v3479_v23, %v3477_v12 }
 0xdbe   :  { %3649 = vmatmul.bf16.vlgmr.msra.gmra.mxu0 %v3485_v56 }
 0xde2   :  { %v3388_v10 = vpop.f32.mrf.mxu1 }
 0xde3   :  { %v3389_v49 = vadd.f32 %v3388_v10, %v6893_v44 }
 0xde5   :  { %v3424_v16 = vmul.f32 %v3389_v49, %v3389_v49  ;;  %v3416_v53 = vmul.f32 0.5, %v3389_v49 }
 0xde7   :  { %v3432_v19 = vmul.f32 %v3424_v16, %v3389_v49 }
 0xde8   :  { %v3407_v15 = vpop.f32.mrf.mxu2 }
 0xde9   :  { %v3440_v51 = vmul.f32 0.044715, %v3432_v19  ;;  %v3408_v57 = vadd.f32 %v3407_v15, %v6896_v5 }
 0xdea   :  { %v3390_v52 = vpop.f32.mrf.mxu1 }
 0xdeb   :  { %v3448_v24 = vadd.f32 %v3440_v51, %v3389_v49  ;;  %v3425_v47 = vmul.f32 %v3408_v57, %v3408_v57  ;;  %v3391_v35 = vadd.f32 %v3390_v52, %v6893_v44  ;;  %v3417_v62 = vmul.f32 0.5, %v3408_v57 }
 0xded   :  { %v3433_v32 = vmul.f32 %v3425_v47, %v3408_v57  ;;  %v3426_v36 = vmul.f32 %v3391_v35, %v3391_v35  ;;  %v3456_v11 = vmul.f32 0.7978846, %v3448_v24  ;;  %v3418_v13 = vmul.f32 0.5, %v3391_v35 }
 0xdef   :  { %v3441_v37 = vmul.f32 0.044715, %v3433_v32  ;;  %v3434_v29 = vmul.f32 %v3426_v36, %v3391_v35  ;;  %5660 = vtanh.f32 %v3456_v11 }
 0xdf0   :  { %v3409_v38 = vpop.f32.mrf.mxu2 }
 0xdf1   :  { %v3449_v48 = vadd.f32 %v3441_v37, %v3408_v57  ;;  %v3442_v34 = vmul.f32 0.044715, %v3434_v29  ;;  %v3410_v18 = vadd.f32 %v3409_v38, %v6896_v5 }
 0xdf3   :  { %v3450_v26 = vadd.f32 %v3442_v34, %v3391_v35  ;;  %v3427_v45 = vmul.f32 %v3410_v18, %v3410_v18  ;;  %v3457_v33 = vmul.f32 0.7978846, %v3449_v48  ;;  %v3419_v28 = vmul.f32 0.5, %v3410_v18 }
 0xdf5   :  { %v3458_v3 = vmul.f32 0.7978846, %v3450_v26  ;;  %v3435_v22 = vmul.f32 %v3427_v45, %v3410_v18  ;;  %v5661_v50 = vpop.eup %5660  ;;  %v5179_v26 = vld [vmem:[#allocation7 + $0x38] sm:$0xff]  ;;  %v5178_v45 = vld [vmem:[#allocation7 + $0x30] sm:$0xff] }
 0xdf6   :  { %v3472_v42 = vadd.f32 1.0, %v5661_v50  ;;  %3832 = vmatpush.bf16.msra.mxu1 %v5179_v26  ;;  %v5173_v50 = vld [vmem:[#allocation7 + $0x8] sm:$0xff] }
 0xdf7   :  { %5662 = vtanh.f32 %v3458_v3  ;;  %v3443_v40 = vmul.f32 0.044715, %v3435_v22  ;;  %v5176_v3 = vld [vmem:[#allocation7 + $0x20] sm:$0xff]  ;;  %v5175_v22 = vld [vmem:[#allocation7 + $0x18] sm:$0xff] }
 0xdf8   :  { %5664 = vtanh.f32 %v3457_v33  ;;  %v3480_v5 = vmul.f32 %v3472_v42, %v3416_v53  ;;  %v5177_v33 = vld [vmem:[#allocation7 + $0x28] sm:$0xff] }
 0xdf9   :  { %v3451_v44 = vadd.f32 %v3443_v40, %v3410_v18  ;;  %v5174_v40 = vld [vmem:[#allocation7 + $0x10] sm:$0xff] }
 0xdfa   :  { %3833 = vmatpush.bf16.msra.mxu1 %v5178_v45 }
 0xdfb   :  { %v3459_v2 = vmul.f32 0.7978846, %v3451_v44 }
 0xdfd   :  { %v5663_v1 = vpop.eup %5662  ;;  %5666 = vtanh.f32 %v3459_v2 }
 0xdfe   :  { %v3474_v61 = vadd.f32 1.0, %v5663_v1  ;;  %v5665_v63 = vpop.eup %5664  ;;  %3834 = vmatpush.bf16.msra.mxu1 %v5177_v33  ;;  %v5172_v1 = vld [vmem:[#allocation7] sm:$0xff] }
 0xdff   :  { %v3473_v4 = vadd.f32 1.0, %v5665_v63 }
 0xe00   :  { %v3482_v46 = vmul.f32 %v3474_v61, %v3418_v13 }
 0xe01   :  { %v3481_v54 = vmul.f32 %v3473_v4, %v3417_v62 }
 0xe02   :  { %v3486_v9 = vpack.c.bf16 %v3482_v46, %v3480_v5  ;;  %3835 = vmatpush.bf16.msra.mxu1 %v5176_v3  ;;  %v5479_v3 = vld [vmem:[%s6994_s14] ss:$0 sm:$0xff] }
 0xe03   :  { %v5667_v7 = vpop.eup %5666 }
 0xe04   :  { %3635 = vmatmul.bf16.gmra.mxu3 %v3486_v9  ;;  %v3475_v0 = vadd.f32 1.0, %v5667_v7 }
 0xe06   :  { %v3483_v58 = vmul.f32 %v3475_v0, %v3419_v28  ;;  %3836 = vmatpush.bf16.msra.mxu1 %v5175_v22 }
 0xe08   :  { %v3487_v39 = vpack.c.bf16 %v3483_v58, %v3481_v54 }
 0xe0a   :  { %3654 = vmatmul.bf16.gmra.mxu0 %v3487_v39  ;;  %3837 = vmatpush.bf16.msra.mxu1 %v5174_v40 }
 0xe0e   :  { %3838 = vmatpush.bf16.msra.mxu1 %v5173_v50 }
 0xe12   :  { %3839 = vmatpush.bf16.msra.mxu1 %v5172_v1 }
 0xe3b   :  { %v3631_v60 = vpop.f32.mrf.mxu3  ;;  %v3650_v14 = vpop.f32.mrf.mxu0 }
 0xe3c   :  { %v3632_v20 = vadd.f32 %v5476_v6, %v3631_v60 }
 0xe3e   :  { %v3651_v21 = vadd.f32 %v3650_v14, %v3632_v20 }
 0xe40   :  { %v3660_v41 = vadd.f32 %v3651_v21, %v6874_v59  ;;  %v5478_v21 = vld [vmem:[%s6992_s12 + $0x1] ss:$0 sm:$0xff] }
 0xe42   :  { %3668 = vadd.xlane.f32.xlu1 %v3660_v41 }
 0xe43   :  { %v3633_v55 = vpop.f32.mrf.mxu3  ;;  %v3652_v17 = vpop.f32.mrf.mxu0 }
 0xe44   :  { %v3634_v27 = vadd.f32 %v5476_v6, %v3633_v55 }
 0xe46   :  { %v3653_v30 = vadd.f32 %v3652_v17, %v3634_v27 }
 0xe48   :  { %v3661_v12 = vadd.f32 %v3653_v30, %v6876_v8 }
 0xe4a   :  { %3670 = vadd.xlane.f32.xlu2 %v3661_v12 }
 0xe87   :  { %v3636_v23 = vpop.f32.mrf.mxu3  ;;  %v3655_v56 = vpop.f32.mrf.mxu0 }
 0xe88   :  { %v3637_v10 = vadd.f32 %v5476_v6, %v3636_v23 }
 0xe8a   :  { %v3656_v49 = vadd.f32 %v3655_v56, %v3637_v10 }
 0xe8c   :  { %v3662_v16 = vadd.f32 %v3656_v49, %v6884_v43 }
 0xe8e   :  { %3672 = vadd.xlane.f32.xlu0 %v3662_v16 }
 0xe8f   :  { %v3638_v19 = vpop.f32.mrf.mxu3  ;;  %v3657_v51 = vpop.f32.mrf.mxu0 }
 0xe90   :  { %v3639_v15 = vadd.f32 %v5476_v6, %v3638_v19  ;;  %v5477_v6 = vld [vmem:[%s6991_s11 + $0x1] ss:$0 sm:$0xff] }
 0xe92   :  { %v3658_v57 = vadd.f32 %v3657_v51, %v3639_v15 }
 0xe94   :  { %v3663_v59 = vadd.f32 %v3658_v57, %v6886_v25 }
 0xe96   :  { %3674 = vadd.xlane.f32.xlu1 %v3663_v59 }
 0xeb5   :  { %v3669_v52 = vpop.xlane.xlu1 %3668 }
 0xeb6   :  { %v3676_v24 = vmul.f32 %v3669_v52, %v6285_v31 }
 0xeb8   :  { %v3680_v47 = vsub.f32 %v3660_v41, %v3676_v24 }
 0xeba   :  { %v3684_v8 = vmul.f32 %v3680_v47, %v3680_v47 }
 0xebc   :  { %3688 = vadd.xlane.f32.xlu2 %v3684_v8 }
 0xebd   :  { %v3671_v35 = vpop.xlane.xlu2 %3670 }
 0xebe   :  { %v3677_v32 = vmul.f32 %v3671_v35, %v6285_v31 }
 0xec0   :  { %v3681_v36 = vsub.f32 %v3661_v12, %v3677_v32 }
 0xec2   :  { %v3685_v11 = vmul.f32 %v3681_v36, %v3681_v36 }
 0xec4   :  { %3690 = vadd.xlane.f32.xlu0 %v3685_v11 }
 0xf01   :  { %v3673_v43 = vpop.xlane.xlu0 %3672 }
 0xf02   :  { %v3678_v37 = vmul.f32 %v3673_v43, %v6285_v31 }
 0xf04   :  { %v6915_v29 = vsub.f32 %v3662_v16, %v3678_v37 }
 0xf06   :  { %v3686_v25 = vmul.f32 %v6915_v29, %v6915_v29 }
 0xf08   :  { %3692 = vadd.xlane.f32.xlu1 %v3686_v25 }
 0xf09   :  { %v3675_v38 = vpop.xlane.xlu1 %3674 }
 0xf0a   :  { %v3679_v48 = vmul.f32 %v3675_v38, %v6285_v31 }
 0xf0c   :  { %v6920_v34 = vsub.f32 %v3663_v59, %v3679_v48 }
 0xf0e   :  { %v3687_v18 = vmul.f32 %v6920_v34, %v6920_v34 }
 0xf10   :  { %3694 = vadd.xlane.f32.xlu2 %v3687_v18 }
 0xf2f   :  { %v3689_v44 = vpop.xlane.xlu2 %3688 }
 0xf30   :  { %v3696_v2 = vmul.f32 %v3689_v44, %v6285_v31 }
 0xf32   :  { %v3700_v42 = vadd.f32 1e-12, %v3696_v2 }
 0xf34   :  { %5668 = vrsqrt.f32 %v3700_v42  ;;  %vm3710_vm14 = vweird.f32 %v3700_v42 }
 0xf37   :  { %v3691_v53 = vpop.xlane.xlu0 %3690 }
 0xf38   :  { %v3697_v13 = vmul.f32 %v3691_v53, %v6285_v31 }
 0xf3a   :  { %v5669_v61 = vpop.eup %5668  ;;  %v3701_v63 = vadd.f32 1e-12, %v3697_v13 }
 0xf3b   :  { %v3705_v5 = vmul.f32 %v5669_v61, %v3700_v42  ;;  %vm3711_vm13 = vweird.f32 %v5669_v61 }
 0xf3c   :  { %5670 = vrsqrt.f32 %v3701_v63  ;;  %vm3712_vm15 = vmor %vm3710_vm14, %vm3711_vm13  ;;  %vm3720_vm0 = vweird.f32 %v3701_v63 }
 0xf3d   :  { %v3706_v46 = vmul.f32 %v5669_v61, %v3705_v5 }
 0xf3f   :  { %v3707_v9 = vmul.f32 0.5, %v3706_v46 }
 0xf41   :  { %v3708_v4 = vsub.f32 1.5, %v3707_v9 }
 0xf42   :  { %v5671_v7 = vpop.eup %5670 }
 0xf43   :  { %v3709_v62 = vmul.f32 %v5669_v61, %v3708_v4  ;;  %v3715_v28 = vmul.f32 %v5671_v7, %v3701_v63  ;;  %vm3721_vm4 = vweird.f32 %v5671_v7 }
 0xf44   :  { %vm3722_vm1 = vmor %vm3720_vm0, %vm3721_vm4 }
 0xf45   :  { %v3716_v0 = vmul.f32 %v5671_v7, %v3715_v28  ;;  %v3713_v54 = vsel %vm3712_vm15, %v5669_v61, %v3709_v62 }
 0xf46   :  { %v3744_v60 = vmul.f32 %v3713_v54, %v3680_v47 }
 0xf47   :  { %v3717_v58 = vmul.f32 0.5, %v3716_v0 }
 0xf48   :  { %v3751_v41 = vmul.f32 %v5477_v6, %v3744_v60 }
 0xf49   :  { %v3718_v39 = vsub.f32 1.5, %v3717_v58 }
 0xf4a   :  { %v3758_v17 = vadd.f32 %v5478_v21, %v3751_v41 }
 0xf4b   :  { %v3719_v14 = vmul.f32 %v5671_v7, %v3718_v39 }
 0xf4d   :  { %v3723_v20 = vsel %vm3722_vm1, %v5671_v7, %v3719_v14 }
 0xf4e   :  { %v3745_v55 = vmul.f32 %v3723_v20, %v3681_v36 }
 0xf50   :  { %v3752_v27 = vmul.f32 %v5477_v6, %v3745_v55 }
 0xf52   :  { %v3759_v30 = vadd.f32 %v5478_v21, %v3752_v27 }
 0xf54   :  { %v3762_v12 = vpack.c.bf16 %v3759_v30, %v3758_v17 }
 0xf56   :  { %3840 = vmatmul.bf16.vlgmr.msra.gmra.mxu1 %v3762_v12 }
 0xf7b   :  { %v3693_v23 = vpop.xlane.xlu1 %3692 }
 0xf7c   :  { %v3698_v56 = vmul.f32 %v3693_v23, %v6285_v31 }
 0xf7e   :  { %v3702_v10 = vadd.f32 1e-12, %v3698_v56 }
 0xf80   :  { %5672 = vrsqrt.f32 %v3702_v10  ;;  %vm3730_vm3 = vweird.f32 %v3702_v10 }
 0xf83   :  { %v3695_v49 = vpop.xlane.xlu2 %3694 }
 0xf84   :  { %v3699_v16 = vmul.f32 %v3695_v49, %v6285_v31 }
 0xf86   :  { %v5673_v19 = vpop.eup %5672  ;;  %v3703_v15 = vadd.f32 1e-12, %v3699_v16 }
 0xf87   :  { %v3725_v51 = vmul.f32 %v5673_v19, %v3702_v10  ;;  %vm3731_vm2 = vweird.f32 %v5673_v19 }
 0xf88   :  { %5674 = vrsqrt.f32 %v3703_v15  ;;  %vm3732_vm5 = vmor %vm3730_vm3, %vm3731_vm2  ;;  %vm3740_vm7 = vweird.f32 %v3703_v15 }
 0xf89   :  { %v3726_v57 = vmul.f32 %v5673_v19, %v3725_v51 }
 0xf8b   :  { %v3727_v59 = vmul.f32 0.5, %v3726_v57 }
 0xf8d   :  { %v3728_v52 = vsub.f32 1.5, %v3727_v59 }
 0xf8e   :  { %v5675_v24 = vpop.eup %5674 }
 0xf8f   :  { %v3729_v47 = vmul.f32 %v5673_v19, %v3728_v52  ;;  %v3735_v8 = vmul.f32 %v5675_v24, %v3703_v15  ;;  %vm3741_vm6 = vweird.f32 %v5675_v24 }
 0xf90   :  { %vm3742_vm8 = vmor %vm3740_vm7, %vm3741_vm6 }
 0xf91   :  { %v3736_v35 = vmul.f32 %v5675_v24, %v3735_v8  ;;  %v3733_v32 = vsel %vm3732_vm5, %v5673_v19, %v3729_v47 }
 0xf92   :  { %v3746_v43 = vmul.f32 %v3733_v32, %v6915_v29 }
 0xf93   :  { %v3737_v36 = vmul.f32 0.5, %v3736_v35 }
 0xf94   :  { %v3753_v48 = vmul.f32 %v5477_v6, %v3746_v43 }
 0xf95   :  { %v3738_v11 = vsub.f32 1.5, %v3737_v36 }
 0xf96   :  { %v3760_v26 = vadd.f32 %v5478_v21, %v3753_v48 }
 0xf97   :  { %v3739_v37 = vmul.f32 %v5675_v24, %v3738_v11 }
 0xf99   :  { %v3743_v25 = vsel %vm3742_vm8, %v5675_v24, %v3739_v37 }
 0xf9a   :  { %v3747_v38 = vmul.f32 %v3743_v25, %v6920_v34 }
 0xf9c   :  { %v3754_v18 = vmul.f32 %v5477_v6, %v3747_v38 }
 0xf9e   :  { %v3761_v45 = vadd.f32 %v5478_v21, %v3754_v18 }
 0xfa0   :  { %v3763_v33 = vpack.c.bf16 %v3761_v45, %v3760_v26  ;;  %v5030_v45 = vld [vmem:[#allocation8 + $0xe0] sm:$0xf] }
 0xfa2   :  { %3845 = vmatmul.bf16.gmra.mxu1 %v3763_v33  ;;  %v5210_v33 = vld [vmem:[#allocation8 + $0xec] sm:$0xf0] }
 0xfd3   :  { %v3841_v22 = vpop.f32.mrf.mxu1 }
 0xfd4   :  { %v3842_v40 = vadd.f32 %v5479_v3, %v3841_v22  ;;  %v5031_v22 = vor.u32 %v5210_v33, %v5030_v45  ;;  %v4950_v33 = vld [vmem:[#allocation8 + $0x40] sm:$0xf] }
 0xfd6   :  { %v3855_v50 = vmul.f32 %v3842_v40, %v3842_v40  ;;  %v3851_v9 = vmul.f32 0.5, %v3842_v40  ;;  %4187 = vmatpush.bf16.msra.mxu2 %v5031_v22  ;;  %v5188_v22 = vld [vmem:[#allocation8 + $0x44] sm:$0xf] }
 0xfd8   :  { %v3859_v29 = vmul.f32 %v3855_v50, %v3842_v40  ;;  %v5038_v50 = vld [vmem:[#allocation8 + $0xe8] sm:$0xf] }
 0xfda   :  { %v3863_v44 = vmul.f32 0.044715, %v3859_v29  ;;  %v5211_v29 = vld [vmem:[#allocation8 + $0xf4] sm:$0xf0] }
 0xfdb   :  { %v3843_v2 = vpop.f32.mrf.mxu1 }
 0xfdc   :  { %v3867_v42 = vadd.f32 %v3863_v44, %v3842_v40  ;;  %v3844_v1 = vadd.f32 %v5479_v3, %v3843_v2  ;;  %v5032_v40 = vld [vmem:[#allocation8 + $0xf0] sm:$0xf0]  ;;  %v5039_v2 = vor.u32 %v5211_v29, %v5038_v50  ;;  %v4958_v29 = vld [vmem:[#allocation8 + $0x48] sm:$0xf] }
 0xfdd   :  { %v4952_v50 = vld [vmem:[#allocation8 + $0x50] sm:$0xf0] }
 0xfde   :  { %v3856_v53 = vmul.f32 %v3844_v1, %v3844_v1  ;;  %v3871_v34 = vmul.f32 0.7978846, %v3867_v42  ;;  %v3852_v28 = vmul.f32 0.5, %v3844_v1  ;;  %v5209_v42 = vld [vmem:[#allocation8 + $0xec] sm:$0xf]  ;;  %4225 = vmatpush.bf16.msrb.mxu0 %v5039_v2  ;;  %v4955_v2 = vor.u32 %v5188_v22, %v4952_v50 }
 0xfe0   :  { %v3860_v13 = vmul.f32 %v3856_v53, %v3844_v1  ;;  %5676 = vtanh.f32 %v3871_v34  ;;  %v5014_v34 = vld [vmem:[#allocation8 + $0xc0] sm:$0xf] }
 0xfe2   :  { %v3864_v61 = vmul.f32 0.044715, %v3860_v13  ;;  %v5206_v13 = vld [vmem:[#allocation8 + $0xcc] sm:$0xf0] }
 0xfe4   :  { %v3868_v63 = vadd.f32 %v3864_v61, %v3844_v1  ;;  %v5040_v1 = vld [vmem:[#allocation8 + $0xf8] sm:$0xf0]  ;;  %v5204_v61 = vld [vmem:[#allocation8 + $0xc4] sm:$0xf] }
 0xfe5   :  { %v5043_v53 = vor.u32 %v5209_v42, %v5040_v1  ;;  %v5189_v1 = vld [vmem:[#allocation8 + $0x4c] sm:$0xf] }
 0xfe6   :  { %v5677_v5 = vpop.eup %5676  ;;  %v3872_v46 = vmul.f32 0.7978846, %v3868_v63  ;;  %v5015_v63 = vor.u32 %v5206_v13, %v5014_v34  ;;  %v4934_v13 = vld [vmem:[#allocation8 + $0x20] sm:$0xf] }
 0xfe7   :  { %v3879_v4 = vadd.f32 1.0, %v5677_v5  ;;  %4244 = vmatpush.bf16.msrb.mxu1 %v5043_v53  ;;  %v5016_v5 = vld [vmem:[#allocation8 + $0xd0] sm:$0xf0]  ;;  %v4960_v53 = vld [vmem:[#allocation8 + $0x58] sm:$0xf0] }
 0xfe8   :  { %5678 = vtanh.f32 %v3872_v46  ;;  %v5022_v46 = vld [vmem:[#allocation8 + $0xc8] sm:$0xf]  ;;  %4188 = vmatpush.bf16.msra.mxu2 %v5015_v63  ;;  %v4963_v34 = vor.u32 %v5189_v1, %v4960_v53  ;;  %v5184_v63 = vld [vmem:[#allocation8 + $0x24] sm:$0xf] }
 0xfe9   :  { %v3883_v7 = vmul.f32 %v3879_v4, %v3851_v9  ;;  %v5207_v9 = vld [vmem:[#allocation8 + $0xd4] sm:$0xf0]  ;;  %v5019_v4 = vor.u32 %v5204_v61, %v5016_v5  ;;  %v5186_v61 = vld [vmem:[#allocation8 + $0x2c] sm:$0xf0] }
 0xfea   :  { %v4935_v5 = vor.u32 %v5186_v61, %v4934_v13 }
 0xfeb   :  { %3889 = vadd.xlane.f32.xlu0 %v3883_v7 }
 0xfee   :  { %v5679_v62 = vpop.eup %5678 }
 0xfef   :  { %v3880_v0 = vadd.f32 1.0, %v5679_v62  ;;  %v5205_v62 = vld [vmem:[#allocation8 + $0xcc] sm:$0xf] }
 0xff1   :  { %v3884_v54 = vmul.f32 %v3880_v0, %v3852_v28  ;;  %v5024_v28 = vld [vmem:[#allocation8 + $0xd8] sm:$0xf0] }
 0xff2   :  { %v5027_v0 = vor.u32 %v5205_v62, %v5024_v28 }
 0xff3   :  { %3891 = vadd.xlane.f32.xlu1 %v3884_v54 }
 0xff4   :  { %4245 = vmatpush.bf16.msrb.mxu1 %v5027_v0  ;;  %v5185_v0 = vld [vmem:[#allocation8 + $0x2c] sm:$0xf] }
0x101f   :  { %v3846_v58 = vpop.f32.mrf.mxu1 }
0x1020   :  { %v3847_v39 = vadd.f32 %v5479_v3, %v3846_v58  ;;  %v5202_v58 = vld [vmem:[#allocation8 + $0xac] sm:$0xf0] }
0x1022   :  { %v3857_v6 = vmul.f32 %v3847_v39, %v3847_v39  ;;  %v3853_v10 = vmul.f32 0.5, %v3847_v39 }
0x1024   :  { %v3861_v60 = vmul.f32 %v3857_v6, %v3847_v39 }
0x1026   :  { %v3865_v14 = vmul.f32 0.044715, %v3861_v60  ;;  %v5000_v60 = vld [vmem:[#allocation8 + $0xb0] sm:$0xf0] }
0x1027   :  { %v3848_v20 = vpop.f32.mrf.mxu1 }
0x1028   :  { %v3849_v21 = vadd.f32 %v5479_v3, %v3848_v20  ;;  %v3869_v41 = vadd.f32 %v3865_v14, %v3847_v39  ;;  %v5208_v3 = vld [vmem:[#allocation8 + $0xe4] sm:$0xf]  ;;  %v5006_v14 = vld [vmem:[#allocation8 + $0xa8] sm:$0xf]  ;;  %v5203_v20 = vld [vmem:[#allocation8 + $0xb4] sm:$0xf0] }
0x1029   :  { %v5035_v44 = vor.u32 %v5208_v3, %v5032_v40  ;;  %v5200_v39 = vld [vmem:[#allocation8 + $0xa4] sm:$0xf]  ;;  %v5190_v3 = vld [vmem:[#allocation8 + $0x4c] sm:$0xf0] }
0x102a   :  { %v3858_v55 = vmul.f32 %v3849_v21, %v3849_v21  ;;  %v3873_v27 = vmul.f32 0.7978846, %v3869_v41  ;;  %v3854_v15 = vmul.f32 0.5, %v3849_v21  ;;  %v5007_v41 = vor.u32 %v5203_v20, %v5006_v14  ;;  %v5180_v14 = vld [vmem:[#allocation8 + $0x4] sm:$0xf] }
0x102b   :  { %4206 = vmatpush.bf16.msrb.mxu3 %v5035_v44  ;;  %v4951_v40 = vor.u32 %v5190_v3, %v4950_v33  ;;  %v5191_v44 = vld [vmem:[#allocation8 + $0x54] sm:$0xf0] }
0x102c   :  { %v3862_v17 = vmul.f32 %v3858_v55, %v3849_v21  ;;  %5680 = vtanh.f32 %v3873_v27  ;;  %v5201_v55 = vld [vmem:[#allocation8 + $0xac] sm:$0xf]  ;;  %v5008_v27 = vld [vmem:[#allocation8 + $0xb8] sm:$0xf0]  ;;  %v4959_v42 = vor.u32 %v5191_v44, %v4958_v29 }
0x102e   :  { %v3866_v30 = vmul.f32 0.044715, %v3862_v17  ;;  %v5011_v17 = vor.u32 %v5201_v55, %v5008_v27  ;;  %v4926_v55 = vld [vmem:[#allocation8 + $0x8] sm:$0xf] }
0x102f   :  { %4207 = vmatpush.bf16.msrb.mxu3 %v5019_v4  ;;  %v5187_v4 = vld [vmem:[#allocation8 + $0x34] sm:$0xf0] }
0x1030   :  { %v3870_v12 = vadd.f32 %v3866_v30, %v3849_v21  ;;  %v5003_v21 = vor.u32 %v5200_v39, %v5000_v60  ;;  %v4982_v30 = vld [vmem:[#allocation8 + $0x80] sm:$0xf]  ;;  %4246 = vmatpush.bf16.msrb.mxu1 %v5011_v17  ;;  %v5182_v60 = vld [vmem:[#allocation8 + $0xc] sm:$0xf0]  ;;  %v5183_v17 = vld [vmem:[#allocation8 + $0x14] sm:$0xf0] }
0x1032   :  { %v5681_v23 = vpop.eup %5680  ;;  %v3874_v56 = vmul.f32 0.7978846, %v3870_v12  ;;  %v5198_v12 = vld [vmem:[#allocation8 + $0x8c] sm:$0xf0] }
0x1033   :  { %v3881_v49 = vadd.f32 1.0, %v5681_v23  ;;  %4208 = vmatpush.bf16.msrb.mxu3 %v5003_v21  ;;  %v5196_v23 = vld [vmem:[#allocation8 + $0x84] sm:$0xf] }
0x1034   :  { %5682 = vtanh.f32 %v3874_v56  ;;  %v4983_v56 = vor.u32 %v5198_v12, %v4982_v30  ;;  %v5181_v30 = vld [vmem:[#allocation8 + $0xc] sm:$0xf]  ;;  %v4928_v12 = vld [vmem:[#allocation8 + $0x18] sm:$0xf0] }
0x1035   :  { %v3885_v16 = vmul.f32 %v3881_v49, %v3853_v10  ;;  %v4984_v10 = vld [vmem:[#allocation8 + $0x90] sm:$0xf0]  ;;  %v4990_v49 = vld [vmem:[#allocation8 + $0x88] sm:$0xf] }
0x1037   :  { %3893 = vadd.xlane.f32.xlu2 %v3885_v16 }
0x103a   :  { %v5683_v19 = vpop.eup %5682 }
0x103b   :  { %v3882_v51 = vadd.f32 1.0, %v5683_v19  ;;  %v4987_v19 = vor.u32 %v5196_v23, %v4984_v10  ;;  %v4927_v23 = vor.u32 %v5183_v17, %v4926_v55 }
0x103d   :  { %v3886_v57 = vmul.f32 %v3882_v51, %v3854_v15  ;;  %v5197_v51 = vld [vmem:[#allocation8 + $0x8c] sm:$0xf]  ;;  %4209 = vmatpush.bf16.msrb.mxu3 %v4987_v19 }
0x103f   :  { %3895 = vadd.xlane.f32.xlu0 %v3886_v57 }
0x105e   :  { %v3890_v59 = vpop.xlane.xlu0 %3889 }
0x105f   :  { %v3897_v52 = vmul.f32 %v3890_v59, %v6285_v31 }
0x1061   :  { %v6940_v24 = vsub.f32 %v3883_v7, %v3897_v52  ;;  %v5023_v7 = vor.u32 %v5207_v9, %v5022_v46  ;;  %v4966_v52 = vld [vmem:[#allocation8 + $0x60] sm:$0xf]  ;;  %v4936_v46 = vld [vmem:[#allocation8 + $0x30] sm:$0xf0]  ;;  %v4942_v9 = vld [vmem:[#allocation8 + $0x28] sm:$0xf] }
0x1062   :  { %v4939_v62 = vor.u32 %v5184_v63, %v4936_v46  ;;  %v4943_v28 = vor.u32 %v5187_v4, %v4942_v9 }
0x1063   :  { %v3905_v47 = vmul.f32 %v6940_v24, %v6940_v24  ;;  %4226 = vmatpush.bf16.msrb.mxu0 %v5023_v7 }
0x1065   :  { %3909 = vadd.xlane.f32.xlu1 %v3905_v47  ;;  %v5194_v47 = vld [vmem:[#allocation8 + $0x6c] sm:$0xf0] }
0x1066   :  { %v3892_v8 = vpop.xlane.xlu1 %3891 }
0x1067   :  { %v3898_v35 = vmul.f32 %v3892_v8, %v6285_v31  ;;  %4227 = vmatpush.bf16.msrb.mxu0 %v5007_v41  ;;  %v5192_v8 = vld [vmem:[#allocation8 + $0x64] sm:$0xf]  ;;  %v4920_v41 = vld [vmem:[#allocation8 + $0x10] sm:$0xf0] }
0x1068   :  { %v4923_v27 = vor.u32 %v5180_v14, %v4920_v41 }
0x1069   :  { %v6945_v32 = vsub.f32 %v3884_v54, %v3898_v35  ;;  %v4998_v54 = vld [vmem:[#allocation8 + $0xa0] sm:$0xf]  ;;  %v4967_v35 = vor.u32 %v5194_v47, %v4966_v52 }
0x106a   :  { %v4999_v6 = vor.u32 %v5202_v58, %v4998_v54  ;;  %v4944_v54 = vld [vmem:[#allocation8 + $0x38] sm:$0xf0] }
0x106b   :  { %v3906_v36 = vmul.f32 %v6945_v32, %v6945_v32  ;;  %v4947_v39 = vor.u32 %v5185_v0, %v4944_v54 }
0x106c   :  { %4189 = vmatpush.bf16.msra.mxu2 %v4999_v6  ;;  %v4918_v6 = vld [vmem:[#allocation8] sm:$0xf] }
0x106d   :  { %3911 = vadd.xlane.f32.xlu2 %v3906_v36  ;;  %v4968_v36 = vld [vmem:[#allocation8 + $0x70] sm:$0xf0]  ;;  %v4919_v21 = vor.u32 %v5182_v60, %v4918_v6 }
0x1070   :  { %4190 = vmatpush.bf16.msra.mxu2 %v4983_v56  ;;  %v4931_v56 = vor.u32 %v5181_v30, %v4928_v12 }
0x1074   :  { %4191 = vmatpush.bf16.msra.mxu2 %v4967_v35 }
0x1078   :  { %4192 = vmatpush.bf16.msra.mxu2 %v4951_v40 }
0x107c   :  { %4193 = vmatpush.bf16.msra.mxu2 %v4935_v5 }
0x1080   :  { %4194 = vmatpush.bf16.msra.mxu2 %v4919_v21  ;;  %v4017_v21 = vld [vmem:[%s6998_s18] sm:$0xf]  ;;  %s5837_s18 = smov [#allocation10]  }
0x1081   :  { %v4022_v41 = vperm.slane %v4017_v21, 3  ;;  %v4020_v12 = vperm.slane %v4017_v21, 1  ;;  %s4283_s23 = sshll.u32 %s5837_s18, 4  ;;  %s4284_s23 = int_to_ptr.vmem [resolvable:$true] %s4283_s23 }
0x10aa   :  { %v3894_v11 = vpop.xlane.xlu2 %3893 }
0x10ab   :  { %v3899_v43 = vmul.f32 %v3894_v11, %v6285_v31  ;;  %v4974_v11 = vld [vmem:[#allocation8 + $0x68] sm:$0xf] }
0x10ad   :  { %v6950_v37 = vsub.f32 %v3885_v16, %v3899_v43  ;;  %v5199_v16 = vld [vmem:[#allocation8 + $0x94] sm:$0xf0] }
0x10ae   :  { %v4991_v15 = vor.u32 %v5199_v16, %v4990_v49  ;;  %v5195_v43 = vld [vmem:[#allocation8 + $0x74] sm:$0xf0] }
0x10af   :  { %v3907_v25 = vmul.f32 %v6950_v37, %v6950_v37 }
0x10b0   :  { %4228 = vmatpush.bf16.msrb.mxu0 %v4991_v15 }
0x10b1   :  { %3913 = vadd.xlane.f32.xlu0 %v3907_v25  ;;  %v4971_v25 = vor.u32 %v5192_v8, %v4968_v36 }
0x10b2   :  { %v3896_v38 = vpop.xlane.xlu0 %3895 }
0x10b3   :  { %v3900_v48 = vmul.f32 %v3896_v38, %v6285_v31  ;;  %v4975_v38 = vor.u32 %v5195_v43, %v4974_v11  ;;  %4210 = vmatpush.bf16.msrb.mxu3 %v4971_v25  ;;  %v5480_v25 = vld [vmem:[%s6995_s15] ss:$0 sm:$0xff] }
0x10b5   :  { %v6955_v18 = vsub.f32 %v3886_v57, %v3900_v48  ;;  %v4992_v57 = vld [vmem:[#allocation8 + $0x98] sm:$0xf0]  ;;  %v5193_v48 = vld [vmem:[#allocation8 + $0x6c] sm:$0xf]  ;;  %4229 = vmatpush.bf16.msrb.mxu0 %v4975_v38 }
0x10b6   :  { %v4995_v59 = vor.u32 %v5197_v51, %v4992_v57 }
0x10b7   :  { %v3908_v26 = vmul.f32 %v6955_v18, %v6955_v18  ;;  %4211 = vmatpush.bf16.msrb.mxu3 %v4955_v2 }
0x10b8   :  { %4247 = vmatpush.bf16.msrb.mxu1 %v4995_v59 }
0x10b9   :  { %3915 = vadd.xlane.f32.xlu1 %v3908_v26  ;;  %v4976_v26 = vld [vmem:[#allocation8 + $0x78] sm:$0xf0]  ;;  %4230 = vmatpush.bf16.msrb.mxu0 %v4959_v42 }
0x10ba   :  { %v4979_v45 = vor.u32 %v5193_v48, %v4976_v26 }
0x10bb   :  { %4212 = vmatpush.bf16.msrb.mxu3 %v4939_v62 }
0x10bc   :  { %4248 = vmatpush.bf16.msrb.mxu1 %v4979_v45  ;;  %v5481_v45 = vld [vmem:[%s6996_s16] ss:$0 sm:$0xff] }
0x10bd   :  { %4231 = vmatpush.bf16.msrb.mxu0 %v4943_v28 }
0x10bf   :  { %4213 = vmatpush.bf16.msrb.mxu3 %v4923_v27 }
0x10c0   :  { %4249 = vmatpush.bf16.msrb.mxu1 %v4963_v34 }
0x10c1   :  { %4232 = vmatpush.bf16.msrb.mxu0 %v4927_v23 }
0x10c4   :  { %4250 = vmatpush.bf16.msrb.mxu1 %v4947_v39 }
0x10c8   :  { %4251 = vmatpush.bf16.msrb.mxu1 %v4931_v56 }
0x10d8   :  { %v3910_v7 = vpop.xlane.xlu1 %3909 }
0x10d9   :  { %v3917_v58 = vmul.f32 %v3910_v7, %v6285_v31 }
0x10db   :  { %v3921_v20 = vadd.f32 1e-12, %v3917_v58 }
0x10dd   :  { %5684 = vrsqrt.f32 %v3921_v20  ;;  %vm3931_vm10 = vweird.f32 %v3921_v20 }
0x10e0   :  { %v3912_v10 = vpop.xlane.xlu2 %3911 }
0x10e1   :  { %v3918_v49 = vmul.f32 %v3912_v10, %v6285_v31 }
0x10e3   :  { %v5685_v16 = vpop.eup %5684  ;;  %v3922_v19 = vadd.f32 1e-12, %v3918_v49 }
0x10e4   :  { %v3926_v15 = vmul.f32 %v5685_v16, %v3921_v20  ;;  %vm3932_vm9 = vweird.f32 %v5685_v16 }
0x10e5   :  { %5686 = vrsqrt.f32 %v3922_v19  ;;  %vm3933_vm11 = vmor %vm3931_vm10, %vm3932_vm9  ;;  %vm3941_vm13 = vweird.f32 %v3922_v19 }
0x10e6   :  { %v3927_v51 = vmul.f32 %v5685_v16, %v3926_v15 }
0x10e8   :  { %v3928_v57 = vmul.f32 0.5, %v3927_v51 }
0x10ea   :  { %v3929_v59 = vsub.f32 1.5, %v3928_v57 }
0x10eb   :  { %v5687_v52 = vpop.eup %5686 }
0x10ec   :  { %v3930_v47 = vmul.f32 %v5685_v16, %v3929_v59  ;;  %v3936_v8 = vmul.f32 %v5687_v52, %v3922_v19  ;;  %vm3942_vm12 = vweird.f32 %v5687_v52 }
0x10ed   :  { %vm3943_vm14 = vmor %vm3941_vm13, %vm3942_vm12 }
0x10ee   :  { %v3937_v35 = vmul.f32 %v5687_v52, %v3936_v8  ;;  %v3934_v36 = vsel %vm3933_vm11, %v5685_v16, %v3930_v47 }
0x10ef   :  { %v3965_v38 = vmul.f32 %v3934_v36, %v6940_v24 }
0x10f0   :  { %v3938_v11 = vmul.f32 0.5, %v3937_v35 }
0x10f1   :  { %v3972_v33 = vmul.f32 %v5480_v25, %v3965_v38 }
0x10f2   :  { %v3939_v43 = vsub.f32 1.5, %v3938_v11 }
0x10f3   :  { %v3979_v40 = vadd.f32 %v5481_v45, %v3972_v33 }
0x10f4   :  { %v3940_v48 = vmul.f32 %v5687_v52, %v3939_v43 }
0x10f6   :  { %v3944_v26 = vsel %vm3943_vm14, %v5687_v52, %v3940_v48 }
0x10f7   :  { %v3966_v3 = vmul.f32 %v3944_v26, %v6945_v32 }
0x10f9   :  { %v3973_v22 = vmul.f32 %v5480_v25, %v3966_v3 }
0x10fb   :  { %v3980_v50 = vadd.f32 %v5481_v45, %v3973_v22 }
0x10fd   :  { %v3983_v29 = vpack.c.bf16 %v3980_v50, %v3979_v40 }
0x10ff   :  { %4195 = vmatmul.bf16.vlgmr.msra.gmra.mxu2 %v3983_v29  ;;  %4214 = vmatmul.bf16.vlgmr.msrb.gmra.mxu3 %v3983_v29 }
0x1100   :  { %4233 = vmatmul.bf16.vlgmr.msrb.gmra.mxu0 %v3983_v29  ;;  %4252 = vmatmul.bf16.vlgmr.msrb.gmra.mxu1 %v3983_v29 }
0x1124   :  { %v3914_v24 = vpop.xlane.xlu0 %3913 }
0x1125   :  { %v3919_v44 = vmul.f32 %v3914_v24, %v6285_v31 }
0x1127   :  { %v3923_v2 = vadd.f32 1e-12, %v3919_v44 }
0x1129   :  { %5688 = vrsqrt.f32 %v3923_v2  ;;  %vm3951_vm4 = vweird.f32 %v3923_v2 }
0x112c   :  { %v3916_v42 = vpop.xlane.xlu1 %3915 }
0x112d   :  { %v3920_v1 = vmul.f32 %v3916_v42, %v6285_v31 }
0x112f   :  { %v5689_v53 = vpop.eup %5688  ;;  %v3924_v34 = vadd.f32 1e-12, %v3920_v1 }
0x1130   :  { %v3946_v13 = vmul.f32 %v5689_v53, %v3923_v2  ;;  %vm3952_vm15 = vweird.f32 %v5689_v53 }
0x1131   :  { %5690 = vrsqrt.f32 %v3924_v34  ;;  %vm3953_vm0 = vmor %vm3951_vm4, %vm3952_vm15  ;;  %vm3961_vm2 = vweird.f32 %v3924_v34 }
0x1132   :  { %v3947_v32 = vmul.f32 %v5689_v53, %v3946_v13 }
0x1134   :  { %v3948_v61 = vmul.f32 0.5, %v3947_v32 }
0x1136   :  { %v3949_v63 = vsub.f32 1.5, %v3948_v61 }
0x1137   :  { %v5691_v5 = vpop.eup %5690 }
0x1138   :  { %v3950_v46 = vmul.f32 %v5689_v53, %v3949_v63  ;;  %v3956_v9 = vmul.f32 %v5691_v5, %v3924_v34  ;;  %vm3962_vm1 = vweird.f32 %v5691_v5 }
0x1139   :  { %vm3963_vm3 = vmor %vm3961_vm2, %vm3962_vm1 }
0x113a   :  { %v3957_v4 = vmul.f32 %v5691_v5, %v3956_v9  ;;  %v3954_v7 = vsel %vm3953_vm0, %v5689_v53, %v3950_v46 }
0x113b   :  { %v3967_v31 = vmul.f32 %v3954_v7, %v6950_v37  ;;  %v4021_v37 = vperm.slane %v4017_v21, 2 }
0x113c   :  { %v3958_v62 = vmul.f32 0.5, %v3957_v4 }
0x113d   :  { %v3974_v39 = vmul.f32 %v5480_v25, %v3967_v31 }
0x113e   :  { %v3959_v28 = vsub.f32 1.5, %v3958_v62 }
0x113f   :  { %v3981_v60 = vadd.f32 %v5481_v45, %v3974_v39 }
0x1140   :  { %v3960_v0 = vmul.f32 %v5691_v5, %v3959_v28 }
0x1142   :  { %v3964_v54 = vsel %vm3963_vm3, %v5691_v5, %v3960_v0 }
0x1143   :  { %v3968_v58 = vmul.f32 %v3964_v54, %v6955_v18  ;;  %v4019_v18 = vperm.slane %v4017_v21, 0 }
0x1145   :  { %v3975_v6 = vmul.f32 %v5480_v25, %v3968_v58 }
0x1147   :  { %v3982_v14 = vadd.f32 %v5481_v45, %v3975_v6 }
0x1149   :  { %v3984_v20 = vpack.c.bf16 %v3982_v14, %v3981_v60 }
0x114b   :  { %4200 = vmatmul.bf16.gmra.mxu2 %v3984_v20  ;;  %4219 = vmatmul.bf16.gmra.mxu3 %v3984_v20 }
0x114c   :  { %4238 = vmatmul.bf16.gmra.mxu0 %v3984_v20  ;;  %4257 = vmatmul.bf16.gmra.mxu1 %v3984_v20 }
0x117d   :  { %v4234_v55 = vpop.f32.mrf.mxu0  ;;  %v4253_v27 = vpop.f32.mrf.mxu1 }
0x117e   :  { %v4235_v17 = vadd.f32 %v4234_v55, %v4021_v37  ;;  %v4254_v30 = vadd.f32 %v4253_v27, %v4022_v41 }
0x1180   :  { %4265 = vst [vmem:[#allocation10 + $0x10] sm:$0xff] %v4235_v17 }
0x1181   :  { %4266 = vst [vmem:[#allocation10 + $0x18] sm:$0xff] %v4254_v30 }
0x1182   :  { %v4196_v23 = vpop.f32.mrf.mxu2  ;;  %v4215_v56 = vpop.f32.mrf.mxu3 }
0x1183   :  { %v4197_v10 = vadd.f32 %v4196_v23, %v4019_v18  ;;  %v4216_v49 = vadd.f32 %v4215_v56, %v4020_v12 }
0x1185   :  { %4263 = vst [vmem:[#allocation10] sm:$0xff] %v4197_v10  ;;  %v4236_v16 = vpop.f32.mrf.mxu0  ;;  %v4255_v19 = vpop.f32.mrf.mxu1 }
0x1186   :  { %4264 = vst [vmem:[#allocation10 + $0x8] sm:$0xff] %v4216_v49  ;;  %v4237_v15 = vadd.f32 %v4236_v16, %v4021_v37  ;;  %v4256_v51 = vadd.f32 %v4255_v19, %v4022_v41 }
0x1188   :  { %4269 = vst [vmem:[#allocation10 + $0x30] sm:$0xff] %v4237_v15 }
0x1189   :  { %4270 = vst [vmem:[#allocation10 + $0x38] sm:$0xff] %v4256_v51 }
0x118a   :  { %v4198_v57 = vpop.f32.mrf.mxu2  ;;  %v4217_v59 = vpop.f32.mrf.mxu3 }
0x118b   :  { %v4199_v52 = vadd.f32 %v4198_v57, %v4019_v18  ;;  %v4218_v47 = vadd.f32 %v4217_v59, %v4020_v12 }
0x118d   :  { %4267 = vst [vmem:[#allocation10 + $0x20] sm:$0xff] %v4199_v52 }
0x118e   :  { %4268 = vst [vmem:[#allocation10 + $0x28] sm:$0xff] %v4218_v47 }
0x11c9   :  { %v4239_v8 = vpop.f32.mrf.mxu0  ;;  %v4258_v35 = vpop.f32.mrf.mxu1 }
0x11ca   :  { %v4240_v36 = vadd.f32 %v4239_v8, %v4021_v37  ;;  %v4259_v11 = vadd.f32 %v4258_v35, %v4022_v41 }
0x11cc   :  { %4273 = vst [vmem:[#allocation10 + $0x50] sm:$0xff] %v4240_v36 }
0x11cd   :  { %4274 = vst [vmem:[#allocation10 + $0x58] sm:$0xff] %v4259_v11 }
0x11ce   :  { %v4201_v43 = vpop.f32.mrf.mxu2  ;;  %v4220_v25 = vpop.f32.mrf.mxu3 }
0x11cf   :  { %v4202_v38 = vadd.f32 %v4201_v43, %v4019_v18  ;;  %v4221_v48 = vadd.f32 %v4220_v25, %v4020_v12 }
0x11d1   :  { %4271 = vst [vmem:[#allocation10 + $0x40] sm:$0xff] %v4202_v38  ;;  %v4241_v26 = vpop.f32.mrf.mxu0  ;;  %v4260_v45 = vpop.f32.mrf.mxu1 }
0x11d2   :  { %4272 = vst [vmem:[#allocation10 + $0x48] sm:$0xff] %v4221_v48  ;;  %v4242_v33 = vadd.f32 %v4241_v26, %v4021_v37  ;;  %v4261_v3 = vadd.f32 %v4260_v45, %v4022_v41 }
0x11d4   :  { %4277 = vst [vmem:[#allocation10 + $0x70] sm:$0xff] %v4242_v33 }
0x11d5   :  { %4278 = vst [vmem:[#allocation10 + $0x78] sm:$0xff] %v4261_v3 }
0x11d6   :  { %v4203_v22 = vpop.f32.mrf.mxu2  ;;  %v4222_v40 = vpop.f32.mrf.mxu3 }
0x11d7   :  { %v4204_v50 = vadd.f32 %v4203_v22, %v4019_v18  ;;  %v4223_v29 = vadd.f32 %v4222_v40, %v4020_v12 }
0x11d9   :  { %4275 = vst [vmem:[#allocation10 + $0x60] sm:$0xff] %v4204_v50 }
0x11da   :  { %4276 = vst [vmem:[#allocation10 + $0x68] sm:$0xff] %v4223_v29 }
0x11db   :  { %4291 = dma.vmem_to_hbm [thread:$0]  %s4284_s23, 2048, %s4286_s28, [#allocation4], %s5838_s9, %s5838_s9, %s5834_s2  }
0x11dc   :  { %5822 = dma.done.wait [#allocation4], 2048  }
0x11dd   :  { %5823 = vsyncadd [#allocation4], 4294965248 }
0x11de   :  { %4296 = vsyncpa [#allocation3], 1 }
0x11df   :  { %4297 = vsyncpa [#allocation6], 1 }
0x11e0   :  { %4298 = vsyncpa [#allocation9], 1 }
0x11e1   :  { %4299 = vsyncpa [#allocation4], 1 }

</bundles_post_ra>
